<compile_context>
chip_gen: v7x
topology: tpu7x:2x2x1
jax: 0.10.0
libtpu: 0.0.40
codegen_flags: <defaults>
</compile_context>

<pallas_src>
import jax
import jax.numpy as jnp
from jax.experimental import pallas as pl
from jax.experimental.pallas import tpu as pltpu

LANE = 128


def _round_up(x, m):
    return (x + m - 1) // m * m


# ----------------------------------------------------------------------------
# Conv kernel: per grid step (batch n, output-row tile t) compute a
# (th, wo_pad, Cout_pad) output tile as a sum over k*k taps of
# (th*wo_pad, Cin_pad) @ (Cin_pad, Cout_pad) matmuls.  Optionally a 1x1 conv
# (classifier head) is fused into the epilogue.
# ----------------------------------------------------------------------------
def _make_conv_kernel(k, stride, th, wo, relu, fused):
    def kernel(*refs):
        if fused:
            x_ref, w_ref, b_ref, w2_ref, b2_ref, o_ref = refs
        else:
            x_ref, w_ref, b_ref, o_ref = refs
        t = pl.program_id(1)
        h0 = t * th
        cin = x_ref.shape[-1]
        cmid = w_ref.shape[-1]
        acc = jnp.zeros((th * wo, cmid), jnp.float32)
        for tap in range(k * k):
            di, dj = tap // k, tap % k
            phase = (di % stride) * stride + (dj % stride)
            xs = x_ref[0, phase,
                       pl.ds(h0 + di // stride, th),
                       pl.ds(dj // stride, wo), :]
            acc = acc + jnp.dot(xs.reshape(th * wo, cin), w_ref[tap],
                                preferred_element_type=jnp.float32)
        y = acc + b_ref[...]
        if relu:
            y = jnp.maximum(y, 0.0)
        if fused:
            y = jnp.dot(y.astype(w2_ref.dtype), w2_ref[...],
                        preferred_element_type=jnp.float32) + b2_ref[...]
        cout = o_ref.shape[-1]
        o_ref[...] = y.reshape(1, th, wo, cout).astype(o_ref.dtype)
    return kernel


def conv_nhwc(x, w_taps, b_row, *, stride, pad, relu,
              fuse_w=None, fuse_b=None, out_dtype=jnp.bfloat16, crop=True):
    """x: (N, H, W, Cp) NHWC with channels already padded to a multiple of 128.
    w_taps: (k*k, Cin_p, Cout_p) bf16, b_row: (1, Cout_p) f32.
    If crop=False, returns the spatially padded output plus the valid size."""
    N, H, W, cin = x.shape
    kk, cin_w, cmid = w_taps.shape
    k = int(round(kk ** 0.5))
    assert k * k == kk and cin_w == cin
    s = stride
    Ho = (H + 2 * pad - k) // s + 1
    Wo = (W + 2 * pad - k) // s + 1

    th = min(Ho, 16)                        # output row-tile height
    n_t = pl.cdiv(Ho, th)
    ho_pad = th * n_t
    wo_pad = _round_up(Wo, 8)               # sublane-aligned output width

    # stride-phase ("space-to-batch") decomposition: no k*k im2col expansion,
    # just a byte-preserving relayout (trivial for stride 1).
    hq = (k - 1) // s + ho_pad
    wq = (k - 1) // s + wo_pad
    hp_tot, wp_tot = s * hq, s * wq
    xp = jnp.pad(x, ((0, 0), (pad, hp_tot - H - pad),
                     (pad, wp_tot - W - pad), (0, 0)))
    xph = xp.reshape(N, hq, s, wq, s, cin)
    xph = jnp.transpose(xph, (0, 2, 4, 1, 3, 5)).reshape(N, s * s, hq, wq, cin)

    fused = fuse_w is not None
    cout = fuse_w.shape[-1] if fused else cmid

    kern = _make_conv_kernel(k, s, th, wo_pad, relu, fused)
    in_specs = [
        pl.BlockSpec((1, s * s, hq, wq, cin), lambda n, t: (n, 0, 0, 0, 0)),
        pl.BlockSpec((kk, cin, cmid), lambda n, t: (0, 0, 0)),
        pl.BlockSpec((1, cmid), lambda n, t: (0, 0)),
    ]
    args = [xph, w_taps, b_row]
    if fused:
        in_specs += [pl.BlockSpec(fuse_w.shape, lambda n, t: (0, 0)),
                     pl.BlockSpec(fuse_b.shape, lambda n, t: (0, 0))]
        args += [fuse_w, fuse_b]

    flops = 2 * N * ho_pad * wo_pad * kk * cin * cmid
    if fused:
        flops += 2 * N * ho_pad * wo_pad * cmid * cout
    bytes_acc = (xph.size * xph.dtype.itemsize
                 + w_taps.size * w_taps.dtype.itemsize
                 + b_row.size * 4
                 + N * ho_pad * wo_pad * cout * jnp.dtype(out_dtype).itemsize)

    out = pl.pallas_call(
        kern,
        out_shape=jax.ShapeDtypeStruct((N, ho_pad, wo_pad, cout), out_dtype),
        grid=(N, n_t),
        in_specs=in_specs,
        out_specs=pl.BlockSpec((1, th, wo_pad, cout), lambda n, t: (n, t, 0, 0)),
        compiler_params=pltpu.CompilerParams(
            dimension_semantics=("parallel", "parallel"),
            vmem_limit_bytes=32 * 1024 * 1024),
        cost_estimate=pl.CostEstimate(flops=int(flops), transcendentals=0,
                                      bytes_accessed=int(bytes_acc)),
    )(*args)
    if crop:
        return out[:, :Ho, :Wo, :]
    return out, (Ho, Wo)


# ----------------------------------------------------------------------------
# Weight preparation (PyTorch layouts -> lane-padded kernel layouts)
# ----------------------------------------------------------------------------
def _prep_conv(w, b):
    # w: (Cout, Cin, k, k), b: (Cout,)
    cout, cin, k, _ = w.shape
    cin_p, cout_p = _round_up(cin, LANE), _round_up(cout, LANE)
    wt = jnp.transpose(w, (2, 3, 1, 0))                       # (k, k, Cin, Cout)
    wt = jnp.pad(wt, ((0, 0), (0, 0), (0, cin_p - cin), (0, cout_p - cout)))
    wt = wt.reshape(k * k, cin_p, cout_p).astype(jnp.bfloat16)
    bb = jnp.pad(b, (0, cout_p - cout)).reshape(1, cout_p).astype(jnp.float32)
    return wt, bb


def _prep_1x1(w, b):
    # w: (Cout, Cin, 1, 1) -> (Cin_p, Cout_p) bf16, b -> (1, Cout_p) f32
    cout, cin = w.shape[0], w.shape[1]
    cin_p, cout_p = _round_up(cin, LANE), _round_up(cout, LANE)
    wm = jnp.transpose(w[:, :, 0, 0], (1, 0))
    wm = jnp.pad(wm, ((0, cin_p - cin), (0, cout_p - cout))).astype(jnp.bfloat16)
    bb = jnp.pad(b, (0, cout_p - cout)).reshape(1, cout_p).astype(jnp.float32)
    return wm, bb


# ----------------------------------------------------------------------------
# Fused bilinear resize (align_corners=False), one kernel call per batch
# element: width pass (batched MXU matmul over the few feature rows) then
# height pass (one lane-dense 2D matmul), intermediate kept in VMEM.
# ----------------------------------------------------------------------------
def _resize_kernel(x_ref, ah_ref, aw_ref, o_ref):
    # x_ref : (1, Hfp, Wfp, Cp) f32   padded feature map (pad gets zero weight)
    # ah_ref: (Hout, Hfp)       f32   height interpolation matrix
    # aw_ref: (Wout, Wfp)       f32   width interpolation matrix
    # o_ref : (1, Hout, Wout, Cp) f32
    _, hfp, wfp, cp = x_ref.shape
    hout = ah_ref.shape[0]
    wout = aw_ref.shape[0]
    x = x_ref[...].reshape(hfp, wfp, cp)
    # width pass, batched over the (few) input rows:
    #   y[r, w, c] = sum_v aw[w, v] * x[r, v, c]
    aw_b = jnp.broadcast_to(aw_ref[...][None, :, :], (hfp, wout, wfp))
    y = jnp.einsum('rwv,rvc->rwc', aw_b, x,
                   preferred_element_type=jnp.float32)
    # height pass (lane-dense: Wout*Cp lanes):
    #   out[h, (w, c)] = sum_r ah[h, r] * y[r, (w, c)]
    out = jnp.dot(ah_ref[...], y.reshape(hfp, wout * cp),
                  preferred_element_type=jnp.float32)
    o_ref[...] = out.reshape(1, hout, wout, cp)


def _bilinear_matrix(out_size, in_size):
    # PyTorch F.interpolate(mode='bilinear', align_corners=False) semantics.
    scale = in_size / out_size
    o = jnp.arange(out_size, dtype=jnp.float32)
    src = jnp.maximum((o + 0.5) * scale - 0.5, 0.0)
    i0 = jnp.minimum(jnp.floor(src).astype(jnp.int32), in_size - 1)
    i1 = jnp.minimum(i0 + 1, in_size - 1)
    w1 = src - i0.astype(jnp.float32)
    w0 = 1.0 - w1
    rows = jnp.arange(out_size)
    A = jnp.zeros((out_size, in_size), jnp.float32)
    A = A.at[rows, i0].add(w0)
    A = A.at[rows, i1].add(w1)
    return A


def bilinear_resize_fused(feat_nhwc, out_h, out_w, valid_h, valid_w):
    """feat_nhwc: (N, Hp, Wp, Cp) f32 where only the top-left (valid_h,
    valid_w) spatial block is meaningful.  Returns (N, out_h, out_w, Cp)."""
    N, hp, wp, cp = feat_nhwc.shape
    ah = _bilinear_matrix(out_h, valid_h)              # (out_h, valid_h)
    aw = _bilinear_matrix(out_w, valid_w)              # (out_w, valid_w)
    ah = jnp.pad(ah, ((0, 0), (0, hp - valid_h)))      # zero weight on pad rows
    aw = jnp.pad(aw, ((0, 0), (0, wp - valid_w)))      # zero weight on pad cols

    flops = 2 * N * (hp * out_w * wp * cp + out_h * hp * out_w * cp)
    bytes_acc = 4 * (feat_nhwc.size + ah.size + aw.size
                     + N * out_h * out_w * cp)
    return pl.pallas_call(
        _resize_kernel,
        out_shape=jax.ShapeDtypeStruct((N, out_h, out_w, cp), jnp.float32),
        grid=(N,),
        in_specs=[pl.BlockSpec((1, hp, wp, cp), lambda n: (n, 0, 0, 0)),
                  pl.BlockSpec((out_h, hp), lambda n: (0, 0)),
                  pl.BlockSpec((out_w, wp), lambda n: (0, 0))],
        out_specs=pl.BlockSpec((1, out_h, out_w, cp), lambda n: (n, 0, 0, 0)),
        compiler_params=pltpu.CompilerParams(
            dimension_semantics=("parallel",),
            vmem_limit_bytes=32 * 1024 * 1024),
        cost_estimate=pl.CostEstimate(flops=int(flops), transcendentals=0,
                                      bytes_accessed=int(bytes_acc)),
    )(feat_nhwc, ah, aw)


# ----------------------------------------------------------------------------
# CustomDeepLabV3 forward
# ----------------------------------------------------------------------------
def custom_deeplabv3_forward(params, x):
    input_shape = x.shape[-2:]
    num_classes = params["c2_w"].shape[0]

    # NCHW f32 -> NHWC bf16, channels zero-padded to 128 (lane-dense).
    h = jnp.transpose(x, (0, 2, 3, 1))
    h = jnp.pad(h, ((0, 0), (0, 0), (0, 0),
                    (0, _round_up(h.shape[-1], LANE) - h.shape[-1])))
    h = h.astype(jnp.bfloat16)

    # backbone (ResNet children[:-2] analogue): strided conv+ReLU stages
    w1, b1 = _prep_conv(params["b1_w"], params["b1_b"])
    h = conv_nhwc(h, w1, b1, stride=2, pad=1, relu=True, out_dtype=jnp.bfloat16)
    w2, b2 = _prep_conv(params["b2_w"], params["b2_b"])
    h = conv_nhwc(h, w2, b2, stride=2, pad=1, relu=True, out_dtype=jnp.bfloat16)

    # classifier head: 3x3 conv+ReLU with the 1x1 conv fused into the
    # epilogue; keep the padded spatial layout for direct consumption by the
    # resize kernel (padded channels are exactly zero, padded rows/cols get
    # zero interpolation weight).
    wc1, bc1 = _prep_conv(params["c1_w"], params["c1_b"])
    wc2, bc2 = _prep_1x1(params["c2_w"], params["c2_b"])
    logits_p, (hf, wf) = conv_nhwc(h, wc1, bc1, stride=1, pad=1, relu=True,
                                   fuse_w=wc2, fuse_b=bc2,
                                   out_dtype=jnp.float32, crop=False)

    # final bilinear upsample to the input spatial size (align_corners=False)
    up = bilinear_resize_fused(logits_p, input_shape[0], input_shape[1], hf, wf)
    out = jnp.transpose(up[..., :num_classes], (0, 3, 1, 2))   # NCHW
    return {"out": out}


# ----------------------------------------------------------------------------
# Main
# ----------------------------------------------------------------------------
if __name__ == "__main__":
    N, Cin, H, W = 2, 4, 16, 16
    mid, feat, num_classes = 8, 16, 3

    key = jax.random.PRNGKey(0)
    ks = jax.random.split(key, 9)
    x = jax.random.normal(ks[0], (N, Cin, H, W), jnp.float32)

    params = {
        "b1_w": 0.1 * jax.random.normal(ks[1], (mid, Cin, 3, 3), jnp.float32),
        "b1_b": 0.1 * jax.random.normal(ks[2], (mid,), jnp.float32),
        "b2_w": 0.1 * jax.random.normal(ks[3], (feat, mid, 3, 3), jnp.float32),
        "b2_b": 0.1 * jax.random.normal(ks[4], (feat,), jnp.float32),
        "c1_w": 0.1 * jax.random.normal(ks[5], (feat, feat, 3, 3), jnp.float32),
        "c1_b": 0.1 * jax.random.normal(ks[6], (feat,), jnp.float32),
        "c2_w": 0.1 * jax.random.normal(ks[7], (num_classes, feat, 1, 1), jnp.float32),
        "c2_b": 0.1 * jax.random.normal(ks[8], (num_classes,), jnp.float32),
    }

    fwd = jax.jit(custom_deeplabv3_forward)
    result = fwd(params, x)
    jax.block_until_ready(result["out"])

    assert result["out"].shape == (N, num_classes, H, W), result["out"].shape
    assert result["out"].dtype == jnp.float32
    print("KERNEL_OK")
</pallas_src>

<mosaic_0001>
module attributes {stable_mosaic.version = 11 : i64} {
  func.func private @main(%arg0: i32) attributes {dimension_semantics = [#tpu.dimension_semantics<core_parallel>], iteration_bounds = array<i64: 2>, tpu.core_type = #tpu.core_type<sc_scalar_subcore>, window_params = []} {
    return
  }
}

module attributes {stable_mosaic.version = 11 : i64} {
  func.func private @main(%arg0: i32) attributes {dimension_semantics = [#tpu.dimension_semantics<core_parallel>], iteration_bounds = array<i64: 2>, tpu.core_type = #tpu.core_type<sc_scalar_subcore>, window_params = []} {
    return
  }
}

module attributes {stable_mosaic.version = 11 : i64} {
  func.func @kernel(%arg0: i32, %arg1: i32, %arg2: memref<1x4x9x9x128xbf16, #tpu.memory_space<vmem>>, %arg3: memref<9x128x128xbf16, #tpu.memory_space<vmem>>, %arg4: memref<1x128xf32, #tpu.memory_space<vmem>>, %arg5: memref<1x8x8x128xbf16, #tpu.memory_space<vmem>>) attributes {dimension_semantics = [#tpu.dimension_semantics<parallel>, #tpu.dimension_semantics<parallel>], iteration_bounds = array<i64: 2, 1>, scalar_prefetch = 0 : i64, scratch_operands = 0 : i64, tpu.core_type = #tpu.core_type<tc>, window_params = [{transform_indices = @transform_0, window_bounds = array<i64: 1, 4, 9, 9, 128>}, {pipeline_mode = #tpu.pipeline_mode<synchronous>, transform_indices = @transform_1, window_bounds = array<i64: 9, 128, 128>}, {pipeline_mode = #tpu.pipeline_mode<synchronous>, transform_indices = @transform_2, window_bounds = array<i64: 1, 128>}, {transform_indices = @transform_3, window_bounds = array<i64: 1, 8, 8, 128>}]} {
    %c8_i32 = arith.constant 8 : i32
    %0 = arith.muli %arg1, %c8_i32 : i32
    %cst = arith.constant 0.000000e+00 : f32
    %1 = vector.broadcast %cst : f32 to vector<64x128xf32>
    %c0_i32 = arith.constant 0 : i32
    %2 = arith.addi %0, %c0_i32 : i32
    %c0 = arith.constant 0 : index
    %c0_0 = arith.constant 0 : index
    %3 = arith.index_cast %2 : i32 to index
    %c0_1 = arith.constant 0 : index
    %c0_2 = arith.constant 0 : index
    %4 = vector.load %arg2[%c0, %c0_0, %3, %c0_1, %c0_2] : memref<1x4x9x9x128xbf16, #tpu.memory_space<vmem>>, vector<1x1x8x8x128xbf16>
    %5 = vector.shape_cast %4 : vector<1x1x8x8x128xbf16> to vector<8x8x128xbf16>
    %6 = vector.shape_cast %5 : vector<8x8x128xbf16> to vector<64x128xbf16>
    %c0_3 = arith.constant 0 : index
    %c0_4 = arith.constant 0 : index
    %c0_5 = arith.constant 0 : index
    %7 = vector.load %arg3[%c0_3, %c0_4, %c0_5] : memref<9x128x128xbf16, #tpu.memory_space<vmem>>, vector<1x128x128xbf16>
    %8 = vector.shape_cast %7 : vector<1x128x128xbf16> to vector<128x128xbf16>
    %cst_6 = arith.constant dense<0.000000e+00> : vector<64x128xf32>
    %9 = tpu.matmul %6, %8, %cst_6 {dimension_numbers = #tpu.dot_dimension_numbers<[1], [0], [0], [1], [0, 0, 1, 1], [], []>} : vector<64x128xbf16>, vector<128x128xbf16>, vector<64x128xf32> -> vector<64x128xf32>
    %10 = arith.addf %1, %9 : vector<64x128xf32>
    %c0_i32_7 = arith.constant 0 : i32
    %11 = arith.addi %0, %c0_i32_7 : i32
    %c0_8 = arith.constant 0 : index
    %c1 = arith.constant 1 : index
    %12 = arith.index_cast %11 : i32 to index
    %c0_9 = arith.constant 0 : index
    %c0_10 = arith.constant 0 : index
    %13 = vector.load %arg2[%c0_8, %c1, %12, %c0_9, %c0_10] : memref<1x4x9x9x128xbf16, #tpu.memory_space<vmem>>, vector<1x1x8x8x128xbf16>
    %14 = vector.shape_cast %13 : vector<1x1x8x8x128xbf16> to vector<8x8x128xbf16>
    %15 = vector.shape_cast %14 : vector<8x8x128xbf16> to vector<64x128xbf16>
    %c1_11 = arith.constant 1 : index
    %c0_12 = arith.constant 0 : index
    %c0_13 = arith.constant 0 : index
    %16 = vector.load %arg3[%c1_11, %c0_12, %c0_13] : memref<9x128x128xbf16, #tpu.memory_space<vmem>>, vector<1x128x128xbf16>
    %17 = vector.shape_cast %16 : vector<1x128x128xbf16> to vector<128x128xbf16>
    %cst_14 = arith.constant dense<0.000000e+00> : vector<64x128xf32>
    %18 = tpu.matmul %15, %17, %cst_14 {dimension_numbers = #tpu.dot_dimension_numbers<[1], [0], [0], [1], [0, 0, 1, 1], [], []>} : vector<64x128xbf16>, vector<128x128xbf16>, vector<64x128xf32> -> vector<64x128xf32>
    %19 = arith.addf %10, %18 : vector<64x128xf32>
    %c0_i32_15 = arith.constant 0 : i32
    %20 = arith.addi %0, %c0_i32_15 : i32
    %c0_16 = arith.constant 0 : index
    %c0_17 = arith.constant 0 : index
    %21 = arith.index_cast %20 : i32 to index
    %c1_18 = arith.constant 1 : index
    %c0_19 = arith.constant 0 : index
    %22 = vector.load %arg2[%c0_16, %c0_17, %21, %c1_18, %c0_19] : memref<1x4x9x9x128xbf16, #tpu.memory_space<vmem>>, vector<1x1x8x8x128xbf16>
    %23 = vector.shape_cast %22 : vector<1x1x8x8x128xbf16> to vector<8x8x128xbf16>
    %24 = vector.shape_cast %23 : vector<8x8x128xbf16> to vector<64x128xbf16>
    %c2 = arith.constant 2 : index
    %c0_20 = arith.constant 0 : index
    %c0_21 = arith.constant 0 : index
    %25 = vector.load %arg3[%c2, %c0_20, %c0_21] : memref<9x128x128xbf16, #tpu.memory_space<vmem>>, vector<1x128x128xbf16>
    %26 = vector.shape_cast %25 : vector<1x128x128xbf16> to vector<128x128xbf16>
    %cst_22 = arith.constant dense<0.000000e+00> : vector<64x128xf32>
    %27 = tpu.matmul %24, %26, %cst_22 {dimension_numbers = #tpu.dot_dimension_numbers<[1], [0], [0], [1], [0, 0, 1, 1], [], []>} : vector<64x128xbf16>, vector<128x128xbf16>, vector<64x128xf32> -> vector<64x128xf32>
    %28 = arith.addf %19, %27 : vector<64x128xf32>
    %c0_i32_23 = arith.constant 0 : i32
    %29 = arith.addi %0, %c0_i32_23 : i32
    %c0_24 = arith.constant 0 : index
    %c2_25 = arith.constant 2 : index
    %30 = arith.index_cast %29 : i32 to index
    %c0_26 = arith.constant 0 : index
    %c0_27 = arith.constant 0 : index
    %31 = vector.load %arg2[%c0_24, %c2_25, %30, %c0_26, %c0_27] : memref<1x4x9x9x128xbf16, #tpu.memory_space<vmem>>, vector<1x1x8x8x128xbf16>
    %32 = vector.shape_cast %31 : vector<1x1x8x8x128xbf16> to vector<8x8x128xbf16>
    %33 = vector.shape_cast %32 : vector<8x8x128xbf16> to vector<64x128xbf16>
    %c3 = arith.constant 3 : index
    %c0_28 = arith.constant 0 : index
    %c0_29 = arith.constant 0 : index
    %34 = vector.load %arg3[%c3, %c0_28, %c0_29] : memref<9x128x128xbf16, #tpu.memory_space<vmem>>, vector<1x128x128xbf16>
    %35 = vector.shape_cast %34 : vector<1x128x128xbf16> to vector<128x128xbf16>
    %cst_30 = arith.constant dense<0.000000e+00> : vector<64x128xf32>
    %36 = tpu.matmul %33, %35, %cst_30 {dimension_numbers = #tpu.dot_dimension_numbers<[1], [0], [0], [1], [0, 0, 1, 1], [], []>} : vector<64x128xbf16>, vector<128x128xbf16>, vector<64x128xf32> -> vector<64x128xf32>
    %37 = arith.addf %28, %36 : vector<64x128xf32>
    %c0_i32_31 = arith.constant 0 : i32
    %38 = arith.addi %0, %c0_i32_31 : i32
    %c0_32 = arith.constant 0 : index
    %c3_33 = arith.constant 3 : index
    %39 = arith.index_cast %38 : i32 to index
    %c0_34 = arith.constant 0 : index
    %c0_35 = arith.constant 0 : index
    %40 = vector.load %arg2[%c0_32, %c3_33, %39, %c0_34, %c0_35] : memref<1x4x9x9x128xbf16, #tpu.memory_space<vmem>>, vector<1x1x8x8x128xbf16>
    %41 = vector.shape_cast %40 : vector<1x1x8x8x128xbf16> to vector<8x8x128xbf16>
    %42 = vector.shape_cast %41 : vector<8x8x128xbf16> to vector<64x128xbf16>
    %c4 = arith.constant 4 : index
    %c0_36 = arith.constant 0 : index
    %c0_37 = arith.constant 0 : index
    %43 = vector.load %arg3[%c4, %c0_36, %c0_37] : memref<9x128x128xbf16, #tpu.memory_space<vmem>>, vector<1x128x128xbf16>
    %44 = vector.shape_cast %43 : vector<1x128x128xbf16> to vector<128x128xbf16>
    %cst_38 = arith.constant dense<0.000000e+00> : vector<64x128xf32>
    %45 = tpu.matmul %42, %44, %cst_38 {dimension_numbers = #tpu.dot_dimension_numbers<[1], [0], [0], [1], [0, 0, 1, 1], [], []>} : vector<64x128xbf16>, vector<128x128xbf16>, vector<64x128xf32> -> vector<64x128xf32>
    %46 = arith.addf %37, %45 : vector<64x128xf32>
    %c0_i32_39 = arith.constant 0 : i32
    %47 = arith.addi %0, %c0_i32_39 : i32
    %c0_40 = arith.constant 0 : index
    %c2_41 = arith.constant 2 : index
    %48 = arith.index_cast %47 : i32 to index
    %c1_42 = arith.constant 1 : index
    %c0_43 = arith.constant 0 : index
    %49 = vector.load %arg2[%c0_40, %c2_41, %48, %c1_42, %c0_43] : memref<1x4x9x9x128xbf16, #tpu.memory_space<vmem>>, vector<1x1x8x8x128xbf16>
    %50 = vector.shape_cast %49 : vector<1x1x8x8x128xbf16> to vector<8x8x128xbf16>
    %51 = vector.shape_cast %50 : vector<8x8x128xbf16> to vector<64x128xbf16>
    %c5 = arith.constant 5 : index
    %c0_44 = arith.constant 0 : index
    %c0_45 = arith.constant 0 : index
    %52 = vector.load %arg3[%c5, %c0_44, %c0_45] : memref<9x128x128xbf16, #tpu.memory_space<vmem>>, vector<1x128x128xbf16>
    %53 = vector.shape_cast %52 : vector<1x128x128xbf16> to vector<128x128xbf16>
    %cst_46 = arith.constant dense<0.000000e+00> : vector<64x128xf32>
    %54 = tpu.matmul %51, %53, %cst_46 {dimension_numbers = #tpu.dot_dimension_numbers<[1], [0], [0], [1], [0, 0, 1, 1], [], []>} : vector<64x128xbf16>, vector<128x128xbf16>, vector<64x128xf32> -> vector<64x128xf32>
    %55 = arith.addf %46, %54 : vector<64x128xf32>
    %c1_i32 = arith.constant 1 : i32
    %56 = arith.addi %0, %c1_i32 : i32
    %c0_47 = arith.constant 0 : index
    %c0_48 = arith.constant 0 : index
    %57 = arith.index_cast %56 : i32 to index
    %c0_49 = arith.constant 0 : index
    %c0_50 = arith.constant 0 : index
    %58 = vector.load %arg2[%c0_47, %c0_48, %57, %c0_49, %c0_50] : memref<1x4x9x9x128xbf16, #tpu.memory_space<vmem>>, vector<1x1x8x8x128xbf16>
    %59 = vector.shape_cast %58 : vector<1x1x8x8x128xbf16> to vector<8x8x128xbf16>
    %60 = vector.shape_cast %59 : vector<8x8x128xbf16> to vector<64x128xbf16>
    %c6 = arith.constant 6 : index
    %c0_51 = arith.constant 0 : index
    %c0_52 = arith.constant 0 : index
    %61 = vector.load %arg3[%c6, %c0_51, %c0_52] : memref<9x128x128xbf16, #tpu.memory_space<vmem>>, vector<1x128x128xbf16>
    %62 = vector.shape_cast %61 : vector<1x128x128xbf16> to vector<128x128xbf16>
    %cst_53 = arith.constant dense<0.000000e+00> : vector<64x128xf32>
    %63 = tpu.matmul %60, %62, %cst_53 {dimension_numbers = #tpu.dot_dimension_numbers<[1], [0], [0], [1], [0, 0, 1, 1], [], []>} : vector<64x128xbf16>, vector<128x128xbf16>, vector<64x128xf32> -> vector<64x128xf32>
    %64 = arith.addf %55, %63 : vector<64x128xf32>
    %c1_i32_54 = arith.constant 1 : i32
    %65 = arith.addi %0, %c1_i32_54 : i32
    %c0_55 = arith.constant 0 : index
    %c1_56 = arith.constant 1 : index
    %66 = arith.index_cast %65 : i32 to index
    %c0_57 = arith.constant 0 : index
    %c0_58 = arith.constant 0 : index
    %67 = vector.load %arg2[%c0_55, %c1_56, %66, %c0_57, %c0_58] : memref<1x4x9x9x128xbf16, #tpu.memory_space<vmem>>, vector<1x1x8x8x128xbf16>
    %68 = vector.shape_cast %67 : vector<1x1x8x8x128xbf16> to vector<8x8x128xbf16>
    %69 = vector.shape_cast %68 : vector<8x8x128xbf16> to vector<64x128xbf16>
    %c7 = arith.constant 7 : index
    %c0_59 = arith.constant 0 : index
    %c0_60 = arith.constant 0 : index
    %70 = vector.load %arg3[%c7, %c0_59, %c0_60] : memref<9x128x128xbf16, #tpu.memory_space<vmem>>, vector<1x128x128xbf16>
    %71 = vector.shape_cast %70 : vector<1x128x128xbf16> to vector<128x128xbf16>
    %cst_61 = arith.constant dense<0.000000e+00> : vector<64x128xf32>
    %72 = tpu.matmul %69, %71, %cst_61 {dimension_numbers = #tpu.dot_dimension_numbers<[1], [0], [0], [1], [0, 0, 1, 1], [], []>} : vector<64x128xbf16>, vector<128x128xbf16>, vector<64x128xf32> -> vector<64x128xf32>
    %73 = arith.addf %64, %72 : vector<64x128xf32>
    %c1_i32_62 = arith.constant 1 : i32
    %74 = arith.addi %0, %c1_i32_62 : i32
    %c0_63 = arith.constant 0 : index
    %c0_64 = arith.constant 0 : index
    %75 = arith.index_cast %74 : i32 to index
    %c1_65 = arith.constant 1 : index
    %c0_66 = arith.constant 0 : index
    %76 = vector.load %arg2[%c0_63, %c0_64, %75, %c1_65, %c0_66] : memref<1x4x9x9x128xbf16, #tpu.memory_space<vmem>>, vector<1x1x8x8x128xbf16>
    %77 = vector.shape_cast %76 : vector<1x1x8x8x128xbf16> to vector<8x8x128xbf16>
    %78 = vector.shape_cast %77 : vector<8x8x128xbf16> to vector<64x128xbf16>
    %c8 = arith.constant 8 : index
    %c0_67 = arith.constant 0 : index
    %c0_68 = arith.constant 0 : index
    %79 = vector.load %arg3[%c8, %c0_67, %c0_68] : memref<9x128x128xbf16, #tpu.memory_space<vmem>>, vector<1x128x128xbf16>
    %80 = vector.shape_cast %79 : vector<1x128x128xbf16> to vector<128x128xbf16>
    %cst_69 = arith.constant dense<0.000000e+00> : vector<64x128xf32>
    %81 = tpu.matmul %78, %80, %cst_69 {dimension_numbers = #tpu.dot_dimension_numbers<[1], [0], [0], [1], [0, 0, 1, 1], [], []>} : vector<64x128xbf16>, vector<128x128xbf16>, vector<64x128xf32> -> vector<64x128xf32>
    %82 = arith.addf %73, %81 : vector<64x128xf32>
    %c0_70 = arith.constant 0 : index
    %c0_71 = arith.constant 0 : index
    %83 = vector.load %arg4[%c0_70, %c0_71] : memref<1x128xf32, #tpu.memory_space<vmem>>, vector<1x128xf32>
    %84 = vector.broadcast %83 : vector<1x128xf32> to vector<64x128xf32>
    %85 = arith.addf %82, %84 : vector<64x128xf32>
    %cst_72 = arith.constant 0.000000e+00 : f32
    %86 = vector.broadcast %cst_72 : f32 to vector<64x128xf32>
    %87 = arith.maximumf %85, %86 : vector<64x128xf32>
    %88 = vector.shape_cast %87 : vector<64x128xf32> to vector<1x8x8x128xf32>
    %89 = arith.truncf %88 : vector<1x8x8x128xf32> to vector<1x8x8x128xbf16>
    %c0_73 = arith.constant 0 : index
    %c0_74 = arith.constant 0 : index
    %c0_75 = arith.constant 0 : index
    %c0_76 = arith.constant 0 : index
    %90 = vector.load %arg5[%c0_73, %c0_74, %c0_75, %c0_76] : memref<1x8x8x128xbf16, #tpu.memory_space<vmem>>, vector<1x8x8x128xbf16>
    tpu.vector_store %arg5[%c0_73, %c0_74, %c0_75, %c0_76], %89 {strides = array<i32>} : memref<1x8x8x128xbf16, #tpu.memory_space<vmem>>, vector<1x8x8x128xbf16>,
    return
  }
  func.func @transform_0(%arg0: i32, %arg1: i32) -> (i32, i32, i32, i32, i32) {
    %c0_i32 = arith.constant 0 : i32
    %c0_i32_0 = arith.constant 0 : i32
    %c0_i32_1 = arith.constant 0 : i32
    %c0_i32_2 = arith.constant 0 : i32
    %c0_i32_3 = arith.constant 0 : i32
    return %arg0, %c0_i32, %c0_i32_0, %c0_i32_1, %c0_i32_2 : i32, i32, i32, i32, i32
  }
  func.func @transform_1(%arg0: i32, %arg1: i32) -> (i32, i32, i32) {
    %c0_i32 = arith.constant 0 : i32
    %c0_i32_0 = arith.constant 0 : i32
    %c0_i32_1 = arith.constant 0 : i32
    %c0_i32_2 = arith.constant 0 : i32
    return %c0_i32, %c0_i32_0, %c0_i32_1 : i32, i32, i32
  }
  func.func @transform_2(%arg0: i32, %arg1: i32) -> (i32, i32) {
    %c0_i32 = arith.constant 0 : i32
    %c0_i32_0 = arith.constant 0 : i32
    %c0_i32_1 = arith.constant 0 : i32
    return %c0_i32, %c0_i32_0 : i32, i32
  }
  func.func @transform_3(%arg0: i32, %arg1: i32) -> (i32, i32, i32, i32) {
    %c0_i32 = arith.constant 0 : i32
    %c0_i32_0 = arith.constant 0 : i32
    %c0_i32_1 = arith.constant 0 : i32
    return %arg0, %arg1, %c0_i32, %c0_i32_0 : i32, i32, i32, i32
  }
}

module attributes {stable_mosaic.version = 11 : i64} {
  func.func @kernel(%arg0: i32, %arg1: i32, %arg2: memref<1x4x5x9x128xbf16, #tpu.memory_space<vmem>>, %arg3: memref<9x128x128xbf16, #tpu.memory_space<vmem>>, %arg4: memref<1x128xf32, #tpu.memory_space<vmem>>, %arg5: memref<1x4x8x128xbf16, #tpu.memory_space<vmem>>) attributes {dimension_semantics = [#tpu.dimension_semantics<parallel>, #tpu.dimension_semantics<parallel>], iteration_bounds = array<i64: 2, 1>, scalar_prefetch = 0 : i64, scratch_operands = 0 : i64, tpu.core_type = #tpu.core_type<tc>, window_params = [{transform_indices = @transform_0, window_bounds = array<i64: 1, 4, 5, 9, 128>}, {pipeline_mode = #tpu.pipeline_mode<synchronous>, transform_indices = @transform_1, window_bounds = array<i64: 9, 128, 128>}, {pipeline_mode = #tpu.pipeline_mode<synchronous>, transform_indices = @transform_2, window_bounds = array<i64: 1, 128>}, {transform_indices = @transform_3, window_bounds = array<i64: 1, 4, 8, 128>}]} {
    %c4_i32 = arith.constant 4 : i32
    %0 = arith.muli %arg1, %c4_i32 : i32
    %cst = arith.constant 0.000000e+00 : f32
    %1 = vector.broadcast %cst : f32 to vector<32x128xf32>
    %c0_i32 = arith.constant 0 : i32
    %2 = arith.addi %0, %c0_i32 : i32
    %c0 = arith.constant 0 : index
    %c0_0 = arith.constant 0 : index
    %3 = arith.index_cast %2 : i32 to index
    %c0_1 = arith.constant 0 : index
    %c0_2 = arith.constant 0 : index
    %4 = vector.load %arg2[%c0, %c0_0, %3, %c0_1, %c0_2] : memref<1x4x5x9x128xbf16, #tpu.memory_space<vmem>>, vector<1x1x4x8x128xbf16>
    %5 = vector.shape_cast %4 : vector<1x1x4x8x128xbf16> to vector<4x8x128xbf16>
    %6 = vector.shape_cast %5 : vector<4x8x128xbf16> to vector<32x128xbf16>
    %c0_3 = arith.constant 0 : index
    %c0_4 = arith.constant 0 : index
    %c0_5 = arith.constant 0 : index
    %7 = vector.load %arg3[%c0_3, %c0_4, %c0_5] : memref<9x128x128xbf16, #tpu.memory_space<vmem>>, vector<1x128x128xbf16>
    %8 = vector.shape_cast %7 : vector<1x128x128xbf16> to vector<128x128xbf16>
    %cst_6 = arith.constant dense<0.000000e+00> : vector<32x128xf32>
    %9 = tpu.matmul %6, %8, %cst_6 {dimension_numbers = #tpu.dot_dimension_numbers<[1], [0], [0], [1], [0, 0, 1, 1], [], []>} : vector<32x128xbf16>, vector<128x128xbf16>, vector<32x128xf32> -> vector<32x128xf32>
    %10 = arith.addf %1, %9 : vector<32x128xf32>
    %c0_i32_7 = arith.constant 0 : i32
    %11 = arith.addi %0, %c0_i32_7 : i32
    %c0_8 = arith.constant 0 : index
    %c1 = arith.constant 1 : index
    %12 = arith.index_cast %11 : i32 to index
    %c0_9 = arith.constant 0 : index
    %c0_10 = arith.constant 0 : index
    %13 = vector.load %arg2[%c0_8, %c1, %12, %c0_9, %c0_10] : memref<1x4x5x9x128xbf16, #tpu.memory_space<vmem>>, vector<1x1x4x8x128xbf16>
    %14 = vector.shape_cast %13 : vector<1x1x4x8x128xbf16> to vector<4x8x128xbf16>
    %15 = vector.shape_cast %14 : vector<4x8x128xbf16> to vector<32x128xbf16>
    %c1_11 = arith.constant 1 : index
    %c0_12 = arith.constant 0 : index
    %c0_13 = arith.constant 0 : index
    %16 = vector.load %arg3[%c1_11, %c0_12, %c0_13] : memref<9x128x128xbf16, #tpu.memory_space<vmem>>, vector<1x128x128xbf16>
    %17 = vector.shape_cast %16 : vector<1x128x128xbf16> to vector<128x128xbf16>
    %cst_14 = arith.constant dense<0.000000e+00> : vector<32x128xf32>
    %18 = tpu.matmul %15, %17, %cst_14 {dimension_numbers = #tpu.dot_dimension_numbers<[1], [0], [0], [1], [0, 0, 1, 1], [], []>} : vector<32x128xbf16>, vector<128x128xbf16>, vector<32x128xf32> -> vector<32x128xf32>
    %19 = arith.addf %10, %18 : vector<32x128xf32>
    %c0_i32_15 = arith.constant 0 : i32
    %20 = arith.addi %0, %c0_i32_15 : i32
    %c0_16 = arith.constant 0 : index
    %c0_17 = arith.constant 0 : index
    %21 = arith.index_cast %20 : i32 to index
    %c1_18 = arith.constant 1 : index
    %c0_19 = arith.constant 0 : index
    %22 = vector.load %arg2[%c0_16, %c0_17, %21, %c1_18, %c0_19] : memref<1x4x5x9x128xbf16, #tpu.memory_space<vmem>>, vector<1x1x4x8x128xbf16>
    %23 = vector.shape_cast %22 : vector<1x1x4x8x128xbf16> to vector<4x8x128xbf16>
    %24 = vector.shape_cast %23 : vector<4x8x128xbf16> to vector<32x128xbf16>
    %c2 = arith.constant 2 : index
    %c0_20 = arith.constant 0 : index
    %c0_21 = arith.constant 0 : index
    %25 = vector.load %arg3[%c2, %c0_20, %c0_21] : memref<9x128x128xbf16, #tpu.memory_space<vmem>>, vector<1x128x128xbf16>
    %26 = vector.shape_cast %25 : vector<1x128x128xbf16> to vector<128x128xbf16>
    %cst_22 = arith.constant dense<0.000000e+00> : vector<32x128xf32>
    %27 = tpu.matmul %24, %26, %cst_22 {dimension_numbers = #tpu.dot_dimension_numbers<[1], [0], [0], [1], [0, 0, 1, 1], [], []>} : vector<32x128xbf16>, vector<128x128xbf16>, vector<32x128xf32> -> vector<32x128xf32>
    %28 = arith.addf %19, %27 : vector<32x128xf32>
    %c0_i32_23 = arith.constant 0 : i32
    %29 = arith.addi %0, %c0_i32_23 : i32
    %c0_24 = arith.constant 0 : index
    %c2_25 = arith.constant 2 : index
    %30 = arith.index_cast %29 : i32 to index
    %c0_26 = arith.constant 0 : index
    %c0_27 = arith.constant 0 : index
    %31 = vector.load %arg2[%c0_24, %c2_25, %30, %c0_26, %c0_27] : memref<1x4x5x9x128xbf16, #tpu.memory_space<vmem>>, vector<1x1x4x8x128xbf16>
    %32 = vector.shape_cast %31 : vector<1x1x4x8x128xbf16> to vector<4x8x128xbf16>
    %33 = vector.shape_cast %32 : vector<4x8x128xbf16> to vector<32x128xbf16>
    %c3 = arith.constant 3 : index
    %c0_28 = arith.constant 0 : index
    %c0_29 = arith.constant 0 : index
    %34 = vector.load %arg3[%c3, %c0_28, %c0_29] : memref<9x128x128xbf16, #tpu.memory_space<vmem>>, vector<1x128x128xbf16>
    %35 = vector.shape_cast %34 : vector<1x128x128xbf16> to vector<128x128xbf16>
    %cst_30 = arith.constant dense<0.000000e+00> : vector<32x128xf32>
    %36 = tpu.matmul %33, %35, %cst_30 {dimension_numbers = #tpu.dot_dimension_numbers<[1], [0], [0], [1], [0, 0, 1, 1], [], []>} : vector<32x128xbf16>, vector<128x128xbf16>, vector<32x128xf32> -> vector<32x128xf32>
    %37 = arith.addf %28, %36 : vector<32x128xf32>
    %c0_i32_31 = arith.constant 0 : i32
    %38 = arith.addi %0, %c0_i32_31 : i32
    %c0_32 = arith.constant 0 : index
    %c3_33 = arith.constant 3 : index
    %39 = arith.index_cast %38 : i32 to index
    %c0_34 = arith.constant 0 : index
    %c0_35 = arith.constant 0 : index
    %40 = vector.load %arg2[%c0_32, %c3_33, %39, %c0_34, %c0_35] : memref<1x4x5x9x128xbf16, #tpu.memory_space<vmem>>, vector<1x1x4x8x128xbf16>
    %41 = vector.shape_cast %40 : vector<1x1x4x8x128xbf16> to vector<4x8x128xbf16>
    %42 = vector.shape_cast %41 : vector<4x8x128xbf16> to vector<32x128xbf16>
    %c4 = arith.constant 4 : index
    %c0_36 = arith.constant 0 : index
    %c0_37 = arith.constant 0 : index
    %43 = vector.load %arg3[%c4, %c0_36, %c0_37] : memref<9x128x128xbf16, #tpu.memory_space<vmem>>, vector<1x128x128xbf16>
    %44 = vector.shape_cast %43 : vector<1x128x128xbf16> to vector<128x128xbf16>
    %cst_38 = arith.constant dense<0.000000e+00> : vector<32x128xf32>
    %45 = tpu.matmul %42, %44, %cst_38 {dimension_numbers = #tpu.dot_dimension_numbers<[1], [0], [0], [1], [0, 0, 1, 1], [], []>} : vector<32x128xbf16>, vector<128x128xbf16>, vector<32x128xf32> -> vector<32x128xf32>
    %46 = arith.addf %37, %45 : vector<32x128xf32>
    %c0_i32_39 = arith.constant 0 : i32
    %47 = arith.addi %0, %c0_i32_39 : i32
    %c0_40 = arith.constant 0 : index
    %c2_41 = arith.constant 2 : index
    %48 = arith.index_cast %47 : i32 to index
    %c1_42 = arith.constant 1 : index
    %c0_43 = arith.constant 0 : index
    %49 = vector.load %arg2[%c0_40, %c2_41, %48, %c1_42, %c0_43] : memref<1x4x5x9x128xbf16, #tpu.memory_space<vmem>>, vector<1x1x4x8x128xbf16>
    %50 = vector.shape_cast %49 : vector<1x1x4x8x128xbf16> to vector<4x8x128xbf16>
    %51 = vector.shape_cast %50 : vector<4x8x128xbf16> to vector<32x128xbf16>
    %c5 = arith.constant 5 : index
    %c0_44 = arith.constant 0 : index
    %c0_45 = arith.constant 0 : index
    %52 = vector.load %arg3[%c5, %c0_44, %c0_45] : memref<9x128x128xbf16, #tpu.memory_space<vmem>>, vector<1x128x128xbf16>
    %53 = vector.shape_cast %52 : vector<1x128x128xbf16> to vector<128x128xbf16>
    %cst_46 = arith.constant dense<0.000000e+00> : vector<32x128xf32>
    %54 = tpu.matmul %51, %53, %cst_46 {dimension_numbers = #tpu.dot_dimension_numbers<[1], [0], [0], [1], [0, 0, 1, 1], [], []>} : vector<32x128xbf16>, vector<128x128xbf16>, vector<32x128xf32> -> vector<32x128xf32>
    %55 = arith.addf %46, %54 : vector<32x128xf32>
    %c1_i32 = arith.constant 1 : i32
    %56 = arith.addi %0, %c1_i32 : i32
    %c0_47 = arith.constant 0 : index
    %c0_48 = arith.constant 0 : index
    %57 = arith.index_cast %56 : i32 to index
    %c0_49 = arith.constant 0 : index
    %c0_50 = arith.constant 0 : index
    %58 = vector.load %arg2[%c0_47, %c0_48, %57, %c0_49, %c0_50] : memref<1x4x5x9x128xbf16, #tpu.memory_space<vmem>>, vector<1x1x4x8x128xbf16>
    %59 = vector.shape_cast %58 : vector<1x1x4x8x128xbf16> to vector<4x8x128xbf16>
    %60 = vector.shape_cast %59 : vector<4x8x128xbf16> to vector<32x128xbf16>
    %c6 = arith.constant 6 : index
    %c0_51 = arith.constant 0 : index
    %c0_52 = arith.constant 0 : index
    %61 = vector.load %arg3[%c6, %c0_51, %c0_52] : memref<9x128x128xbf16, #tpu.memory_space<vmem>>, vector<1x128x128xbf16>
    %62 = vector.shape_cast %61 : vector<1x128x128xbf16> to vector<128x128xbf16>
    %cst_53 = arith.constant dense<0.000000e+00> : vector<32x128xf32>
    %63 = tpu.matmul %60, %62, %cst_53 {dimension_numbers = #tpu.dot_dimension_numbers<[1], [0], [0], [1], [0, 0, 1, 1], [], []>} : vector<32x128xbf16>, vector<128x128xbf16>, vector<32x128xf32> -> vector<32x128xf32>
    %64 = arith.addf %55, %63 : vector<32x128xf32>
    %c1_i32_54 = arith.constant 1 : i32
    %65 = arith.addi %0, %c1_i32_54 : i32
    %c0_55 = arith.constant 0 : index
    %c1_56 = arith.constant 1 : index
    %66 = arith.index_cast %65 : i32 to index
    %c0_57 = arith.constant 0 : index
    %c0_58 = arith.constant 0 : index
    %67 = vector.load %arg2[%c0_55, %c1_56, %66, %c0_57, %c0_58] : memref<1x4x5x9x128xbf16, #tpu.memory_space<vmem>>, vector<1x1x4x8x128xbf16>
    %68 = vector.shape_cast %67 : vector<1x1x4x8x128xbf16> to vector<4x8x128xbf16>
    %69 = vector.shape_cast %68 : vector<4x8x128xbf16> to vector<32x128xbf16>
    %c7 = arith.constant 7 : index
    %c0_59 = arith.constant 0 : index
    %c0_60 = arith.constant 0 : index
    %70 = vector.load %arg3[%c7, %c0_59, %c0_60] : memref<9x128x128xbf16, #tpu.memory_space<vmem>>, vector<1x128x128xbf16>
    %71 = vector.shape_cast %70 : vector<1x128x128xbf16> to vector<128x128xbf16>
    %cst_61 = arith.constant dense<0.000000e+00> : vector<32x128xf32>
    %72 = tpu.matmul %69, %71, %cst_61 {dimension_numbers = #tpu.dot_dimension_numbers<[1], [0], [0], [1], [0, 0, 1, 1], [], []>} : vector<32x128xbf16>, vector<128x128xbf16>, vector<32x128xf32> -> vector<32x128xf32>
    %73 = arith.addf %64, %72 : vector<32x128xf32>
    %c1_i32_62 = arith.constant 1 : i32
    %74 = arith.addi %0, %c1_i32_62 : i32
    %c0_63 = arith.constant 0 : index
    %c0_64 = arith.constant 0 : index
    %75 = arith.index_cast %74 : i32 to index
    %c1_65 = arith.constant 1 : index
    %c0_66 = arith.constant 0 : index
    %76 = vector.load %arg2[%c0_63, %c0_64, %75, %c1_65, %c0_66] : memref<1x4x5x9x128xbf16, #tpu.memory_space<vmem>>, vector<1x1x4x8x128xbf16>
    %77 = vector.shape_cast %76 : vector<1x1x4x8x128xbf16> to vector<4x8x128xbf16>
    %78 = vector.shape_cast %77 : vector<4x8x128xbf16> to vector<32x128xbf16>
    %c8 = arith.constant 8 : index
    %c0_67 = arith.constant 0 : index
    %c0_68 = arith.constant 0 : index
    %79 = vector.load %arg3[%c8, %c0_67, %c0_68] : memref<9x128x128xbf16, #tpu.memory_space<vmem>>, vector<1x128x128xbf16>
    %80 = vector.shape_cast %79 : vector<1x128x128xbf16> to vector<128x128xbf16>
    %cst_69 = arith.constant dense<0.000000e+00> : vector<32x128xf32>
    %81 = tpu.matmul %78, %80, %cst_69 {dimension_numbers = #tpu.dot_dimension_numbers<[1], [0], [0], [1], [0, 0, 1, 1], [], []>} : vector<32x128xbf16>, vector<128x128xbf16>, vector<32x128xf32> -> vector<32x128xf32>
    %82 = arith.addf %73, %81 : vector<32x128xf32>
    %c0_70 = arith.constant 0 : index
    %c0_71 = arith.constant 0 : index
    %83 = vector.load %arg4[%c0_70, %c0_71] : memref<1x128xf32, #tpu.memory_space<vmem>>, vector<1x128xf32>
    %84 = vector.broadcast %83 : vector<1x128xf32> to vector<32x128xf32>
    %85 = arith.addf %82, %84 : vector<32x128xf32>
    %cst_72 = arith.constant 0.000000e+00 : f32
    %86 = vector.broadcast %cst_72 : f32 to vector<32x128xf32>
    %87 = arith.maximumf %85, %86 : vector<32x128xf32>
    %88 = vector.shape_cast %87 : vector<32x128xf32> to vector<1x4x8x128xf32>
    %89 = arith.truncf %88 : vector<1x4x8x128xf32> to vector<1x4x8x128xbf16>
    %c0_73 = arith.constant 0 : index
    %c0_74 = arith.constant 0 : index
    %c0_75 = arith.constant 0 : index
    %c0_76 = arith.constant 0 : index
    %90 = vector.load %arg5[%c0_73, %c0_74, %c0_75, %c0_76] : memref<1x4x8x128xbf16, #tpu.memory_space<vmem>>, vector<1x4x8x128xbf16>
    tpu.vector_store %arg5[%c0_73, %c0_74, %c0_75, %c0_76], %89 {strides = array<i32>} : memref<1x4x8x128xbf16, #tpu.memory_space<vmem>>, vector<1x4x8x128xbf16>,
    return
  }
  func.func @transform_0(%arg0: i32, %arg1: i32) -> (i32, i32, i32, i32, i32) {
    %c0_i32 = arith.constant 0 : i32
    %c0_i32_0 = arith.constant 0 : i32
    %c0_i32_1 = arith.constant 0 : i32
    %c0_i32_2 = arith.constant 0 : i32
    %c0_i32_3 = arith.constant 0 : i32
    return %arg0, %c0_i32, %c0_i32_0, %c0_i32_1, %c0_i32_2 : i32, i32, i32, i32, i32
  }
  func.func @transform_1(%arg0: i32, %arg1: i32) -> (i32, i32, i32) {
    %c0_i32 = arith.constant 0 : i32
    %c0_i32_0 = arith.constant 0 : i32
    %c0_i32_1 = arith.constant 0 : i32
    %c0_i32_2 = arith.constant 0 : i32
    return %c0_i32, %c0_i32_0, %c0_i32_1 : i32, i32, i32
  }
  func.func @transform_2(%arg0: i32, %arg1: i32) -> (i32, i32) {
    %c0_i32 = arith.constant 0 : i32
    %c0_i32_0 = arith.constant 0 : i32
    %c0_i32_1 = arith.constant 0 : i32
    return %c0_i32, %c0_i32_0 : i32, i32
  }
  func.func @transform_3(%arg0: i32, %arg1: i32) -> (i32, i32, i32, i32) {
    %c0_i32 = arith.constant 0 : i32
    %c0_i32_0 = arith.constant 0 : i32
    %c0_i32_1 = arith.constant 0 : i32
    return %arg0, %arg1, %c0_i32, %c0_i32_0 : i32, i32, i32, i32
  }
}

module attributes {stable_mosaic.version = 11 : i64} {
  func.func @_resize_kernel(%arg0: i32, %arg1: memref<1x4x8x128xf32, #tpu.memory_space<vmem>>, %arg2: memref<16x4xf32, #tpu.memory_space<vmem>>, %arg3: memref<16x8xf32, #tpu.memory_space<vmem>>, %arg4: memref<1x16x16x128xf32, #tpu.memory_space<vmem>>) attributes {dimension_semantics = [#tpu.dimension_semantics<parallel>], iteration_bounds = array<i64: 2>, scalar_prefetch = 0 : i64, scratch_operands = 0 : i64, tpu.core_type = #tpu.core_type<tc>, window_params = [{transform_indices = @transform_0, window_bounds = array<i64: 1, 4, 8, 128>}, {pipeline_mode = #tpu.pipeline_mode<synchronous>, transform_indices = @transform_1, window_bounds = array<i64: 16, 4>}, {pipeline_mode = #tpu.pipeline_mode<synchronous>, transform_indices = @transform_2, window_bounds = array<i64: 16, 8>}, {transform_indices = @transform_3, window_bounds = array<i64: 1, 16, 16, 128>}]} {
    %c0 = arith.constant 0 : index
    %c0_0 = arith.constant 0 : index
    %c0_1 = arith.constant 0 : index
    %c0_2 = arith.constant 0 : index
    %0 = vector.load %arg1[%c0, %c0_0, %c0_1, %c0_2] : memref<1x4x8x128xf32, #tpu.memory_space<vmem>>, vector<1x4x8x128xf32>
    %1 = vector.shape_cast %0 : vector<1x4x8x128xf32> to vector<4x8x128xf32>
    %c0_3 = arith.constant 0 : index
    %c0_4 = arith.constant 0 : index
    %2 = vector.load %arg3[%c0_3, %c0_4] : memref<16x8xf32, #tpu.memory_space<vmem>>, vector<16x8xf32>
    %3 = vector.shape_cast %2 : vector<16x8xf32> to vector<1x16x8xf32>
    %4 = vector.shape_cast %3 : vector<1x16x8xf32> to vector<1x16x8xf32>
    %5 = vector.broadcast %4 : vector<1x16x8xf32> to vector<4x16x8xf32>
    "tpu.trace_start"() <{level = 10 : i32, message = "rwv,rvc->rwc"}> : () -> ()
    %cst = arith.constant dense<0.000000e+00> : vector<4x16x128xf32>
    %6 = tpu.matmul %5, %1, %cst {dimension_numbers = #tpu.dot_dimension_numbers<[2], [1], [1], [2], [0, 0, 0, 1, 1, 2], [0], [0]>} : vector<4x16x8xf32>, vector<4x8x128xf32>, vector<4x16x128xf32> -> vector<4x16x128xf32>
    "tpu.trace_stop"() : () -> ()
    %c0_5 = arith.constant 0 : index
    %c0_6 = arith.constant 0 : index
    %7 = vector.load %arg2[%c0_5, %c0_6] : memref<16x4xf32, #tpu.memory_space<vmem>>, vector<16x4xf32>
    %8 = vector.shape_cast %6 : vector<4x16x128xf32> to vector<4x2048xf32>
    %cst_7 = arith.constant dense<0.000000e+00> : vector<16x2048xf32>
    %9 = tpu.matmul %7, %8, %cst_7 {dimension_numbers = #tpu.dot_dimension_numbers<[1], [0], [0], [1], [0, 0, 1, 1], [], []>} : vector<16x4xf32>, vector<4x2048xf32>, vector<16x2048xf32> -> vector<16x2048xf32>
    %10 = vector.shape_cast %9 : vector<16x2048xf32> to vector<1x16x16x128xf32>
    %c0_8 = arith.constant 0 : index
    %c0_9 = arith.constant 0 : index
    %c0_10 = arith.constant 0 : index
    %c0_11 = arith.constant 0 : index
    %11 = vector.load %arg4[%c0_8, %c0_9, %c0_10, %c0_11] : memref<1x16x16x128xf32, #tpu.memory_space<vmem>>, vector<1x16x16x128xf32>
    tpu.vector_store %arg4[%c0_8, %c0_9, %c0_10, %c0_11], %10 {strides = array<i32>} : memref<1x16x16x128xf32, #tpu.memory_space<vmem>>, vector<1x16x16x128xf32>,
    return
  }
  func.func @transform_0(%arg0: i32) -> (i32, i32, i32, i32) {
    %c0_i32 = arith.constant 0 : i32
    %c0_i32_0 = arith.constant 0 : i32
    %c0_i32_1 = arith.constant 0 : i32
    %c0_i32_2 = arith.constant 0 : i32
    return %arg0, %c0_i32, %c0_i32_0, %c0_i32_1 : i32, i32, i32, i32
  }
  func.func @transform_1(%arg0: i32) -> (i32, i32) {
    %c0_i32 = arith.constant 0 : i32
    %c0_i32_0 = arith.constant 0 : i32
    %c0_i32_1 = arith.constant 0 : i32
    return %c0_i32, %c0_i32_0 : i32, i32
  }
  func.func @transform_2(%arg0: i32) -> (i32, i32) {
    %c0_i32 = arith.constant 0 : i32
    %c0_i32_0 = arith.constant 0 : i32
    %c0_i32_1 = arith.constant 0 : i32
    return %c0_i32, %c0_i32_0 : i32, i32
  }
  func.func @transform_3(%arg0: i32) -> (i32, i32, i32, i32) {
    %c0_i32 = arith.constant 0 : i32
    %c0_i32_0 = arith.constant 0 : i32
    %c0_i32_1 = arith.constant 0 : i32
    %c0_i32_2 = arith.constant 0 : i32
    return %arg0, %c0_i32, %c0_i32_0, %c0_i32_1 : i32, i32, i32, i32
  }
}

module attributes {stable_mosaic.version = 11 : i64} {
  func.func @kernel(%arg0: i32, %arg1: i32, %arg2: memref<1x1x6x10x128xbf16, #tpu.memory_space<vmem>>, %arg3: memref<9x128x128xbf16, #tpu.memory_space<vmem>>, %arg4: memref<1x128xf32, #tpu.memory_space<vmem>>, %arg5: memref<128x128xbf16, #tpu.memory_space<vmem>>, %arg6: memref<1x128xf32, #tpu.memory_space<vmem>>, %arg7: memref<1x4x8x128xf32, #tpu.memory_space<vmem>>) attributes {dimension_semantics = [#tpu.dimension_semantics<parallel>, #tpu.dimension_semantics<parallel>], iteration_bounds = array<i64: 2, 1>, scalar_prefetch = 0 : i64, scratch_operands = 0 : i64, tpu.core_type = #tpu.core_type<tc>, window_params = [{transform_indices = @transform_0, window_bounds = array<i64: 1, 1, 6, 10, 128>}, {pipeline_mode = #tpu.pipeline_mode<synchronous>, transform_indices = @transform_1, window_bounds = array<i64: 9, 128, 128>}, {pipeline_mode = #tpu.pipeline_mode<synchronous>, transform_indices = @transform_2, window_bounds = array<i64: 1, 128>}, {pipeline_mode = #tpu.pipeline_mode<synchronous>, transform_indices = @transform_3, window_bounds = array<i64: 128, 128>}, {pipeline_mode = #tpu.pipeline_mode<synchronous>, transform_indices = @transform_4, window_bounds = array<i64: 1, 128>}, {transform_indices = @transform_5, window_bounds = array<i64: 1, 4, 8, 128>}]} {
    %c4_i32 = arith.constant 4 : i32
    %0 = arith.muli %arg1, %c4_i32 : i32
    %cst = arith.constant 0.000000e+00 : f32
    %1 = vector.broadcast %cst : f32 to vector<32x128xf32>
    %c0_i32 = arith.constant 0 : i32
    %2 = arith.addi %0, %c0_i32 : i32
    %c0 = arith.constant 0 : index
    %c0_0 = arith.constant 0 : index
    %3 = arith.index_cast %2 : i32 to index
    %c0_1 = arith.constant 0 : index
    %c0_2 = arith.constant 0 : index
    %4 = vector.load %arg2[%c0, %c0_0, %3, %c0_1, %c0_2] : memref<1x1x6x10x128xbf16, #tpu.memory_space<vmem>>, vector<1x1x4x8x128xbf16>
    %5 = vector.shape_cast %4 : vector<1x1x4x8x128xbf16> to vector<4x8x128xbf16>
    %6 = vector.shape_cast %5 : vector<4x8x128xbf16> to vector<32x128xbf16>
    %c0_3 = arith.constant 0 : index
    %c0_4 = arith.constant 0 : index
    %c0_5 = arith.constant 0 : index
    %7 = vector.load %arg3[%c0_3, %c0_4, %c0_5] : memref<9x128x128xbf16, #tpu.memory_space<vmem>>, vector<1x128x128xbf16>
    %8 = vector.shape_cast %7 : vector<1x128x128xbf16> to vector<128x128xbf16>
    %cst_6 = arith.constant dense<0.000000e+00> : vector<32x128xf32>
    %9 = tpu.matmul %6, %8, %cst_6 {dimension_numbers = #tpu.dot_dimension_numbers<[1], [0], [0], [1], [0, 0, 1, 1], [], []>} : vector<32x128xbf16>, vector<128x128xbf16>, vector<32x128xf32> -> vector<32x128xf32>
    %10 = arith.addf %1, %9 : vector<32x128xf32>
    %c0_i32_7 = arith.constant 0 : i32
    %11 = arith.addi %0, %c0_i32_7 : i32
    %c0_8 = arith.constant 0 : index
    %c0_9 = arith.constant 0 : index
    %12 = arith.index_cast %11 : i32 to index
    %c1 = arith.constant 1 : index
    %c0_10 = arith.constant 0 : index
    %13 = vector.load %arg2[%c0_8, %c0_9, %12, %c1, %c0_10] : memref<1x1x6x10x128xbf16, #tpu.memory_space<vmem>>, vector<1x1x4x8x128xbf16>
    %14 = vector.shape_cast %13 : vector<1x1x4x8x128xbf16> to vector<4x8x128xbf16>
    %15 = vector.shape_cast %14 : vector<4x8x128xbf16> to vector<32x128xbf16>
    %c1_11 = arith.constant 1 : index
    %c0_12 = arith.constant 0 : index
    %c0_13 = arith.constant 0 : index
    %16 = vector.load %arg3[%c1_11, %c0_12, %c0_13] : memref<9x128x128xbf16, #tpu.memory_space<vmem>>, vector<1x128x128xbf16>
    %17 = vector.shape_cast %16 : vector<1x128x128xbf16> to vector<128x128xbf16>
    %cst_14 = arith.constant dense<0.000000e+00> : vector<32x128xf32>
    %18 = tpu.matmul %15, %17, %cst_14 {dimension_numbers = #tpu.dot_dimension_numbers<[1], [0], [0], [1], [0, 0, 1, 1], [], []>} : vector<32x128xbf16>, vector<128x128xbf16>, vector<32x128xf32> -> vector<32x128xf32>
    %19 = arith.addf %10, %18 : vector<32x128xf32>
    %c0_i32_15 = arith.constant 0 : i32
    %20 = arith.addi %0, %c0_i32_15 : i32
    %c0_16 = arith.constant 0 : index
    %c0_17 = arith.constant 0 : index
    %21 = arith.index_cast %20 : i32 to index
    %c2 = arith.constant 2 : index
    %c0_18 = arith.constant 0 : index
    %22 = vector.load %arg2[%c0_16, %c0_17, %21, %c2, %c0_18] : memref<1x1x6x10x128xbf16, #tpu.memory_space<vmem>>, vector<1x1x4x8x128xbf16>
    %23 = vector.shape_cast %22 : vector<1x1x4x8x128xbf16> to vector<4x8x128xbf16>
    %24 = vector.shape_cast %23 : vector<4x8x128xbf16> to vector<32x128xbf16>
    %c2_19 = arith.constant 2 : index
    %c0_20 = arith.constant 0 : index
    %c0_21 = arith.constant 0 : index
    %25 = vector.load %arg3[%c2_19, %c0_20, %c0_21] : memref<9x128x128xbf16, #tpu.memory_space<vmem>>, vector<1x128x128xbf16>
    %26 = vector.shape_cast %25 : vector<1x128x128xbf16> to vector<128x128xbf16>
    %cst_22 = arith.constant dense<0.000000e+00> : vector<32x128xf32>
    %27 = tpu.matmul %24, %26, %cst_22 {dimension_numbers = #tpu.dot_dimension_numbers<[1], [0], [0], [1], [0, 0, 1, 1], [], []>} : vector<32x128xbf16>, vector<128x128xbf16>, vector<32x128xf32> -> vector<32x128xf32>
    %28 = arith.addf %19, %27 : vector<32x128xf32>
    %c1_i32 = arith.constant 1 : i32
    %29 = arith.addi %0, %c1_i32 : i32
    %c0_23 = arith.constant 0 : index
    %c0_24 = arith.constant 0 : index
    %30 = arith.index_cast %29 : i32 to index
    %c0_25 = arith.constant 0 : index
    %c0_26 = arith.constant 0 : index
    %31 = vector.load %arg2[%c0_23, %c0_24, %30, %c0_25, %c0_26] : memref<1x1x6x10x128xbf16, #tpu.memory_space<vmem>>, vector<1x1x4x8x128xbf16>
    %32 = vector.shape_cast %31 : vector<1x1x4x8x128xbf16> to vector<4x8x128xbf16>
    %33 = vector.shape_cast %32 : vector<4x8x128xbf16> to vector<32x128xbf16>
    %c3 = arith.constant 3 : index
    %c0_27 = arith.constant 0 : index
    %c0_28 = arith.constant 0 : index
    %34 = vector.load %arg3[%c3, %c0_27, %c0_28] : memref<9x128x128xbf16, #tpu.memory_space<vmem>>, vector<1x128x128xbf16>
    %35 = vector.shape_cast %34 : vector<1x128x128xbf16> to vector<128x128xbf16>
    %cst_29 = arith.constant dense<0.000000e+00> : vector<32x128xf32>
    %36 = tpu.matmul %33, %35, %cst_29 {dimension_numbers = #tpu.dot_dimension_numbers<[1], [0], [0], [1], [0, 0, 1, 1], [], []>} : vector<32x128xbf16>, vector<128x128xbf16>, vector<32x128xf32> -> vector<32x128xf32>
    %37 = arith.addf %28, %36 : vector<32x128xf32>
    %c1_i32_30 = arith.constant 1 : i32
    %38 = arith.addi %0, %c1_i32_30 : i32
    %c0_31 = arith.constant 0 : index
    %c0_32 = arith.constant 0 : index
    %39 = arith.index_cast %38 : i32 to index
    %c1_33 = arith.constant 1 : index
    %c0_34 = arith.constant 0 : index
    %40 = vector.load %arg2[%c0_31, %c0_32, %39, %c1_33, %c0_34] : memref<1x1x6x10x128xbf16, #tpu.memory_space<vmem>>, vector<1x1x4x8x128xbf16>
    %41 = vector.shape_cast %40 : vector<1x1x4x8x128xbf16> to vector<4x8x128xbf16>
    %42 = vector.shape_cast %41 : vector<4x8x128xbf16> to vector<32x128xbf16>
    %c4 = arith.constant 4 : index
    %c0_35 = arith.constant 0 : index
    %c0_36 = arith.constant 0 : index
    %43 = vector.load %arg3[%c4, %c0_35, %c0_36] : memref<9x128x128xbf16, #tpu.memory_space<vmem>>, vector<1x128x128xbf16>
    %44 = vector.shape_cast %43 : vector<1x128x128xbf16> to vector<128x128xbf16>
    %cst_37 = arith.constant dense<0.000000e+00> : vector<32x128xf32>
    %45 = tpu.matmul %42, %44, %cst_37 {dimension_numbers = #tpu.dot_dimension_numbers<[1], [0], [0], [1], [0, 0, 1, 1], [], []>} : vector<32x128xbf16>, vector<128x128xbf16>, vector<32x128xf32> -> vector<32x128xf32>
    %46 = arith.addf %37, %45 : vector<32x128xf32>
    %c1_i32_38 = arith.constant 1 : i32
    %47 = arith.addi %0, %c1_i32_38 : i32
    %c0_39 = arith.constant 0 : index
    %c0_40 = arith.constant 0 : index
    %48 = arith.index_cast %47 : i32 to index
    %c2_41 = arith.constant 2 : index
    %c0_42 = arith.constant 0 : index
    %49 = vector.load %arg2[%c0_39, %c0_40, %48, %c2_41, %c0_42] : memref<1x1x6x10x128xbf16, #tpu.memory_space<vmem>>, vector<1x1x4x8x128xbf16>
    %50 = vector.shape_cast %49 : vector<1x1x4x8x128xbf16> to vector<4x8x128xbf16>
    %51 = vector.shape_cast %50 : vector<4x8x128xbf16> to vector<32x128xbf16>
    %c5 = arith.constant 5 : index
    %c0_43 = arith.constant 0 : index
    %c0_44 = arith.constant 0 : index
    %52 = vector.load %arg3[%c5, %c0_43, %c0_44] : memref<9x128x128xbf16, #tpu.memory_space<vmem>>, vector<1x128x128xbf16>
    %53 = vector.shape_cast %52 : vector<1x128x128xbf16> to vector<128x128xbf16>
    %cst_45 = arith.constant dense<0.000000e+00> : vector<32x128xf32>
    %54 = tpu.matmul %51, %53, %cst_45 {dimension_numbers = #tpu.dot_dimension_numbers<[1], [0], [0], [1], [0, 0, 1, 1], [], []>} : vector<32x128xbf16>, vector<128x128xbf16>, vector<32x128xf32> -> vector<32x128xf32>
    %55 = arith.addf %46, %54 : vector<32x128xf32>
    %c2_i32 = arith.constant 2 : i32
    %56 = arith.addi %0, %c2_i32 : i32
    %c0_46 = arith.constant 0 : index
    %c0_47 = arith.constant 0 : index
    %57 = arith.index_cast %56 : i32 to index
    %c0_48 = arith.constant 0 : index
    %c0_49 = arith.constant 0 : index
    %58 = vector.load %arg2[%c0_46, %c0_47, %57, %c0_48, %c0_49] : memref<1x1x6x10x128xbf16, #tpu.memory_space<vmem>>, vector<1x1x4x8x128xbf16>
    %59 = vector.shape_cast %58 : vector<1x1x4x8x128xbf16> to vector<4x8x128xbf16>
    %60 = vector.shape_cast %59 : vector<4x8x128xbf16> to vector<32x128xbf16>
    %c6 = arith.constant 6 : index
    %c0_50 = arith.constant 0 : index
    %c0_51 = arith.constant 0 : index
    %61 = vector.load %arg3[%c6, %c0_50, %c0_51] : memref<9x128x128xbf16, #tpu.memory_space<vmem>>, vector<1x128x128xbf16>
    %62 = vector.shape_cast %61 : vector<1x128x128xbf16> to vector<128x128xbf16>
    %cst_52 = arith.constant dense<0.000000e+00> : vector<32x128xf32>
    %63 = tpu.matmul %60, %62, %cst_52 {dimension_numbers = #tpu.dot_dimension_numbers<[1], [0], [0], [1], [0, 0, 1, 1], [], []>} : vector<32x128xbf16>, vector<128x128xbf16>, vector<32x128xf32> -> vector<32x128xf32>
    %64 = arith.addf %55, %63 : vector<32x128xf32>
    %c2_i32_53 = arith.constant 2 : i32
    %65 = arith.addi %0, %c2_i32_53 : i32
    %c0_54 = arith.constant 0 : index
    %c0_55 = arith.constant 0 : index
    %66 = arith.index_cast %65 : i32 to index
    %c1_56 = arith.constant 1 : index
    %c0_57 = arith.constant 0 : index
    %67 = vector.load %arg2[%c0_54, %c0_55, %66, %c1_56, %c0_57] : memref<1x1x6x10x128xbf16, #tpu.memory_space<vmem>>, vector<1x1x4x8x128xbf16>
    %68 = vector.shape_cast %67 : vector<1x1x4x8x128xbf16> to vector<4x8x128xbf16>
    %69 = vector.shape_cast %68 : vector<4x8x128xbf16> to vector<32x128xbf16>
    %c7 = arith.constant 7 : index
    %c0_58 = arith.constant 0 : index
    %c0_59 = arith.constant 0 : index
    %70 = vector.load %arg3[%c7, %c0_58, %c0_59] : memref<9x128x128xbf16, #tpu.memory_space<vmem>>, vector<1x128x128xbf16>
    %71 = vector.shape_cast %70 : vector<1x128x128xbf16> to vector<128x128xbf16>
    %cst_60 = arith.constant dense<0.000000e+00> : vector<32x128xf32>
    %72 = tpu.matmul %69, %71, %cst_60 {dimension_numbers = #tpu.dot_dimension_numbers<[1], [0], [0], [1], [0, 0, 1, 1], [], []>} : vector<32x128xbf16>, vector<128x128xbf16>, vector<32x128xf32> -> vector<32x128xf32>
    %73 = arith.addf %64, %72 : vector<32x128xf32>
    %c2_i32_61 = arith.constant 2 : i32
    %74 = arith.addi %0, %c2_i32_61 : i32
    %c0_62 = arith.constant 0 : index
    %c0_63 = arith.constant 0 : index
    %75 = arith.index_cast %74 : i32 to index
    %c2_64 = arith.constant 2 : index
    %c0_65 = arith.constant 0 : index
    %76 = vector.load %arg2[%c0_62, %c0_63, %75, %c2_64, %c0_65] : memref<1x1x6x10x128xbf16, #tpu.memory_space<vmem>>, vector<1x1x4x8x128xbf16>
    %77 = vector.shape_cast %76 : vector<1x1x4x8x128xbf16> to vector<4x8x128xbf16>
    %78 = vector.shape_cast %77 : vector<4x8x128xbf16> to vector<32x128xbf16>
    %c8 = arith.constant 8 : index
    %c0_66 = arith.constant 0 : index
    %c0_67 = arith.constant 0 : index
    %79 = vector.load %arg3[%c8, %c0_66, %c0_67] : memref<9x128x128xbf16, #tpu.memory_space<vmem>>, vector<1x128x128xbf16>
    %80 = vector.shape_cast %79 : vector<1x128x128xbf16> to vector<128x128xbf16>
    %cst_68 = arith.constant dense<0.000000e+00> : vector<32x128xf32>
    %81 = tpu.matmul %78, %80, %cst_68 {dimension_numbers = #tpu.dot_dimension_numbers<[1], [0], [0], [1], [0, 0, 1, 1], [], []>} : vector<32x128xbf16>, vector<128x128xbf16>, vector<32x128xf32> -> vector<32x128xf32>
    %82 = arith.addf %73, %81 : vector<32x128xf32>
    %c0_69 = arith.constant 0 : index
    %c0_70 = arith.constant 0 : index
    %83 = vector.load %arg4[%c0_69, %c0_70] : memref<1x128xf32, #tpu.memory_space<vmem>>, vector<1x128xf32>
    %84 = vector.broadcast %83 : vector<1x128xf32> to vector<32x128xf32>
    %85 = arith.addf %82, %84 : vector<32x128xf32>
    %cst_71 = arith.constant 0.000000e+00 : f32
    %86 = vector.broadcast %cst_71 : f32 to vector<32x128xf32>
    %87 = arith.maximumf %85, %86 : vector<32x128xf32>
    %88 = arith.truncf %87 : vector<32x128xf32> to vector<32x128xbf16>
    %c0_72 = arith.constant 0 : index
    %c0_73 = arith.constant 0 : index
    %89 = vector.load %arg5[%c0_72, %c0_73] : memref<128x128xbf16, #tpu.memory_space<vmem>>, vector<128x128xbf16>
    %cst_74 = arith.constant dense<0.000000e+00> : vector<32x128xf32>
    %90 = tpu.matmul %88, %89, %cst_74 {dimension_numbers = #tpu.dot_dimension_numbers<[1], [0], [0], [1], [0, 0, 1, 1], [], []>} : vector<32x128xbf16>, vector<128x128xbf16>, vector<32x128xf32> -> vector<32x128xf32>
    %c0_75 = arith.constant 0 : index
    %c0_76 = arith.constant 0 : index
    %91 = vector.load %arg6[%c0_75, %c0_76] : memref<1x128xf32, #tpu.memory_space<vmem>>, vector<1x128xf32>
    %92 = vector.broadcast %91 : vector<1x128xf32> to vector<32x128xf32>
    %93 = arith.addf %90, %92 : vector<32x128xf32>
    %94 = vector.shape_cast %93 : vector<32x128xf32> to vector<1x4x8x128xf32>
    %c0_77 = arith.constant 0 : index
    %c0_78 = arith.constant 0 : index
    %c0_79 = arith.constant 0 : index
    %c0_80 = arith.constant 0 : index
    %95 = vector.load %arg7[%c0_77, %c0_78, %c0_79, %c0_80] : memref<1x4x8x128xf32, #tpu.memory_space<vmem>>, vector<1x4x8x128xf32>
    tpu.vector_store %arg7[%c0_77, %c0_78, %c0_79, %c0_80], %94 {strides = array<i32>} : memref<1x4x8x128xf32, #tpu.memory_space<vmem>>, vector<1x4x8x128xf32>,
    return
  }
  func.func @transform_0(%arg0: i32, %arg1: i32) -> (i32, i32, i32, i32, i32) {
    %c0_i32 = arith.constant 0 : i32
    %c0_i32_0 = arith.constant 0 : i32
    %c0_i32_1 = arith.constant 0 : i32
    %c0_i32_2 = arith.constant 0 : i32
    %c0_i32_3 = arith.constant 0 : i32
    return %arg0, %c0_i32, %c0_i32_0, %c0_i32_1, %c0_i32_2 : i32, i32, i32, i32, i32
  }
  func.func @transform_1(%arg0: i32, %arg1: i32) -> (i32, i32, i32) {
    %c0_i32 = arith.constant 0 : i32
    %c0_i32_0 = arith.constant 0 : i32
    %c0_i32_1 = arith.constant 0 : i32
    %c0_i32_2 = arith.constant 0 : i32
    return %c0_i32, %c0_i32_0, %c0_i32_1 : i32, i32, i32
  }
  func.func @transform_2(%arg0: i32, %arg1: i32) -> (i32, i32) {
    %c0_i32 = arith.constant 0 : i32
    %c0_i32_0 = arith.constant 0 : i32
    %c0_i32_1 = arith.constant 0 : i32
    return %c0_i32, %c0_i32_0 : i32, i32
  }
  func.func @transform_3(%arg0: i32, %arg1: i32) -> (i32, i32) {
    %c0_i32 = arith.constant 0 : i32
    %c0_i32_0 = arith.constant 0 : i32
    %c0_i32_1 = arith.constant 0 : i32
    return %c0_i32, %c0_i32_0 : i32, i32
  }
  func.func @transform_4(%arg0: i32, %arg1: i32) -> (i32, i32) {
    %c0_i32 = arith.constant 0 : i32
    %c0_i32_0 = arith.constant 0 : i32
    %c0_i32_1 = arith.constant 0 : i32
    return %c0_i32, %c0_i32_0 : i32, i32
  }
  func.func @transform_5(%arg0: i32, %arg1: i32) -> (i32, i32, i32, i32) {
    %c0_i32 = arith.constant 0 : i32
    %c0_i32_0 = arith.constant 0 : i32
    %c0_i32_1 = arith.constant 0 : i32
    return %arg0, %arg1, %c0_i32, %c0_i32_0 : i32, i32, i32, i32
  }
}

</mosaic_0001>

<bundles_post_ra>
// kernel: custom_deeplabv3_forward.5
= control target key start
LH: loop header
LB: loop body
LE: loop exit
PB: predicated region body
PF: predicated region fallthrough
CT: control target
= control target key end

     0   :  { %s2442_s12 = smov 0   ;;  %s2444_s13 = smov 0   ;;  %s2766_s0 = inlined_call_operand.vmem [shape: bf16[2,4,5,9,128], index: 0, kind: input, shape index: {}]   ;;  %s2767_s1 = inlined_call_operand.vmem [shape: bf16[9,128,128], index: 1, kind: input, shape index: {}]   ;;  %s2768_s2 = inlined_call_operand.vmem [shape: f32[1,128], index: 2, kind: input, shape index: {}]   ;;  %s2769_s3 = inlined_call_operand.vmem [shape: bf16[2,4,8,128], index: 3, kind: output, shape index: {}]  }
   0x1   :  { %s2446_s14 = smov 0  }
   0x2 LB: > { %s25_s15 = sadd.s32 1, %s2416_s13  ;;  %p1714_p0 = scmp.ge.s32.totalorder %s2420_s14, 1  ;;  %s2420_s14 = sphi %s2446_s14, %s13_s14   ;;  %s2416_s13 = sphi %s2444_s13, %s2773_s13   ;;  %s2412_s12 = sphi %s2442_s12, %s2772_s12  }
   0x3   : > { %p27_p1 = scmp.ge.s32.totalorder %s25_s15, 2  ;;  %p151_p2 = scmp.lt.s32.totalorder %s2420_s14, 3 }
   0x5   : > { %s2775_s15 = smov (%p27_p1, %s25_s15), 0  ;;  %p152_p3 = pnand %p1714_p0, %p151_p2 }
   0x6   : > { %v2314_v0 = vld [vmem:[%s2767_s1 + $0x40] sm:$0xff] (!%p152_p3)   ;;  %p179_p4 = scmp.lt.s32.totalorder (!%p152_p3), %s2412_s12, 1  ;;  %v2316_v2 = vld [vmem:[%s2767_s1 + $0x48] sm:$0xff] (!%p152_p3)   ;;  %v2318_v4 = vld [vmem:[%s2767_s1 + $0x50] sm:$0xff] (!%p152_p3)   ;;  %vm469_vm0 = vsmask.f32 (!%p152_p3), 3328 }
   0x7   : > { %155 = sbr.rel (%p152_p3) target bundleno = 392 (0x188), region = 32  ;;  %v2315_v1 = vld [vmem:[%s2767_s1 + $0x100] sm:$0xff] (!%p152_p3)   ;;  %2077 = vmatprep.subr.bf16.mxu1 (!%p152_p3), %v2314_v0  ;;  %v2317_v3 = vld [vmem:[%s2767_s1 + $0x108] sm:$0xff] (!%p152_p3)   ;;  %v2319_v5 = vld [vmem:[%s2767_s1 + $0x110] sm:$0xff] (!%p152_p3)   ;;  %vm470_vm1 = vsmask.f32 (!%p152_p3), 7440 }
   0x8   : > { %2157 = vmatprep.subr.bf16.mxu0 (!%p152_p3), %v2315_v1  ;;  %2078 = vmatpush3.bf16.msra.mxu1 (!%p152_p3), %v2314_v0  ;;  %v2320_v6 = vld [vmem:[%s2767_s1 + $0x58] sm:$0xff] (!%p152_p3)   ;;  %v2322_v8 = vld [vmem:[%s2767_s1 + $0x60] sm:$0xff] (!%p152_p3)   ;;  %v2324_v10 = vld [vmem:[%s2767_s1 + $0x68] sm:$0xff] (!%p152_p3)  }
   0x9   : > { %2158 = vmatpush3.bf16.msra.mxu0 (!%p152_p3), %v2315_v1  ;;  %2079 = vmatprep.subr.bf16.mxu1 (!%p152_p3), %v2316_v2  ;;  %v2321_v7 = vld [vmem:[%s2767_s1 + $0x118] sm:$0xff] (!%p152_p3)   ;;  %v2323_v9 = vld [vmem:[%s2767_s1 + $0x120] sm:$0xff] (!%p152_p3)   ;;  %v2325_v12 = vld [vmem:[%s2767_s1 + $0x128] sm:$0xff] (!%p152_p3)  }
   0xa   : > { %2159 = vmatprep.subr.bf16.mxu0 (!%p152_p3), %v2317_v3  ;;  %v2326_v14 = vld [vmem:[%s2767_s1 + $0x70] sm:$0xff] (!%p152_p3)   ;;  %v2328_v16 = vld [vmem:[%s2767_s1 + $0x78] sm:$0xff] (!%p152_p3)   ;;  %v2331_v18 = vld [vmem:[%s2767_s1] sm:$0xff] (!%p152_p3)  }
   0xb   : > { %v2327_v15 = vld [vmem:[%s2767_s1 + $0x130] sm:$0xff] (!%p152_p3)   ;;  %v2329_v17 = vld [vmem:[%s2767_s1 + $0x138] sm:$0xff] (!%p152_p3)   ;;  %v2333_v19 = vld [vmem:[%s2767_s1 + $0x140] sm:$0xff] (!%p152_p3)  }
   0xc   : > { %2080 = vmatpush3.bf16.msra.mxu1 (!%p152_p3), %v2316_v2  ;;  %v2336_v22 = vld [vmem:[%s2767_s1 + $0x8] sm:$0xff] (!%p152_p3)   ;;  %v2338_v24 = vld [vmem:[%s2767_s1 + $0x10] sm:$0xff] (!%p152_p3)   ;;  %v2340_v32 = vld [vmem:[%s2767_s1 + $0x18] sm:$0xff] (!%p152_p3)  }
   0xd   : > { %2160 = vmatpush3.bf16.msra.mxu0 (!%p152_p3), %v2317_v3  ;;  %2081 = vmatprep.subr.bf16.mxu1 (!%p152_p3), %v2318_v4  ;;  %v2337_v23 = vld [vmem:[%s2767_s1 + $0x148] sm:$0xff] (!%p152_p3)   ;;  %v2339_v26 = vld [vmem:[%s2767_s1 + $0x150] sm:$0xff] (!%p152_p3)   ;;  %v2341_v37 = vld [vmem:[%s2767_s1 + $0x158] sm:$0xff] (!%p152_p3)  }
   0xe   : > { %s2777_s12 = smov (!%p179_p4, %s2412_s12), 1  ;;  %2161 = vmatprep.subr.bf16.mxu0 %v2319_v5  ;;  %v2342_v41 = vld [vmem:[%s2767_s1 + $0x20] sm:$0xff]   ;;  %vm2557_vm2 = vmor %vm469_vm0, %vm470_vm1  ;;  %v2344_v59 = vld [vmem:[%s2767_s1 + $0x28] sm:$0xff]  }
   0xf   : > { %s2289_s5 = smul.u32 160, %s2777_s12  ;;  %v2343_v44 = vld [vmem:[%s2767_s1 + $0x160] sm:$0xff]   ;;  %v2345_v63 = vld [vmem:[%s2767_s1 + $0x168] sm:$0xff]  }
  0x10   : > { %2082 = vmatpush3.bf16.msra.mxu1 %v2318_v4 }
  0x11   : > { %2162 = vmatpush3.bf16.msra.mxu0 %v2319_v5  ;;  %2083 = vmatprep.subr.bf16.mxu1 %v2320_v6  ;;  %s2496_s16 = scalar_lea.vmem %s2766_s0, %s2289_s5  ;;  %s1975_s5 = sshll.u32 %s2777_s12, 4 }
  0x12   : > { %2163 = vmatprep.subr.bf16.mxu0 %v2321_v7  ;;  %v2330_v11 = vld [vmem:[%s2496_s16 + $0x28] ss:$8 sps:$4 sm:$0xff]   ;;  %v2332_v13 = vld [vmem:[%s2496_s16 + $0x78] ss:$8 sps:$4 sm:$0xff]   ;;  %v1845_v28 = vld [vmem:[%s2496_s16 + $0x54] sm:$0x1]  ;;  %s192_s8 = scalar_lea.vmem %s2769_s3, %s1975_s5 }
  0x13   : > { %2093 = vmatprep.mubr.bf16.mxu1 %v2330_v11  ;;  %2173 = vmatprep.mubr.bf16.mxu0 %v2332_v13  ;;  %v2334_v20 = vld [vmem:[%s2496_s16 + $0x38] ss:$8 sps:$4 sm:$0xff]   ;;  %v2335_v21 = vld [vmem:[%s2496_s16 + $0x88] ss:$8 sps:$4 sm:$0xff]   ;;  %v1847_v33 = vld [vmem:[%s2496_s16 + $0x5c] sm:$0x1] }
  0x14   : > { %2084 = vmatpush3.bf16.msra.mxu1 %v2320_v6  ;;  %v2350_v25 = vld [vmem:[%s2496_s16] ss:$8 sps:$4 sm:$0xff]   ;;  %v1844_v27 = vld [vmem:[%s2496_s16 + $0x50] sm:$0xf]  ;;  %v1846_v29 = vld [vmem:[%s2496_s16 + $0x58] sm:$0xf] }
  0x15   : > { %2164 = vmatpush3.bf16.msra.mxu0 %v2321_v7  ;;  %2085 = vmatprep.subr.bf16.mxu1 %v2322_v8  ;;  %v937_v30 = vshrl.u32 %v1844_v27, 16  ;;  %v940_v31 = vshll.u32 %v1844_v27, 16  ;;  %v946_v34 = vshll.u32 %v1845_v28, 16  ;;  %v951_v35 = vshrl.u32 %v1846_v29, 16  ;;  %v1848_v50 = vld [vmem:[%s2496_s16 + $0x60] sm:$0xf] }
  0x16   : > { %2165 = vmatprep.subr.bf16.mxu0 %v2323_v9  ;;  %v954_v36 = vshll.u32 %v1846_v29, 16  ;;  %v960_v40 = vshll.u32 %v1847_v33, 16  ;;  %v1849_v51 = vld [vmem:[%s2496_s16 + $0x64] sm:$0x1]  ;;  %v1850_v53 = vld [vmem:[%s2496_s16 + $0x68] sm:$0xf] }
  0x17   : > { %v939_v38 = vrot.slane %v937_v30, 4  ;;  %v942_v39 = vrot.slane %v940_v31, 5  ;;  %v953_v42 = vrot.slane %v951_v35, 4  ;;  %v948_v46 = vrot.slane %v946_v34, 5  ;;  %v1851_v54 = vld [vmem:[%s2496_s16 + $0x6c] sm:$0x1] }
  0x18   : > { %2086 = vmatpush3.bf16.msra.mxu1 %v2322_v8  ;;  %v956_v43 = vrot.slane %v954_v36, 5  ;;  %v962_v49 = vrot.slane %v960_v40, 5  ;;  %v965_v55 = vshrl.u32 %v1848_v50, 16  ;;  %v968_v57 = vshll.u32 %v1848_v50, 16  ;;  %v2346_v7 = vld [vmem:[%s2767_s1 + $0x30] sm:$0xff]   ;;  %v2348_v11 = vld [vmem:[%s2767_s1 + $0x38] sm:$0xff]  }
  0x19   : > { %2166 = vmatpush3.bf16.msra.mxu0 %v2323_v9  ;;  %2087 = vmatprep.subr.bf16.mxu1 %v2324_v10  ;;  %v943_v45 = vor.u32 %v942_v39, %v939_v38  ;;  %v979_v58 = vshrl.u32 %v1850_v53, 16  ;;  %v974_v61 = vshll.u32 %v1849_v51, 16  ;;  %v982_v62 = vshll.u32 %v1850_v53, 16  ;;  %v2354_v33 = vld [vmem:[%s2767_s1 + $0x88] sm:$0xff]   ;;  %v467_v53 = vld [vmem:[%s2496_s16 + $0x18] sm:$0xf] }
  0x1a   : > { %2167 = vmatprep.subr.bf16.mxu0 %v2325_v12  ;;  %v957_v48 = vor.u32 %v956_v43, %v953_v42  ;;  %v967_v1 = vrot.slane %v965_v55, 4  ;;  %v970_v2 = vrot.slane %v968_v57, 5  ;;  %v988_v6 = vshll.u32 %v1851_v54, 16  ;;  %v2369_v39 = vld [vmem:[%s2496_s16 + $0x8] ss:$8 sps:$4 sm:$0xff]   ;;  %v2359_v55 = vld [vmem:[%s2767_s1 + $0x198] sm:$0xff]  }
  0x1b   : > { %v944_v52 = vrot.slane %v943_v45, 4  ;;  %v981_v3 = vrot.slane %v979_v58, 4  ;;  %v984_v5 = vrot.slane %v982_v62, 5  ;;  %v466_v62 = vld [vmem:[%s2496_s16 + $0x14] sm:$0x1] }
  0x1c   : > { %2088 = vmatpush3.bf16.msra.mxu1 %v2324_v10  ;;  %v958_v56 = vrot.slane %v957_v48, 4  ;;  %v971_v8 = vor.u32 %v970_v2, %v967_v1  ;;  %v2347_v10 = vld [vmem:[%s2767_s1 + $0x170] sm:$0xff]   ;;  %v990_v13 = vrot.slane %v988_v6, 5  ;;  %v510_v6 = vshll.u32 %v466_v62, 16 }
  0x1d   : > { %2168 = vmatpush3.bf16.msra.mxu0 %v2325_v12  ;;  %2089 = vmatprep.subr.bf16.mxu1 %v2326_v14  ;;  %v949_v60 = vsel %vm2557_vm2, %v944_v52, %v948_v46  ;;  %v985_v9 = vor.u32 %v984_v5, %v981_v3  ;;  %v976_v12 = vrot.slane %v974_v61, 5  ;;  %v2357_v46 = vld [vmem:[%s2767_s1 + $0x190] sm:$0xff]   ;;  %v2361_v61 = vld [vmem:[%s2767_s1 + $0x1a0] sm:$0xff]   ;;  %v2363_v5 = vld [vmem:[%s2767_s1 + $0x1a8] sm:$0xff]  }
  0x1e   : > { %2169 = vmatprep.subr.bf16.mxu0 %v2327_v15  ;;  %v963_v0 = vsel %vm2557_vm2, %v958_v56, %v962_v49  ;;  %v2358_v49 = vld [vmem:[%s2767_s1 + $0x98] sm:$0xff]   ;;  %v465_v52 = vld [vmem:[%s2496_s16 + $0x10] sm:$0xf]  ;;  %v2360_v56 = vld [vmem:[%s2767_s1 + $0xa0] sm:$0xff]  }
  0x1f   : > { %v1868_v4 = vcombine.low %v949_v60, %v963_v0  ;;  %v501_v57 = vshrl.u32 %v465_v52, 16  ;;  %v504_v58 = vshll.u32 %v465_v52, 16  ;;  %v518_v60 = vshll.u32 %v467_v53, 16 }
  0x20   : > { %2090 = vmatpush3.bf16.msra.mxu1 %v2326_v14  ;;  %v972_v14 = vrot.slane %v971_v8, 4 }
  0x21   : > { %2170 = vmatpush3.bf16.msra.mxu0 %v2327_v15  ;;  %2091 = vmatprep.subr.bf16.mxu1 %v2328_v16  ;;  %v986_v15 = vrot.slane %v985_v9, 4  ;;  %v503_v0 = vrot.slane %v501_v57, 4  ;;  %v506_v1 = vrot.slane %v504_v58, 5  ;;  %v520_v3 = vrot.slane %v518_v60, 5 }
  0x22   : > { %2171 = vmatprep.subr.bf16.mxu0 %v2329_v17 }
  0x23   : > { %v507_v8 = vor.u32 %v506_v1, %v503_v0  ;;  %v2387_v0 = vld [vmem:[%s2496_s16 + $0x60] ss:$8 sps:$4 sm:$0xff]  }
  0x24   : > { %2092 = vmatpush3.bf16.msra.mxu1 %v2328_v16  ;;  %v2349_v16 = vld [vmem:[%s2767_s1 + $0x178] sm:$0xff]   ;;  %v2390_v1 = vld [vmem:[%s2496_s16 + $0x40] ss:$8 sps:$4 sm:$0xff]  }
  0x25   : > { %2172 = vmatpush3.bf16.msra.mxu0 %v2329_v17  ;;  %2097 = vmatprep.subr.bf16.mxu1 %v2331_v18  ;;  %v2351_v17 = vld [vmem:[%s2767_s1 + $0x80] sm:$0xff]  }
  0x26   : > { %2177 = vmatprep.subr.bf16.mxu0 %v2333_v19 }
  0x27   : > { %2094 = vmatmul.mubr.bf16.vlgmr.msra.gmra.mrb[0].mxu1 %v2334_v20  ;;  %v977_v20 = vsel %vm2557_vm2, %v972_v14, %v976_v12  ;;  %v512_v12 = vrot.slane %v510_v6, 5  ;;  %v508_v14 = vrot.slane %v507_v8, 4  ;;  %v1942_v6 = vld [vmem:[%s2496_s16 + $0x18] sm:$0xf] }
  0x28   : > { %2098 = vmatpush3.bf16.msra.mxu1 %v2331_v18  ;;  %2174 = vmatmul.mubr.bf16.vlgmr.msra.gmra.mrb[0].mxu0 %v2335_v21  ;;  %v2352_v18 = vld [vmem:[%s2767_s1 + $0x180] sm:$0xff]   ;;  %v991_v21 = vsel %vm2557_vm2, %v986_v15, %v990_v13  ;;  %v1430_v8 = vshrl.u32 %v1942_v6, 16 }
  0x29   : > { %2178 = vmatpush3.bf16.msra.mxu0 %v2333_v19  ;;  %2099 = vmatprep.subr.bf16.mxu1 %v2336_v22  ;;  %v2353_v19 = vld [vmem:[%s2496_s16 + $0x10] ss:$8 sps:$4 sm:$0xff]   ;;  %v1869_v30 = vcombine.low %v977_v20, %v991_v21  ;;  %v2368_v20 = vld [vmem:[%s2767_s1 + $0xc0] sm:$0xff]  }
  0x2a   : > { %2179 = vmatprep.subr.bf16.mxu0 %v2337_v23  ;;  %2113 = vmatprep.mubr.bf16.mxu1 %v2350_v25  ;;  %v464_v25 = vld [vmem:[%s2496_s16 + $0xc] sm:$0x1]  ;;  %v2370_v21 = vld [vmem:[%s2767_s1 + $0x1c0] sm:$0xff]  }
  0x2b   : > { %2193 = vmatprep.mubr.bf16.mxu0 %v1868_v4  ;;  %v2362_v4 = vld [vmem:[%s2767_s1 + $0xa8] sm:$0xff]  }
  0x2c   : > { %2100 = vmatpush3.bf16.msra.mxu1 %v2336_v22  ;;  %v461_v22 = vld [vmem:[%s2496_s16] sm:$0xf] }
  0x2d   : > { %2180 = vmatpush3.bf16.msra.mxu0 %v2337_v23  ;;  %2101 = vmatprep.subr.bf16.mxu1 %v2338_v24  ;;  %v462_v23 = vld [vmem:[%s2496_s16 + $0x4] sm:$0x1]  ;;  %v476_v27 = vshll.u32 %v461_v22, 16 }
  0x2e   : > { %2181 = vmatprep.subr.bf16.mxu0 %v2339_v26  ;;  %v482_v28 = vshll.u32 %v462_v23, 16  ;;  %v2371_v23 = vld [vmem:[%s2496_s16 + $0x18] ss:$8 sps:$4 sm:$0xff]  }
  0x2f   : > { %v478_v35 = vrot.slane %v476_v27, 5  ;;  %v2388_v27 = vld [vmem:[%s2496_s16 + $0x30] ss:$8 sps:$4 sm:$0xff]  }
  0x30   : > { %2102 = vmatpush3.bf16.msra.mxu1 %v2338_v24  ;;  %v463_v24 = vld [vmem:[%s2496_s16 + $0x8] sm:$0xf] }
  0x31   : > { %2182 = vmatpush3.bf16.msra.mxu0 %v2339_v26  ;;  %2103 = vmatprep.subr.bf16.mxu1 %v2340_v32  ;;  %v473_v26 = vshrl.u32 %v461_v22, 16  ;;  %v487_v29 = vshrl.u32 %v463_v24, 16  ;;  %v490_v31 = vshll.u32 %v463_v24, 16  ;;  %v2372_v24 = vld [vmem:[%s2767_s1 + $0xc8] sm:$0xff]  }
  0x32   : > { %2183 = vmatprep.subr.bf16.mxu0 %v2341_v37 }
  0x33   : > { %v475_v34 = vrot.slane %v473_v26, 4  ;;  %v489_v36 = vrot.slane %v487_v29, 4  ;;  %v492_v38 = vrot.slane %v490_v31, 5  ;;  %v2386_v26 = vld [vmem:[%s2496_s16 + $0x50] ss:$8 sps:$4 sm:$0xff]  }
  0x34   : > { %2104 = vmatpush3.bf16.msra.mxu1 %v2340_v32  ;;  %v496_v32 = vshll.u32 %v464_v25, 16  ;;  %v2373_v25 = vld [vmem:[%s2767_s1 + $0x1c8] sm:$0xff]   ;;  %v2375_v29 = vld [vmem:[%s2767_s1 + $0x1d0] sm:$0xff]   ;;  %v2377_v31 = vld [vmem:[%s2767_s1 + $0x1d8] sm:$0xff]  }
  0x35   : > { %2184 = vmatpush3.bf16.msra.mxu0 %v2341_v37  ;;  %2105 = vmatprep.subr.bf16.mxu1 %v2342_v41  ;;  %v2355_v37 = vld [vmem:[%s2767_s1 + $0x188] sm:$0xff]   ;;  %v479_v40 = vor.u32 %v478_v35, %v475_v34  ;;  %v493_v42 = vor.u32 %v492_v38, %v489_v36  ;;  %v2378_v34 = vld [vmem:[%s2767_s1 + $0xe0] sm:$0xff]  }
  0x36   : > { %2185 = vmatprep.subr.bf16.mxu0 %v2343_v44  ;;  %v498_v43 = vrot.slane %v496_v32, 5  ;;  %v1938_v32 = vld [vmem:[%s2496_s16 + $0x8] sm:$0xf]  ;;  %v2379_v35 = vld [vmem:[%s2767_s1 + $0x1e0] sm:$0xff]  }
  0x37   : > { %v480_v45 = vrot.slane %v479_v40, 4  ;;  %v494_v48 = vrot.slane %v493_v42, 4  ;;  %v1402_v36 = vshrl.u32 %v1938_v32, 16  ;;  %v2380_v40 = vld [vmem:[%s2767_s1 + $0xe8] sm:$0xff]  }
  0x38   : > { %2106 = vmatpush3.bf16.msra.mxu1 %v2342_v41  ;;  %v484_v41 = vrot.slane %v482_v28, 5  ;;  %v2374_v28 = vld [vmem:[%s2767_s1 + $0xd0] sm:$0xff]  }
  0x39   : > { %2186 = vmatpush3.bf16.msra.mxu0 %v2343_v44  ;;  %2107 = vmatprep.subr.bf16.mxu1 %v2344_v59  ;;  %v2356_v44 = vld [vmem:[%s2767_s1 + $0x90] sm:$0xff]   ;;  %v499_v51 = vsel %vm2557_vm2, %v494_v48, %v498_v43  ;;  %v1404_v42 = vrot.slane %v1402_v36, 4 }
  0x3a   : > { %2187 = vmatprep.subr.bf16.mxu0 %v2345_v63  ;;  %v485_v50 = vsel %vm2557_vm2, %v480_v45, %v484_v41  ;;  %v2381_v41 = vld [vmem:[%s2767_s1 + $0x1e8] sm:$0xff]   ;;  %v1941_v48 = vld [vmem:[%s2496_s16 + $0x14] sm:$0x1] }
  0x3b   : > { %v1774_v54 = vcombine.low %v485_v50, %v499_v51  ;;  %v2383_v50 = vld [vmem:[%s2767_s1 + $0x1f0] sm:$0xff]  }
  0x3c   : > { %2108 = vmatpush3.bf16.msra.mxu1 %v2344_v59  ;;  %v515_v59 = vshrl.u32 %v467_v53, 16 }
  0x3d   : > { %2188 = vmatpush3.bf16.msra.mxu0 %v2345_v63  ;;  %2109 = vmatprep.subr.bf16.mxu1 %v2346_v7  ;;  %v468_v63 = vld [vmem:[%s2496_s16 + $0x1c] sm:$0x1] }
  0x3e   : > { %2189 = vmatprep.subr.bf16.mxu0 %v2347_v10  ;;  %v517_v2 = vrot.slane %v515_v59, 4 }
  0x40   : > { %2110 = vmatpush3.bf16.msra.mxu1 %v2346_v7  ;;  %v524_v7 = vshll.u32 %v468_v63, 16  ;;  %v521_v9 = vor.u32 %v520_v3, %v517_v2  ;;  %v2391_v3 = vld [vmem:[%s2767_s1 + $0x208] sm:$0xff]  }
  0x41   : > { %2190 = vmatpush3.bf16.msra.mxu0 %v2347_v10  ;;  %2111 = vmatprep.subr.bf16.mxu1 %v2348_v11  ;;  %v2364_v10 = vld [vmem:[%s2767_s1 + $0xb0] sm:$0xff]  }
  0x42   : > { %2191 = vmatprep.subr.bf16.mxu0 %v2349_v16  ;;  %v526_v13 = vrot.slane %v524_v7, 5  ;;  %v522_v15 = vrot.slane %v521_v9, 4  ;;  %v1944_v7 = vld [vmem:[%s2496_s16 + $0x20] sm:$0xf]  ;;  %v1433_v9 = vshll.u32 %v1942_v6, 16 }
  0x44   : > { %2112 = vmatpush3.bf16.msra.mxu1 %v2348_v11  ;;  %v2365_v11 = vld [vmem:[%s2767_s1 + $0x1b0] sm:$0xff]  }
  0x45   : > { %2192 = vmatpush3.bf16.msra.mxu0 %v2349_v16  ;;  %2117 = vmatprep.subr.bf16.mxu1 %v2351_v17  ;;  %v2366_v16 = vld [vmem:[%s2767_s1 + $0xb8] sm:$0xff]  }
  0x46   : > { %2197 = vmatprep.subr.bf16.mxu0 %v2352_v18 }
  0x47   : > { %2114 = vmatmul.mubr.bf16.vlgmr.msra.gmra.mrb[0].mxu1 %v2353_v19  ;;  %v527_v19 = vsel %vm2557_vm2, %v522_v15, %v526_v13  ;;  %v1432_v13 = vrot.slane %v1430_v8, 4 }
  0x48   : > { %2118 = vmatpush3.bf16.msra.mxu1 %v2351_v17  ;;  %2194 = vmatmul.mubr.bf16.vlgmr.msra.gmra.mrb[0].mxu0 %v1869_v30  ;;  %v2367_v17 = vld [vmem:[%s2767_s1 + $0x1b8] sm:$0xff]  }
  0x49   : > { %2198 = vmatpush3.bf16.msra.mxu0 %v2352_v18  ;;  %2119 = vmatprep.subr.bf16.mxu1 %v2354_v33  ;;  %v513_v18 = vsel %vm2557_vm2, %v508_v14, %v512_v12  ;;  %v2376_v30 = vld [vmem:[%s2767_s1 + $0xd8] sm:$0xff]   ;;  %v2394_v12 = vld [vmem:[%s2767_s1 + $0x220] sm:$0xff]   ;;  %v1435_v14 = vrot.slane %v1433_v9, 5 }
  0x4a   : > { %2199 = vmatprep.subr.bf16.mxu0 %v2355_v37  ;;  %2213 = vmatprep.mubr.bf16.mxu0 %v2369_v39  ;;  %v1775_v22 = vcombine.low %v513_v18, %v527_v19  ;;  %v1943_v18 = vld [vmem:[%s2496_s16 + $0x1c] sm:$0x1]  ;;  %v1945_v19 = vld [vmem:[%s2496_s16 + $0x24] sm:$0x1] }
  0x4b   : > { %2133 = vmatprep.mubr.bf16.mxu1 %v1774_v54  ;;  %v1425_v54 = vshll.u32 %v1941_v48, 16 }
  0x4c   : > { %2120 = vmatpush3.bf16.msra.mxu1 %v2354_v33  ;;  %v1940_v33 = vld [vmem:[%s2496_s16 + $0x10] sm:$0xf] }
  0x4d   : > { %2200 = vmatpush3.bf16.msra.mxu0 %v2355_v37  ;;  %2121 = vmatprep.subr.bf16.mxu1 %v2356_v44  ;;  %v1405_v37 = vshll.u32 %v1938_v32, 16  ;;  %v1416_v38 = vshrl.u32 %v1940_v33, 16  ;;  %v1419_v39 = vshll.u32 %v1940_v33, 16  ;;  %v1427_v60 = vrot.slane %v1425_v54, 5 }
  0x4e   : > { %2201 = vmatprep.subr.bf16.mxu0 %v2357_v46 }
  0x4f   : > { %v1407_v43 = vrot.slane %v1405_v37, 5  ;;  %v1421_v45 = vrot.slane %v1419_v39, 5 }
  0x50   : > { %2122 = vmatpush3.bf16.msra.mxu1 %v2356_v44  ;;  %v1418_v44 = vrot.slane %v1416_v38, 4  ;;  %v1972_v38 = vld [vmem:[%s2768_s2] ss:$0 sm:$0xff] }
  0x51   : > { %2202 = vmatpush3.bf16.msra.mxu0 %v2357_v46  ;;  %2123 = vmatprep.subr.bf16.mxu1 %v2358_v49  ;;  %v1939_v46 = vld [vmem:[%s2496_s16 + $0xc] sm:$0x1]  ;;  %v1408_v51 = vor.u32 %v1407_v43, %v1404_v42 }
  0x52   : > { %2203 = vmatprep.subr.bf16.mxu0 %v2359_v55  ;;  %v1411_v52 = vshll.u32 %v1939_v46, 16  ;;  %v1422_v53 = vor.u32 %v1421_v45, %v1418_v44 }
  0x53   : > { %v1409_v57 = vrot.slane %v1408_v51, 4 }
  0x54   : > { %2124 = vmatpush3.bf16.msra.mxu1 %v2358_v49  ;;  %v2382_v49 = vld [vmem:[%s2767_s1 + $0xf0] sm:$0xff]   ;;  %v1413_v58 = vrot.slane %v1411_v52, 5  ;;  %v1423_v59 = vrot.slane %v1422_v53, 4 }
  0x55   : > { %2204 = vmatpush3.bf16.msra.mxu0 %v2359_v55  ;;  %2125 = vmatprep.subr.bf16.mxu1 %v2360_v56  ;;  %v2384_v55 = vld [vmem:[%s2767_s1 + $0xf8] sm:$0xff]  }
  0x56   : > { %2205 = vmatprep.subr.bf16.mxu0 %v2361_v61  ;;  %v1414_v62 = vsel %vm2557_vm2, %v1409_v57, %v1413_v58  ;;  %v1428_v63 = vsel %vm2557_vm2, %v1423_v59, %v1427_v60 }
  0x57   : > { %v1962_v2 = vcombine.low %v1414_v62, %v1428_v63 }
  0x58   : > { %2126 = vmatpush3.bf16.msra.mxu1 %v2360_v56  ;;  %v2385_v56 = vld [vmem:[%s2767_s1 + $0x1f8] sm:$0xff]  }
  0x59   : > { %2206 = vmatpush3.bf16.msra.mxu0 %v2361_v61  ;;  %2127 = vmatprep.subr.bf16.mxu1 %v2362_v4  ;;  %v2389_v61 = vld [vmem:[%s2767_s1 + $0x200] sm:$0xff]  }
  0x5a   : > { %2207 = vmatprep.subr.bf16.mxu0 %v2363_v5 }
  0x5c   : > { %2128 = vmatpush3.bf16.msra.mxu1 %v2362_v4  ;;  %v2392_v4 = vld [vmem:[%s2767_s1 + $0x210] sm:$0xff]  }
  0x5d   : > { %2208 = vmatpush3.bf16.msra.mxu0 %v2363_v5  ;;  %2129 = vmatprep.subr.bf16.mxu1 %v2364_v10  ;;  %v2393_v5 = vld [vmem:[%s2767_s1 + $0x218] sm:$0xff]  }
  0x5e   : > { %2209 = vmatprep.subr.bf16.mxu0 %v2365_v11 }
  0x60   : > { %2130 = vmatpush3.bf16.msra.mxu1 %v2364_v10  ;;  %v1444_v10 = vshrl.u32 %v1944_v7, 16 }
  0x61   : > { %2210 = vmatpush3.bf16.msra.mxu0 %v2365_v11  ;;  %2131 = vmatprep.subr.bf16.mxu1 %v2366_v16  ;;  %v1447_v11 = vshll.u32 %v1944_v7, 16 }
  0x62   : > { %2211 = vmatprep.subr.bf16.mxu0 %v2367_v17  ;;  %v1446_v15 = vrot.slane %v1444_v10, 4 }
  0x64   : > { %2132 = vmatpush3.bf16.msra.mxu1 %v2366_v16  ;;  %v1449_v16 = vrot.slane %v1447_v11, 5 }
  0x65   : > { %2212 = vmatpush3.bf16.msra.mxu0 %v2367_v17  ;;  %2137 = vmatprep.subr.bf16.mxu1 %v2368_v20  ;;  %v2395_v17 = vld [vmem:[%s2767_s1 + $0x228] sm:$0xff]  }
  0x66   : > { %2217 = vmatprep.subr.bf16.mxu0 %v2370_v21 }
  0x67   : > { %2134 = vmatmul.mubr.bf16.vlgmr.msra.gmra.mrb[0].mxu1 %v1775_v22  ;;  %v1450_v22 = vor.u32 %v1449_v16, %v1446_v15 }
  0x68   : > { %2138 = vmatpush3.bf16.msra.mxu1 %v2368_v20  ;;  %2214 = vmatmul.mubr.bf16.vlgmr.msra.gmra.mrb[0].mxu0 %v2371_v23  ;;  %v1436_v20 = vor.u32 %v1435_v14, %v1432_v13  ;;  %v1453_v23 = vshll.u32 %v1945_v19, 16 }
  0x69   : > { %2218 = vmatpush3.bf16.msra.mxu0 %v2370_v21  ;;  %2139 = vmatprep.subr.bf16.mxu1 %v2372_v24  ;;  %v1439_v21 = vshll.u32 %v1943_v18, 16 }
  0x6a   : > { %2219 = vmatprep.subr.bf16.mxu0 %v2373_v25  ;;  %2153 = vmatprep.mubr.bf16.mxu1 %v2386_v26 }
  0x6b   : > { %2233 = vmatprep.mubr.bf16.mxu0 %v2388_v27  ;;  %v1441_v26 = vrot.slane %v1439_v21, 5  ;;  %v1451_v27 = vrot.slane %v1450_v22, 4 }
  0x6c   : > { %2140 = vmatpush3.bf16.msra.mxu1 %v2372_v24  ;;  %v2396_v24 = vld [vmem:[%s2767_s1 + $0x230] sm:$0xff]  }
  0x6d   : > { %2220 = vmatpush3.bf16.msra.mxu0 %v2373_v25  ;;  %2141 = vmatprep.subr.bf16.mxu1 %v2374_v28  ;;  %v1437_v25 = vrot.slane %v1436_v20, 4 }
  0x6e   : > { %2221 = vmatprep.subr.bf16.mxu0 %v2375_v29 }
  0x70   : > { %2142 = vmatpush3.bf16.msra.mxu1 %v2374_v28  ;;  %v1455_v28 = vrot.slane %v1453_v23, 5 }
  0x71   : > { %2222 = vmatpush3.bf16.msra.mxu0 %v2375_v29  ;;  %2143 = vmatprep.subr.bf16.mxu1 %v2376_v30  ;;  %v2397_v29 = vld [vmem:[%s2767_s1 + $0x238] sm:$0xff]  }
  0x72   : > { %2223 = vmatprep.subr.bf16.mxu0 %v2377_v31 }
  0x74   : > { %2144 = vmatpush3.bf16.msra.mxu1 %v2376_v30  ;;  %v1442_v30 = vsel %vm2557_vm2, %v1437_v25, %v1441_v26 }
  0x75   : > { %2224 = vmatpush3.bf16.msra.mxu0 %v2377_v31  ;;  %2145 = vmatprep.subr.bf16.mxu1 %v2378_v34  ;;  %v1456_v31 = vsel %vm2557_vm2, %v1451_v27, %v1455_v28 }
  0x76   : > { %2225 = vmatprep.subr.bf16.mxu0 %v2379_v35  ;;  %v1963_v32 = vcombine.low %v1442_v30, %v1456_v31 }
  0x78   : > { %2146 = vmatpush3.bf16.msra.mxu1 %v2378_v34 }
  0x79   : > { %2226 = vmatpush3.bf16.msra.mxu0 %v2379_v35  ;;  %2147 = vmatprep.subr.bf16.mxu1 %v2380_v40 }
  0x7a   : > { %2227 = vmatprep.subr.bf16.mxu0 %v2381_v41 }
  0x7c   : > { %2148 = vmatpush3.bf16.msra.mxu1 %v2380_v40 }
  0x7d   : > { %2228 = vmatpush3.bf16.msra.mxu0 %v2381_v41  ;;  %2149 = vmatprep.subr.bf16.mxu1 %v2382_v49 }
  0x7e   : > { %2229 = vmatprep.subr.bf16.mxu0 %v2383_v50 }
  0x80   : > { %2150 = vmatpush3.bf16.msra.mxu1 %v2382_v49 }
  0x81   : > { %2230 = vmatpush3.bf16.msra.mxu0 %v2383_v50  ;;  %2151 = vmatprep.subr.bf16.mxu1 %v2384_v55 }
  0x82   : > { %2231 = vmatprep.subr.bf16.mxu0 %v2385_v56 }
  0x84   : > { %2152 = vmatpush3.bf16.msra.mxu1 %v2384_v55 }
  0x85   : > { %2232 = vmatpush3.bf16.msra.mxu0 %v2385_v56 }
  0x86   : > { %2237 = vmatprep.subr.bf16.mxu0 %v2389_v61 }
  0x87   : > { %2154 = vmatmul.mubr.bf16.vlgmr.msra.gmra.mrb[0].mxu1 %v2387_v0 }
  0x88   : > { %2234 = vmatmul.mubr.bf16.vlgmr.msra.gmra.mrb[0].mxu0 %v2390_v1 }
  0x89   : > { %2238 = vmatpush3.bf16.msra.mxu0 %v2389_v61  ;;  %2253 = vmatprep.mubr.bf16.mxu0 %v1962_v2 }
  0x8a   : > { %2239 = vmatprep.subr.bf16.mxu0 %v2391_v3 }
  0x8d   : > { %2240 = vmatpush3.bf16.msra.mxu0 %v2391_v3 }
  0x8e   : > { %2241 = vmatprep.subr.bf16.mxu0 %v2392_v4 }
  0x91   : > { %2242 = vmatpush3.bf16.msra.mxu0 %v2392_v4 }
  0x92   : > { %2243 = vmatprep.subr.bf16.mxu0 %v2393_v5 }
  0x95   : > { %2244 = vmatpush3.bf16.msra.mxu0 %v2393_v5 }
  0x96   : > { %2245 = vmatprep.subr.bf16.mxu0 %v2394_v12 }
  0x99   : > { %2246 = vmatpush3.bf16.msra.mxu0 %v2394_v12 }
  0x9a   : > { %2247 = vmatprep.subr.bf16.mxu0 %v2395_v17 }
  0x9d   : > { %2248 = vmatpush3.bf16.msra.mxu0 %v2395_v17 }
  0x9e   : > { %2249 = vmatprep.subr.bf16.mxu0 %v2396_v24 }
  0xa1   : > { %2250 = vmatpush3.bf16.msra.mxu0 %v2396_v24 }
  0xa2   : > { %2251 = vmatprep.subr.bf16.mxu0 %v2397_v29 }
  0xa5   : > { %2252 = vmatpush3.bf16.msra.mxu0 %v2397_v29 }
  0xa8   : > { %2254 = vmatmul.mubr.bf16.vlgmr.msra.gmra.mrb[0].mxu0 %v1963_v32 }
 0x15a   : > { %v2155_v33 = vpop.f32.mrb[0].mxu1 }
 0x15b   : > { %v772_v34 = vpop.f32.mrb[1].mxu1 }
 0x15c   : > { %v2156_v35 = vpop.f32.mrb[2].mxu1 }
 0x15d   : > { %v775_v36 = vpop.f32.mrb[3].mxu1 }
 0x17b   : > { %v2255_v37 = vpop.f32.mrb[0].mxu0 }
 0x17c   : > { %v2257_v39 = vadd.f32 %v2255_v37, %v2155_v33  ;;  %v1564_v40 = vpop.f32.mrb[1].mxu0 }
 0x17d   : > { %v2258_v41 = vadd.f32 %v1564_v40, %v772_v34  ;;  %v2256_v42 = vpop.f32.mrb[2].mxu0 }
 0x17e   : > { %v1592_v47 = vadd.f32 %v2257_v39, %v1972_v38  ;;  %v2259_v43 = vadd.f32 %v2256_v42, %v2156_v35  ;;  %v1567_v44 = vpop.f32.mrb[3].mxu0 }
 0x17f   : > { %v1590_v45 = vadd.f32 %v2258_v41, %v1972_v38  ;;  %v2260_v46 = vadd.f32 %v1567_v44, %v775_v36 }
 0x180   : > { %v1593_v48 = vadd.f32 %v2259_v43, %v1972_v38  ;;  %v1596_v50 = vmax.f32 %v1592_v47, 0.0 }
 0x181   : > { %v1591_v49 = vadd.f32 %v2260_v46, %v1972_v38  ;;  %v1594_v52 = vmax.f32 %v1590_v45, 0.0 }
 0x182   : > { %v1597_v51 = vmax.f32 %v1593_v48, 0.0 }
 0x183   : > { %v1595_v53 = vmax.f32 %v1591_v49, 0.0 }
 0x184   : > { %v1984_v54 = vpack.c.bf16 %v1597_v51, %v1596_v50 }
 0x185   : > { %v1979_v55 = vpack.c.bf16 %v1595_v53, %v1594_v52 }
 0x186   : > { %1986 = vst [vmem:[%s192_s8 + $0x8] sm:$0xff] %v1984_v54  }
 0x187   : > { %1980 = vst [vmem:[%s192_s8] sm:$0xff] %v1979_v55  }
 0x188 PF: > { %s13_s14 = sadd.s32 1, %s2420_s14   ;;  %s2772_s12 = smov %s2416_s13 }
 0x189   : > { %p10_p5 = scmp.ge.s32.totalorder %s13_s14, 4   ;;  %s2773_s13 = smov %s2775_s15 }
 0x18b   :  { %12 = sbr.rel (!%p10_p5) target bundleno = 2 (0x2), region = 76 }

// kernel: custom_deeplabv3_forward.4
= control target key start
LH: loop header
LB: loop body
LE: loop exit
PB: predicated region body
PF: predicated region fallthrough
CT: control target
= control target key end

     0   :  { %s3122_s12 = smov 0   ;;  %s3124_s13 = smov 0   ;;  %s3506_s0 = inlined_call_operand.vmem [shape: bf16[2,4,9,9,128], index: 0, kind: input, shape index: {}]   ;;  %s3507_s1 = inlined_call_operand.vmem [shape: bf16[9,128,128], index: 1, kind: input, shape index: {}]   ;;  %s3508_s2 = inlined_call_operand.vmem [shape: f32[1,128], index: 2, kind: input, shape index: {}]   ;;  %s3509_s3 = inlined_call_operand.vmem [shape: bf16[2,8,8,128], index: 3, kind: output, shape index: {}]  }
   0x1   :  { %s3126_s14 = smov 0  }
   0x2 LB: > { %s25_s15 = sadd.s32 1, %s3096_s13  ;;  %p2214_p0 = scmp.ge.s32.totalorder %s3100_s14, 1  ;;  %s3100_s14 = sphi %s3126_s14, %s13_s14   ;;  %s3096_s13 = sphi %s3124_s13, %s3513_s13   ;;  %s3092_s12 = sphi %s3122_s12, %s3512_s12  }
   0x3   : > { %p27_p1 = scmp.ge.s32.totalorder %s25_s15, 2  ;;  %p151_p2 = scmp.lt.s32.totalorder %s3100_s14, 3 }
   0x5   : > { %s3515_s15 = smov (%p27_p1, %s25_s15), 0  ;;  %p152_p3 = pnand %p2214_p0, %p151_p2 }
   0x6   : > { %v2982_v0 = vld [vmem:[%s3507_s1 + $0x40] sm:$0xff] (!%p152_p3)   ;;  %p179_p4 = scmp.lt.s32.totalorder (!%p152_p3), %s3092_s12, 1  ;;  %v2984_v2 = vld [vmem:[%s3507_s1 + $0x48] sm:$0xff] (!%p152_p3)   ;;  %v2986_v4 = vld [vmem:[%s3507_s1 + $0x50] sm:$0xff] (!%p152_p3)   ;;  %vm541_vm0 = vsmask.f32 (!%p152_p3), 3328 }
   0x7   : > { %155 = sbr.rel (%p152_p3) target bundleno = 392 (0x188), region = 32  ;;  %v2983_v1 = vld [vmem:[%s3507_s1 + $0x100] sm:$0xff] (!%p152_p3)   ;;  %2661 = vmatprep.subr.bf16.mxu1 (!%p152_p3), %v2982_v0  ;;  %v2985_v3 = vld [vmem:[%s3507_s1 + $0x108] sm:$0xff] (!%p152_p3)   ;;  %v2987_v5 = vld [vmem:[%s3507_s1 + $0x110] sm:$0xff] (!%p152_p3)   ;;  %vm542_vm1 = vsmask.f32 (!%p152_p3), 7440 }
   0x8   : > { %2757 = vmatprep.subr.bf16.mxu0 (!%p152_p3), %v2983_v1  ;;  %2662 = vmatpush3.bf16.msra.mxu1 (!%p152_p3), %v2982_v0  ;;  %v2988_v6 = vld [vmem:[%s3507_s1 + $0x58] sm:$0xff] (!%p152_p3)   ;;  %v2990_v8 = vld [vmem:[%s3507_s1 + $0x60] sm:$0xff] (!%p152_p3)   ;;  %v2992_v10 = vld [vmem:[%s3507_s1 + $0x68] sm:$0xff] (!%p152_p3)  }
   0x9   : > { %2758 = vmatpush3.bf16.msra.mxu0 (!%p152_p3), %v2983_v1  ;;  %2663 = vmatprep.subr.bf16.mxu1 (!%p152_p3), %v2984_v2  ;;  %v2989_v7 = vld [vmem:[%s3507_s1 + $0x118] sm:$0xff] (!%p152_p3)   ;;  %v2991_v9 = vld [vmem:[%s3507_s1 + $0x120] sm:$0xff] (!%p152_p3)   ;;  %v2993_v12 = vld [vmem:[%s3507_s1 + $0x128] sm:$0xff] (!%p152_p3)  }
   0xa   : > { %2759 = vmatprep.subr.bf16.mxu0 (!%p152_p3), %v2985_v3  ;;  %v2994_v14 = vld [vmem:[%s3507_s1 + $0x70] sm:$0xff] (!%p152_p3)   ;;  %v2996_v16 = vld [vmem:[%s3507_s1 + $0x78] sm:$0xff] (!%p152_p3)   ;;  %v2999_v18 = vld [vmem:[%s3507_s1] sm:$0xff] (!%p152_p3)  }
   0xb   : > { %v2995_v15 = vld [vmem:[%s3507_s1 + $0x130] sm:$0xff] (!%p152_p3)   ;;  %v2997_v17 = vld [vmem:[%s3507_s1 + $0x138] sm:$0xff] (!%p152_p3)   ;;  %v3001_v19 = vld [vmem:[%s3507_s1 + $0x140] sm:$0xff] (!%p152_p3)  }
   0xc   : > { %2664 = vmatpush3.bf16.msra.mxu1 (!%p152_p3), %v2984_v2  ;;  %v3004_v22 = vld [vmem:[%s3507_s1 + $0x8] sm:$0xff] (!%p152_p3)   ;;  %v3006_v26 = vld [vmem:[%s3507_s1 + $0x10] sm:$0xff] (!%p152_p3)   ;;  %v3008_v28 = vld [vmem:[%s3507_s1 + $0x18] sm:$0xff] (!%p152_p3)  }
   0xd   : > { %2760 = vmatpush3.bf16.msra.mxu0 (!%p152_p3), %v2985_v3  ;;  %2665 = vmatprep.subr.bf16.mxu1 (!%p152_p3), %v2986_v4  ;;  %v3005_v23 = vld [vmem:[%s3507_s1 + $0x148] sm:$0xff] (!%p152_p3)   ;;  %v3007_v27 = vld [vmem:[%s3507_s1 + $0x150] sm:$0xff] (!%p152_p3)   ;;  %v3009_v31 = vld [vmem:[%s3507_s1 + $0x158] sm:$0xff] (!%p152_p3)  }
   0xe   : > { %s3517_s12 = smov (!%p179_p4, %s3092_s12), 1  ;;  %2761 = vmatprep.subr.bf16.mxu0 %v2987_v5  ;;  %v3010_v38 = vld [vmem:[%s3507_s1 + $0x20] sm:$0xff]   ;;  %v3012_v47 = vld [vmem:[%s3507_s1 + $0x28] sm:$0xff]   ;;  %vm3247_vm2 = vmor %vm541_vm0, %vm542_vm1 }
   0xf   : > { %s2957_s5 = smul.u32 288, %s3517_s12  ;;  %v3011_v43 = vld [vmem:[%s3507_s1 + $0x160] sm:$0xff]   ;;  %v3013_v50 = vld [vmem:[%s3507_s1 + $0x168] sm:$0xff]   ;;  %v3015_v2 = vld [vmem:[%s3507_s1 + $0x30] sm:$0xff]  }
  0x10   : > { %2666 = vmatpush3.bf16.msra.mxu1 %v2986_v4 }
  0x11   : > { %2762 = vmatpush3.bf16.msra.mxu0 %v2987_v5  ;;  %2667 = vmatprep.subr.bf16.mxu1 %v2988_v6  ;;  %s3176_s16 = scalar_lea.vmem %s3506_s0, %s2957_s5  ;;  %s2529_s5 = sshll.u32 %s3517_s12, 5 }
  0x12   : > { %2763 = vmatprep.subr.bf16.mxu0 %v2989_v7  ;;  %v2998_v11 = vld [vmem:[%s3176_s16 + $0x48] ss:$8 sps:$4 sm:$0xff]   ;;  %v3000_v13 = vld [vmem:[%s3176_s16 + $0xd8] ss:$8 sps:$4 sm:$0xff]   ;;  %v2367_v34 = vld [vmem:[%s3176_s16 + $0x94] sm:$0x1]  ;;  %s192_s8 = scalar_lea.vmem %s3509_s3, %s2529_s5 }
  0x13   : > { %2677 = vmatprep.mubr.bf16.mxu1 %v2998_v11  ;;  %2773 = vmatprep.mubr.bf16.mxu0 %v3000_v13  ;;  %v3002_v20 = vld [vmem:[%s3176_s16 + $0x58] ss:$8 sps:$4 sm:$0xff]   ;;  %v3003_v21 = vld [vmem:[%s3176_s16 + $0xe8] ss:$8 sps:$4 sm:$0xff]   ;;  %v2369_v39 = vld [vmem:[%s3176_s16 + $0x9c] sm:$0x1] }
  0x14   : > { %2668 = vmatpush3.bf16.msra.mxu1 %v2988_v6  ;;  %v3014_v24 = vld [vmem:[%s3176_s16 + $0x68] ss:$8 sps:$4 sm:$0xff]   ;;  %v3016_v25 = vld [vmem:[%s3176_s16 + $0xf8] ss:$8 sps:$4 sm:$0xff]   ;;  %v1182_v40 = vshll.u32 %v2367_v34, 16  ;;  %v1196_v46 = vshll.u32 %v2369_v39, 16 }
  0x15   : > { %2764 = vmatpush3.bf16.msra.mxu0 %v2989_v7  ;;  %2669 = vmatprep.subr.bf16.mxu1 %v2990_v8  ;;  %v3018_v29 = vld [vmem:[%s3176_s16 + $0x78] ss:$8 sps:$4 sm:$0xff]   ;;  %v3019_v30 = vld [vmem:[%s3176_s16 + $0x108] ss:$8 sps:$4 sm:$0xff]   ;;  %v2371_v57 = vld [vmem:[%s3176_s16 + $0xa4] sm:$0x1] }
  0x16   : > { %2765 = vmatprep.subr.bf16.mxu0 %v2991_v9  ;;  %v3022_v32 = vld [vmem:[%s3176_s16] ss:$8 sps:$4 sm:$0xff]   ;;  %v2366_v33 = vld [vmem:[%s3176_s16 + $0x90] sm:$0xf]  ;;  %v2368_v35 = vld [vmem:[%s3176_s16 + $0x98] sm:$0xf] }
  0x17   : > { %v1173_v36 = vshrl.u32 %v2366_v33, 16  ;;  %v1176_v37 = vshll.u32 %v2366_v33, 16  ;;  %v1187_v41 = vshrl.u32 %v2368_v35, 16  ;;  %v1190_v42 = vshll.u32 %v2368_v35, 16  ;;  %v2370_v56 = vld [vmem:[%s3176_s16 + $0xa0] sm:$0xf] }
  0x18   : > { %2670 = vmatpush3.bf16.msra.mxu1 %v2990_v8  ;;  %v1184_v52 = vrot.slane %v1182_v40, 5  ;;  %v1198_v55 = vrot.slane %v1196_v46, 5  ;;  %v2372_v59 = vld [vmem:[%s3176_s16 + $0xa8] sm:$0xf]  ;;  %v2373_v60 = vld [vmem:[%s3176_s16 + $0xac] sm:$0x1] }
  0x19   : > { %2766 = vmatpush3.bf16.msra.mxu0 %v2991_v9  ;;  %2671 = vmatprep.subr.bf16.mxu1 %v2992_v10  ;;  %v1175_v44 = vrot.slane %v1173_v36, 4  ;;  %v1178_v45 = vrot.slane %v1176_v37, 5  ;;  %v1189_v48 = vrot.slane %v1187_v41, 4  ;;  %v1192_v49 = vrot.slane %v1190_v42, 5  ;;  %v3017_v6 = vld [vmem:[%s3507_s1 + $0x170] sm:$0xff]  }
  0x1a   : > { %2767 = vmatprep.subr.bf16.mxu0 %v2993_v12  ;;  %v1201_v61 = vshrl.u32 %v2370_v56, 16  ;;  %v1204_v63 = vshll.u32 %v2370_v56, 16  ;;  %v1210_v0 = vshll.u32 %v2371_v57, 16  ;;  %v1215_v1 = vshrl.u32 %v2372_v59, 16  ;;  %v3036_v37 = vld [vmem:[%s3176_s16 + $0x20] ss:$8 sps:$4 sm:$0xff]  }
  0x1b   : > { %v1179_v51 = vor.u32 %v1178_v45, %v1175_v44  ;;  %v1193_v54 = vor.u32 %v1192_v49, %v1189_v48  ;;  %v1218_v5 = vshll.u32 %v2372_v59, 16  ;;  %v3039_v48 = vld [vmem:[%s3176_s16 + $0x30] ss:$8 sps:$4 sm:$0xff]   ;;  %v2378_v49 = vld [vmem:[%s3176_s16 + $0xc0] sm:$0xf] }
  0x1c   : > { %2672 = vmatpush3.bf16.msra.mxu1 %v2992_v10  ;;  %v1203_v4 = vrot.slane %v1201_v61, 4  ;;  %v1206_v8 = vrot.slane %v1204_v63, 5  ;;  %v1217_v9 = vrot.slane %v1215_v1, 4  ;;  %v1224_v10 = vshll.u32 %v2373_v60, 16  ;;  %v3030_v59 = vld [vmem:[%s3507_s1 + $0x98] sm:$0xff]  }
  0x1d   : > { %2768 = vmatpush3.bf16.msra.mxu0 %v2993_v12  ;;  %2673 = vmatprep.subr.bf16.mxu1 %v2994_v14  ;;  %v1180_v58 = vrot.slane %v1179_v51, 4  ;;  %v1194_v62 = vrot.slane %v1193_v54, 4  ;;  %v1212_v12 = vrot.slane %v1210_v0, 5  ;;  %v1220_v13 = vrot.slane %v1218_v5, 5  ;;  %v2380_v51 = vld [vmem:[%s3176_s16 + $0xc8] sm:$0xf] }
  0x1e   : > { %2769 = vmatprep.subr.bf16.mxu0 %v2995_v15  ;;  %v1257_v56 = vshrl.u32 %v2378_v49, 16  ;;  %v1260_v57 = vshll.u32 %v2378_v49, 16  ;;  %v1271_v61 = vshrl.u32 %v2380_v51, 16 }
  0x1f   : > { %v1185_v3 = vsel %vm3247_vm2, %v1180_v58, %v1184_v52  ;;  %v1199_v7 = vsel %vm3247_vm2, %v1194_v62, %v1198_v55  ;;  %v3029_v52 = vld [vmem:[%s3507_s1 + $0x190] sm:$0xff]   ;;  %v2381_v55 = vld [vmem:[%s3176_s16 + $0xcc] sm:$0x1]  ;;  %v1274_v62 = vshll.u32 %v2380_v51, 16 }
  0x20   : > { %2674 = vmatpush3.bf16.msra.mxu1 %v2994_v14  ;;  %v2398_v11 = vcombine.low %v1185_v3, %v1199_v7  ;;  %v3020_v14 = vld [vmem:[%s3507_s1 + $0x38] sm:$0xff]   ;;  %v1280_v63 = vshll.u32 %v2381_v55, 16  ;;  %v1259_v1 = vrot.slane %v1257_v56, 4 }
  0x21   : > { %2770 = vmatpush3.bf16.msra.mxu0 %v2995_v15  ;;  %2675 = vmatprep.subr.bf16.mxu1 %v2996_v16  ;;  %v1207_v15 = vor.u32 %v1206_v8, %v1203_v4  ;;  %v3031_v4 = vld [vmem:[%s3507_s1 + $0x198] sm:$0xff]   ;;  %v1276_v7 = vrot.slane %v1274_v62, 5 }
  0x22   : > { %2771 = vmatprep.subr.bf16.mxu0 %v2997_v17  ;;  %v1282_v8 = vrot.slane %v1280_v63, 5 }
  0x24   : > { %2676 = vmatpush3.bf16.msra.mxu1 %v2996_v16  ;;  %v1221_v16 = vor.u32 %v1220_v13, %v1217_v9  ;;  %v3032_v13 = vld [vmem:[%s3507_s1 + $0xa0] sm:$0xff]  }
  0x25   : > { %2772 = vmatpush3.bf16.msra.mxu0 %v2997_v17  ;;  %2685 = vmatprep.subr.bf16.mxu1 %v2999_v18  ;;  %v1208_v17 = vrot.slane %v1207_v15, 4 }
  0x26   : > { %2781 = vmatprep.subr.bf16.mxu0 %v3001_v19 }
  0x27   : > { %2678 = vmatmul.mubr.bf16.vlgmr.msra.gmra.mrb[0].mxu1 %v3002_v20  ;;  %v1222_v20 = vrot.slane %v1221_v16, 4  ;;  %v527_v16 = vld [vmem:[%s3176_s16 + $0x8] sm:$0xf] }
  0x28   : > { %2686 = vmatpush3.bf16.msra.mxu1 %v2999_v18  ;;  %2774 = vmatmul.mubr.bf16.vlgmr.msra.gmra.mrb[0].mxu0 %v3003_v21  ;;  %v1226_v18 = vrot.slane %v1224_v10, 5  ;;  %v3023_v21 = vld [vmem:[%s3507_s1 + $0x80] sm:$0xff]  }
  0x29   : > { %2782 = vmatpush3.bf16.msra.mxu0 %v3001_v19  ;;  %2687 = vmatprep.subr.bf16.mxu1 %v3004_v22  ;;  %v3021_v19 = vld [vmem:[%s3507_s1 + $0x178] sm:$0xff]  }
  0x2a   : > { %2783 = vmatprep.subr.bf16.mxu0 %v3005_v23  ;;  %2681 = vmatprep.mubr.bf16.mxu1 %v3014_v24  ;;  %v3024_v24 = vld [vmem:[%s3507_s1 + $0x180] sm:$0xff]  }
  0x2b   : > { %2777 = vmatprep.mubr.bf16.mxu0 %v3016_v25  ;;  %v3025_v25 = vld [vmem:[%s3176_s16 + $0x10] ss:$8 sps:$4 sm:$0xff]  }
  0x2c   : > { %2688 = vmatpush3.bf16.msra.mxu1 %v3004_v22  ;;  %v1213_v22 = vsel %vm3247_vm2, %v1208_v17, %v1212_v12  ;;  %v526_v12 = vld [vmem:[%s3176_s16 + $0x4] sm:$0x1]  ;;  %v528_v17 = vld [vmem:[%s3176_s16 + $0xc] sm:$0x1] }
  0x2d   : > { %2784 = vmatpush3.bf16.msra.mxu0 %v3005_v23  ;;  %2689 = vmatprep.subr.bf16.mxu1 %v3006_v26  ;;  %v1227_v23 = vsel %vm3247_vm2, %v1222_v20, %v1226_v18 }
  0x2e   : > { %2785 = vmatprep.subr.bf16.mxu0 %v3007_v27 }
  0x2f   : > { %2682 = vmatmul.mubr.bf16.gmra.mrb[4].mxu1 %v3018_v29  ;;  %v3027_v29 = vld [vmem:[%s3507_s1 + $0x188] sm:$0xff]  }
  0x30   : > { %2690 = vmatpush3.bf16.msra.mxu1 %v3006_v26  ;;  %2778 = vmatmul.mubr.bf16.gmra.mrb[4].mxu0 %v3019_v30  ;;  %v3026_v26 = vld [vmem:[%s3507_s1 + $0x88] sm:$0xff]   ;;  %v2375_v30 = vld [vmem:[%s3176_s16 + $0xb4] sm:$0x1] }
  0x31   : > { %2786 = vmatpush3.bf16.msra.mxu0 %v3007_v27  ;;  %2691 = vmatprep.subr.bf16.mxu1 %v3008_v28  ;;  %v2374_v27 = vld [vmem:[%s3176_s16 + $0xb0] sm:$0xf]  ;;  %v1238_v35 = vshll.u32 %v2375_v30, 16 }
  0x32   : > { %2787 = vmatprep.subr.bf16.mxu0 %v3009_v31  ;;  %2701 = vmatprep.mubr.bf16.mxu1 %v3022_v32  ;;  %v2377_v32 = vld [vmem:[%s3176_s16 + $0xbc] sm:$0x1]  ;;  %v1229_v33 = vshrl.u32 %v2374_v27, 16  ;;  %v1232_v34 = vshll.u32 %v2374_v27, 16  ;;  %v568_v27 = vshll.u32 %v528_v17, 16 }
  0x33   : > { %2797 = vmatprep.mubr.bf16.mxu0 %v2398_v11  ;;  %v1252_v39 = vshll.u32 %v2377_v32, 16  ;;  %v1240_v44 = vrot.slane %v1238_v35, 5  ;;  %v525_v11 = vld [vmem:[%s3176_s16] sm:$0xf]  ;;  %v3034_v32 = vld [vmem:[%s3507_s1 + $0xa8] sm:$0xff]  }
  0x34   : > { %2692 = vmatpush3.bf16.msra.mxu1 %v3008_v28  ;;  %v2399_v28 = vcombine.low %v1213_v22, %v1227_v23  ;;  %v1231_v40 = vrot.slane %v1229_v33, 4  ;;  %v1234_v41 = vrot.slane %v1232_v34, 5  ;;  %v545_v18 = vshrl.u32 %v525_v11, 16  ;;  %v536_v17 = vld [vmem:[%s3176_s16 + $0x2c] sm:$0x1] }
  0x35   : > { %2788 = vmatpush3.bf16.msra.mxu0 %v3009_v31  ;;  %2693 = vmatprep.subr.bf16.mxu1 %v3010_v38  ;;  %v2376_v31 = vld [vmem:[%s3176_s16 + $0xb8] sm:$0xf]  ;;  %v1254_v46 = vrot.slane %v1252_v39, 5  ;;  %v559_v22 = vshrl.u32 %v527_v16, 16  ;;  %v562_v23 = vshll.u32 %v527_v16, 16 }
  0x36   : > { %2789 = vmatprep.subr.bf16.mxu0 %v3011_v43  ;;  %v1243_v36 = vshrl.u32 %v2376_v31, 16  ;;  %v535_v16 = vld [vmem:[%s3176_s16 + $0x28] sm:$0xf] }
  0x37   : > { %v561_v30 = vrot.slane %v559_v22, 4  ;;  %v615_v22 = vshrl.u32 %v535_v16, 16 }
  0x38   : > { %2694 = vmatpush3.bf16.msra.mxu1 %v3010_v38  ;;  %v1246_v38 = vshll.u32 %v2376_v31, 16  ;;  %v1245_v42 = vrot.slane %v1243_v36, 4  ;;  %v564_v31 = vrot.slane %v562_v23, 5  ;;  %v570_v36 = vrot.slane %v568_v27, 5 }
  0x39   : > { %2790 = vmatpush3.bf16.msra.mxu0 %v3011_v43  ;;  %2695 = vmatprep.subr.bf16.mxu1 %v3012_v47  ;;  %v3028_v43 = vld [vmem:[%s3507_s1 + $0x90] sm:$0xff]   ;;  %v618_v23 = vshll.u32 %v535_v16, 16  ;;  %v2483_v16 = vld [vmem:[%s3176_s16 + $0xc] sm:$0x1] }
  0x3a   : > { %2791 = vmatprep.subr.bf16.mxu0 %v3013_v50  ;;  %v1248_v45 = vrot.slane %v1246_v38, 5  ;;  %v3035_v38 = vld [vmem:[%s3507_s1 + $0x1a8] sm:$0xff]  }
  0x3c   : > { %2696 = vmatpush3.bf16.msra.mxu1 %v3012_v47  ;;  %v1235_v47 = vor.u32 %v1234_v41, %v1231_v40  ;;  %v1249_v54 = vor.u32 %v1248_v45, %v1245_v42  ;;  %v565_v40 = vor.u32 %v564_v31, %v561_v30  ;;  %v529_v41 = vld [vmem:[%s3176_s16 + $0x10] sm:$0xf]  ;;  %v620_v31 = vrot.slane %v618_v23, 5 }
  0x3d   : > { %2792 = vmatpush3.bf16.msra.mxu0 %v3013_v50  ;;  %2697 = vmatprep.subr.bf16.mxu1 %v3015_v2  ;;  %v2379_v50 = vld [vmem:[%s3176_s16 + $0xc4] sm:$0x1]  ;;  %v573_v45 = vshrl.u32 %v529_v41, 16  ;;  %v537_v30 = vld [vmem:[%s3176_s16 + $0x30] sm:$0xf] }
  0x3e   : > { %2793 = vmatprep.subr.bf16.mxu0 %v3017_v6  ;;  %v1266_v58 = vshll.u32 %v2379_v50, 16  ;;  %v1236_v60 = vrot.slane %v1235_v47, 4  ;;  %v1250_v0 = vrot.slane %v1249_v54, 4  ;;  %v532_v47 = vld [vmem:[%s3176_s16 + $0x1c] sm:$0x1] }
  0x40   : > { %2698 = vmatpush3.bf16.msra.mxu1 %v3015_v2  ;;  %v1262_v2 = vrot.slane %v1260_v57, 5  ;;  %v1268_v3 = vrot.slane %v1266_v58, 5  ;;  %v1241_v5 = vsel %vm3247_vm2, %v1236_v60, %v1240_v44  ;;  %v1255_v9 = vsel %vm3247_vm2, %v1250_v0, %v1254_v46  ;;  %v531_v44 = vld [vmem:[%s3176_s16 + $0x18] sm:$0xf]  ;;  %v3038_v60 = vld [vmem:[%s3507_s1 + $0x1b0] sm:$0xff]  }
  0x41   : > { %2794 = vmatpush3.bf16.msra.mxu0 %v3017_v6  ;;  %2699 = vmatprep.subr.bf16.mxu1 %v3020_v14  ;;  %v1273_v6 = vrot.slane %v1271_v61, 4  ;;  %v566_v46 = vrot.slane %v565_v40, 4  ;;  %v587_v50 = vshrl.u32 %v531_v44, 16  ;;  %v590_v54 = vshll.u32 %v531_v44, 16 }
  0x42   : > { %2795 = vmatprep.subr.bf16.mxu0 %v3021_v19  ;;  %v1263_v10 = vor.u32 %v1262_v2, %v1259_v1  ;;  %v596_v58 = vshll.u32 %v532_v47, 16 }
  0x43   : > { %v1277_v15 = vor.u32 %v1276_v7, %v1273_v6  ;;  %v571_v55 = vsel %vm3247_vm2, %v566_v46, %v570_v36  ;;  %v589_v57 = vrot.slane %v587_v50, 4  ;;  %v592_v63 = vrot.slane %v590_v54, 5  ;;  %v3041_v6 = vld [vmem:[%s3507_s1 + $0x1b8] sm:$0xff]   ;;  %v3042_v7 = vld [vmem:[%s3507_s1 + $0xc0] sm:$0xff]  }
  0x44   : > { %2700 = vmatpush3.bf16.msra.mxu1 %v3020_v14  ;;  %v2400_v14 = vcombine.low %v1241_v5, %v1255_v9  ;;  %v1264_v20 = vrot.slane %v1263_v10, 4  ;;  %v3044_v10 = vld [vmem:[%s3507_s1 + $0x1c0] sm:$0xff]   ;;  %v3050_v50 = vld [vmem:[%s3507_s1 + $0xd8] sm:$0xff]  }
  0x45   : > { %2796 = vmatpush3.bf16.msra.mxu0 %v3021_v19  ;;  %2709 = vmatprep.subr.bf16.mxu1 %v3023_v21  ;;  %v548_v19 = vshll.u32 %v525_v11, 16  ;;  %v593_v1 = vor.u32 %v592_v63, %v589_v57  ;;  %v3045_v11 = vld [vmem:[%s3176_s16 + $0x18] ss:$8 sps:$4 sm:$0xff]  }
  0x46   : > { %2805 = vmatprep.subr.bf16.mxu0 %v3024_v24 }
  0x47   : > { %2702 = vmatmul.mubr.bf16.vlgmr.msra.gmra.mrb[0].mxu1 %v3025_v25  ;;  %v547_v25 = vrot.slane %v545_v18, 4  ;;  %v594_v5 = vrot.slane %v593_v1, 4  ;;  %v3047_v18 = vld [vmem:[%s3507_s1 + $0x1c8] sm:$0xff]   ;;  %v3052_v1 = vld [vmem:[%s3507_s1 + $0xe0] sm:$0xff]  }
  0x48   : > { %2710 = vmatpush3.bf16.msra.mxu1 %v3023_v21  ;;  %2798 = vmatmul.mubr.bf16.vlgmr.msra.gmra.mrb[0].mxu0 %v2399_v28  ;;  %v554_v21 = vshll.u32 %v526_v12, 16  ;;  %v3033_v28 = vld [vmem:[%s3507_s1 + $0x1a0] sm:$0xff]  }
  0x49   : > { %2806 = vmatpush3.bf16.msra.mxu0 %v3024_v24  ;;  %2711 = vmatprep.subr.bf16.mxu1 %v3026_v26  ;;  %v1278_v24 = vrot.slane %v1277_v15, 4  ;;  %v533_v12 = vld [vmem:[%s3176_s16 + $0x20] sm:$0xf]  ;;  %v534_v15 = vld [vmem:[%s3176_s16 + $0x24] sm:$0x1] }
  0x4a   : > { %2807 = vmatprep.subr.bf16.mxu0 %v3027_v29  ;;  %2705 = vmatprep.mubr.bf16.mxu1 %v3036_v37  ;;  %v556_v35 = vrot.slane %v554_v21, 5  ;;  %v3043_v37 = vld [vmem:[%s3176_s16 + $0x8] ss:$8 sps:$4 sm:$0xff]   ;;  %v610_v21 = vshll.u32 %v534_v15, 16 }
  0x4b   : > { %2801 = vmatprep.mubr.bf16.mxu0 %v2400_v14  ;;  %v1283_v33 = vsel %vm3247_vm2, %v1278_v24, %v1282_v8  ;;  %v3046_v14 = vld [vmem:[%s3507_s1 + $0xc8] sm:$0xff]   ;;  %v624_v24 = vshll.u32 %v536_v17, 16  ;;  %v2484_v17 = vld [vmem:[%s3176_s16 + $0x10] sm:$0xf] }
  0x4c   : > { %2712 = vmatpush3.bf16.msra.mxu1 %v3026_v26  ;;  %v550_v26 = vrot.slane %v548_v19, 5  ;;  %v601_v19 = vshrl.u32 %v533_v12, 16  ;;  %v2482_v15 = vld [vmem:[%s3176_s16 + $0x8] sm:$0xf]  ;;  %v1819_v23 = vshll.u32 %v2484_v17, 16 }
  0x4d   : > { %2808 = vmatpush3.bf16.msra.mxu0 %v3027_v29  ;;  %2713 = vmatprep.subr.bf16.mxu1 %v3028_v43  ;;  %v1269_v29 = vsel %vm3247_vm2, %v1264_v20, %v1268_v3  ;;  %v598_v3 = vrot.slane %v596_v58, 5  ;;  %v604_v20 = vshll.u32 %v533_v12, 16  ;;  %v3058_v58 = vld [vmem:[%s3176_s16 + $0x38] ss:$8 sps:$4 sm:$0xff]  }
  0x4e   : > { %2809 = vmatprep.subr.bf16.mxu0 %v3029_v52  ;;  %v551_v34 = vor.u32 %v550_v26, %v547_v25  ;;  %v2401_v39 = vcombine.low %v1269_v29, %v1283_v33  ;;  %v3056_v25 = vld [vmem:[%s3176_s16 + $0x28] ss:$8 sps:$4 sm:$0xff]   ;;  %v603_v26 = vrot.slane %v601_v19, 4  ;;  %v617_v29 = vrot.slane %v615_v22, 4  ;;  %v538_v33 = vld [vmem:[%s3176_s16 + $0x34] sm:$0x1] }
  0x4f   : > { %2706 = vmatmul.mubr.bf16.gmra.mrb[4].mxu1 %v3039_v48  ;;  %v576_v48 = vshll.u32 %v529_v41, 16  ;;  %v599_v9 = vsel %vm3247_vm2, %v594_v5, %v598_v3  ;;  %v606_v27 = vrot.slane %v604_v20, 5  ;;  %v638_v40 = vshll.u32 %v538_v33, 16  ;;  %v3049_v41 = vld [vmem:[%s3507_s1 + $0x1d0] sm:$0xff]   ;;  %v3053_v5 = vld [vmem:[%s3507_s1 + $0x1e0] sm:$0xff]   ;;  %v3060_v12 = vld [vmem:[%s3507_s1 + $0xf8] sm:$0xff]  }
  0x50   : > { %2714 = vmatpush3.bf16.msra.mxu1 %v3028_v43  ;;  %v552_v42 = vrot.slane %v551_v34, 4  ;;  %v530_v43 = vld [vmem:[%s3176_s16 + $0x14] sm:$0x1]  ;;  %2802 = vmatmul.mubr.bf16.gmra.mrb[4].mxu0 %v2401_v39  ;;  %v539_v34 = vld [vmem:[%s3176_s16 + $0x38] sm:$0xf]  ;;  %v632_v39 = vshll.u32 %v537_v30, 16 }
  0x51   : > { %2810 = vmatpush3.bf16.msra.mxu0 %v3029_v52  ;;  %2715 = vmatprep.subr.bf16.mxu1 %v3030_v59  ;;  %v582_v49 = vshll.u32 %v530_v43, 16  ;;  %v575_v52 = vrot.slane %v573_v45, 4  ;;  %v578_v56 = vrot.slane %v576_v48, 5  ;;  %v607_v36 = vor.u32 %v606_v27, %v603_v26  ;;  %v2493_v33 = vld [vmem:[%s3176_s16 + $0x34] sm:$0x1] }
  0x52   : > { %2811 = vmatprep.subr.bf16.mxu0 %v3031_v4  ;;  %v557_v51 = vsel %vm3247_vm2, %v552_v42, %v556_v35  ;;  %2821 = vmatprep.mubr.bf16.mxu0 %v3043_v37  ;;  %v3048_v35 = vld [vmem:[%s3507_s1 + $0xd0] sm:$0xff]   ;;  %v540_v37 = vld [vmem:[%s3176_s16 + $0x3c] sm:$0x1]  ;;  %v621_v42 = vor.u32 %v620_v31, %v617_v29  ;;  %v643_v43 = vshrl.u32 %v539_v34, 16  ;;  %v646_v44 = vshll.u32 %v539_v34, 16 }
  0x53   : > { %v2282_v61 = vcombine.low %v557_v51, %v571_v55  ;;  %v584_v62 = vrot.slane %v582_v49, 5  ;;  %v579_v0 = vor.u32 %v578_v56, %v575_v52  ;;  %v652_v45 = vshll.u32 %v540_v37, 16  ;;  %v2492_v29 = vld [vmem:[%s3176_s16 + $0x30] sm:$0xf]  ;;  %v3065_v34 = vld [vmem:[%s3176_s16 + $0x60] ss:$8 sps:$4 sm:$0xff]  }
  0x54   : > { %2716 = vmatpush3.bf16.msra.mxu1 %v3030_v59  ;;  %v3037_v59 = vld [vmem:[%s3507_s1 + $0xb0] sm:$0xff]   ;;  %v608_v46 = vrot.slane %v607_v36, 4  ;;  %v634_v48 = vrot.slane %v632_v39, 5  ;;  %v640_v49 = vrot.slane %v638_v40, 5  ;;  %v622_v51 = vrot.slane %v621_v42, 4  ;;  %v3067_v39 = vld [vmem:[%s3507_s1 + $0x208] sm:$0xff]  }
  0x55   : > { %2812 = vmatpush3.bf16.msra.mxu0 %v3031_v4  ;;  %2717 = vmatprep.subr.bf16.mxu1 %v3032_v13  ;;  %v580_v2 = vrot.slane %v579_v0, 4  ;;  %v3040_v4 = vld [vmem:[%s3507_s1 + $0xb8] sm:$0xff]   ;;  %v645_v52 = vrot.slane %v643_v43, 4  ;;  %v648_v54 = vrot.slane %v646_v44, 5  ;;  %v654_v55 = vrot.slane %v652_v45, 5 }
  0x56   : > { %2813 = vmatprep.subr.bf16.mxu0 %v3033_v28  ;;  %2725 = vmatprep.mubr.bf16.mxu1 %v2282_v61  ;;  %v3051_v61 = vld [vmem:[%s3507_s1 + $0x1d8] sm:$0xff]   ;;  %v1802_v19 = vshrl.u32 %v2482_v15, 16  ;;  %v1805_v20 = vshll.u32 %v2482_v15, 16  ;;  %v1816_v22 = vshrl.u32 %v2484_v17, 16  ;;  %v1875_v42 = vshll.u32 %v2492_v29, 16  ;;  %v3074_v15 = vld [vmem:[%s3507_s1 + $0x220] sm:$0xff]  }
  0x57   : > { %v585_v8 = vsel %vm3247_vm2, %v580_v2, %v584_v62  ;;  %v1881_v43 = vshll.u32 %v2493_v33, 16  ;;  %v3068_v44 = vld [vmem:[%s3176_s16 + $0xb0] ss:$8 sps:$4 sm:$0xff]  }
  0x58   : > { %2718 = vmatpush3.bf16.msra.mxu1 %v3032_v13  ;;  %v2283_v13 = vcombine.low %v585_v8, %v599_v9  ;;  %v3054_v8 = vld [vmem:[%s3507_s1 + $0xe8] sm:$0xff]   ;;  %v1804_v26 = vrot.slane %v1802_v19, 4  ;;  %v1807_v27 = vrot.slane %v1805_v20, 5  ;;  %v1818_v31 = vrot.slane %v1816_v22, 4 }
  0x59   : > { %2814 = vmatpush3.bf16.msra.mxu0 %v3033_v28  ;;  %2719 = vmatprep.subr.bf16.mxu1 %v3034_v32  ;;  %v612_v28 = vrot.slane %v610_v21, 5  ;;  %v3055_v9 = vld [vmem:[%s3507_s1 + $0x1e8] sm:$0xff]   ;;  %v1811_v21 = vshll.u32 %v2483_v16, 16 }
  0x5a   : > { %2815 = vmatprep.subr.bf16.mxu0 %v3035_v38  ;;  %v3075_v20 = vld [vmem:[%s3507_s1 + $0x228] sm:$0xff]  }
  0x5b   : > { %v613_v56 = vsel %vm3247_vm2, %v608_v46, %v612_v28  ;;  %v2491_v28 = vld [vmem:[%s3176_s16 + $0x2c] sm:$0x1]  ;;  %v1813_v45 = vrot.slane %v1811_v21, 5  ;;  %v2495_v21 = vld [vmem:[%s3176_s16 + $0x3c] sm:$0x1] }
  0x5c   : > { %2720 = vmatpush3.bf16.msra.mxu1 %v3034_v32  ;;  %v626_v32 = vrot.slane %v624_v24, 5 }
  0x5d   : > { %2816 = vmatpush3.bf16.msra.mxu0 %v3035_v38  ;;  %2721 = vmatprep.subr.bf16.mxu1 %v3037_v59  ;;  %v629_v38 = vshrl.u32 %v537_v30, 16  ;;  %v3064_v30 = vld [vmem:[%s3176_s16 + $0xa0] ss:$8 sps:$4 sm:$0xff]  }
  0x5e   : > { %2817 = vmatprep.subr.bf16.mxu0 %v3038_v60 }
  0x5f   : > { %v631_v47 = vrot.slane %v629_v38, 4  ;;  %v1867_v38 = vshll.u32 %v2491_v28, 16 }
  0x60   : > { %2722 = vmatpush3.bf16.msra.mxu1 %v3037_v59  ;;  %v627_v59 = vsel %vm3247_vm2, %v622_v51, %v626_v32  ;;  %v1821_v32 = vrot.slane %v1819_v23, 5 }
  0x61   : > { %2818 = vmatpush3.bf16.msra.mxu0 %v3038_v60  ;;  %2723 = vmatprep.subr.bf16.mxu1 %v3040_v4  ;;  %v635_v57 = vor.u32 %v634_v48, %v631_v47  ;;  %v649_v60 = vor.u32 %v648_v54, %v645_v52  ;;  %v2284_v62 = vcombine.low %v613_v56, %v627_v59  ;;  %v1877_v54 = vrot.slane %v1875_v42, 5 }
  0x62   : > { %2819 = vmatprep.subr.bf16.mxu0 %v3041_v6  ;;  %v1822_v40 = vor.u32 %v1821_v32, %v1818_v31  ;;  %v1869_v56 = vrot.slane %v1867_v38, 5  ;;  %v1883_v59 = vrot.slane %v1881_v43, 5  ;;  %v2487_v31 = vld [vmem:[%s3176_s16 + $0x1c] sm:$0x1]  ;;  %v2489_v32 = vld [vmem:[%s3176_s16 + $0x24] sm:$0x1] }
  0x63   : > { %v636_v63 = vrot.slane %v635_v57, 4  ;;  %v650_v0 = vrot.slane %v649_v60, 4  ;;  %v3072_v57 = vld [vmem:[%s3507_s1 + $0x210] sm:$0xff]  }
  0x64   : > { %2724 = vmatpush3.bf16.msra.mxu1 %v3040_v4  ;;  %v3063_v4 = vld [vmem:[%s3176_s16 + $0x50] ss:$8 sps:$4 sm:$0xff]   ;;  %v1823_v51 = vrot.slane %v1822_v40, 4 }
  0x65   : > { %2820 = vmatpush3.bf16.msra.mxu0 %v3041_v6  ;;  %2733 = vmatprep.subr.bf16.mxu1 %v3042_v7  ;;  %v641_v2 = vsel %vm3247_vm2, %v636_v63, %v640_v49  ;;  %v655_v3 = vsel %vm3247_vm2, %v650_v0, %v654_v55  ;;  %v3069_v49 = vld [vmem:[%s3176_s16 + $0x70] ss:$8 sps:$4 sm:$0xff]  }
  0x66   : > { %2829 = vmatprep.subr.bf16.mxu0 %v3044_v10  ;;  %v2285_v6 = vcombine.low %v641_v2, %v655_v3  ;;  %v3073_v3 = vld [vmem:[%s3507_s1 + $0x218] sm:$0xff]  }
  0x67   : > { %2726 = vmatmul.mubr.bf16.vlgmr.msra.gmra.mrb[0].mxu1 %v2283_v13  ;;  %v3061_v13 = vld [vmem:[%s3507_s1 + $0x1f8] sm:$0xff]  }
  0x68   : > { %2734 = vmatpush3.bf16.msra.mxu1 %v3042_v7  ;;  %2822 = vmatmul.mubr.bf16.vlgmr.msra.gmra.mrb[0].mxu0 %v3045_v11  ;;  %v3062_v7 = vld [vmem:[%s3176_s16 + $0x90] ss:$8 sps:$4 sm:$0xff]  }
  0x69   : > { %2830 = vmatpush3.bf16.msra.mxu0 %v3044_v10  ;;  %2735 = vmatprep.subr.bf16.mxu1 %v3046_v14  ;;  %v3057_v10 = vld [vmem:[%s3507_s1 + $0xf0] sm:$0xff]  }
  0x6a   : > { %2831 = vmatprep.subr.bf16.mxu0 %v3047_v18  ;;  %2825 = vmatprep.mubr.bf16.mxu0 %v3056_v25  ;;  %v3059_v11 = vld [vmem:[%s3507_s1 + $0x1f0] sm:$0xff]   ;;  %v2490_v25 = vld [vmem:[%s3176_s16 + $0x28] sm:$0xf] }
  0x6b   : > { %2729 = vmatprep.mubr.bf16.mxu1 %v2284_v62  ;;  %v1858_v36 = vshrl.u32 %v2490_v25, 16  ;;  %v1861_v37 = vshll.u32 %v2490_v25, 16 }
  0x6c   : > { %2736 = vmatpush3.bf16.msra.mxu1 %v3046_v14  ;;  %v3066_v14 = vld [vmem:[%s3507_s1 + $0x200] sm:$0xff]  }
  0x6d   : > { %2832 = vmatpush3.bf16.msra.mxu0 %v3047_v18  ;;  %2737 = vmatprep.subr.bf16.mxu1 %v3048_v35  ;;  %v2485_v18 = vld [vmem:[%s3176_s16 + $0x14] sm:$0x1]  ;;  %v1860_v47 = vrot.slane %v1858_v36, 4  ;;  %v1863_v48 = vrot.slane %v1861_v37, 5 }
  0x6e   : > { %2833 = vmatprep.subr.bf16.mxu0 %v3049_v41  ;;  %v1825_v24 = vshll.u32 %v2485_v18, 16  ;;  %v3076_v37 = vld [vmem:[%s3507_s1 + $0x230] sm:$0xff]  }
  0x6f   : > { %2730 = vmatmul.mubr.bf16.gmra.mrb[4].mxu1 %v2285_v6  ;;  %v1864_v55 = vor.u32 %v1863_v48, %v1860_v47  ;;  %v2496_v6 = vld [vmem:[%s3176_s16 + $0x40] sm:$0xf] }
  0x70   : > { %2738 = vmatpush3.bf16.msra.mxu1 %v3048_v35  ;;  %2826 = vmatmul.mubr.bf16.gmra.mrb[4].mxu0 %v3058_v58  ;;  %v1808_v35 = vor.u32 %v1807_v27, %v1804_v26  ;;  %v1827_v46 = vrot.slane %v1825_v24, 5 }
  0x71   : > { %2834 = vmatpush3.bf16.msra.mxu0 %v3049_v41  ;;  %2739 = vmatprep.subr.bf16.mxu1 %v3050_v50  ;;  %v1872_v41 = vshrl.u32 %v2492_v29, 16  ;;  %v1865_v60 = vrot.slane %v1864_v55, 4 }
  0x72   : > { %2835 = vmatprep.subr.bf16.mxu0 %v3051_v61  ;;  %2845 = vmatprep.mubr.bf16.mxu0 %v3063_v4  ;;  %v1828_v63 = vsel %vm3247_vm2, %v1823_v51, %v1827_v46  ;;  %v3077_v46 = vld [vmem:[%s3507_s1 + $0x238] sm:$0xff]  }
  0x73   : > { %2749 = vmatprep.mubr.bf16.mxu1 %v3062_v7  ;;  %v1874_v52 = vrot.slane %v1872_v41, 4  ;;  %v1870_v2 = vsel %vm3247_vm2, %v1865_v60, %v1869_v56  ;;  %v1853_v41 = vshll.u32 %v2489_v32, 16 }
  0x74   : > { %2740 = vmatpush3.bf16.msra.mxu1 %v3050_v50  ;;  %v1809_v50 = vrot.slane %v1808_v35, 4 }
  0x75   : > { %2836 = vmatpush3.bf16.msra.mxu0 %v3051_v61  ;;  %2741 = vmatprep.subr.bf16.mxu1 %v3052_v1  ;;  %v1878_v58 = vor.u32 %v1877_v54, %v1874_v52  ;;  %v3070_v61 = vld [vmem:[%s3176_s16 + $0xc0] ss:$8 sps:$4 sm:$0xff]  }
  0x76   : > { %2837 = vmatprep.subr.bf16.mxu0 %v3053_v5  ;;  %v1814_v62 = vsel %vm3247_vm2, %v1809_v50, %v1813_v45  ;;  %v1855_v50 = vrot.slane %v1853_v41, 5 }
  0x77   : > { %v1879_v0 = vrot.slane %v1878_v58, 4  ;;  %v2514_v7 = vcombine.low %v1814_v62, %v1828_v63 }
  0x78   : > { %2742 = vmatpush3.bf16.msra.mxu1 %v3052_v1  ;;  %v3071_v1 = vld [vmem:[%s3176_s16 + $0x80] ss:$8 sps:$4 sm:$0xff]  }
  0x79   : > { %2838 = vmatpush3.bf16.msra.mxu0 %v3053_v5  ;;  %2743 = vmatprep.subr.bf16.mxu1 %v3054_v8  ;;  %v1884_v4 = vsel %vm3247_vm2, %v1879_v0, %v1883_v59  ;;  %v2494_v5 = vld [vmem:[%s3176_s16 + $0x38] sm:$0xf] }
  0x7a   : > { %2839 = vmatprep.subr.bf16.mxu0 %v3055_v9 }
  0x7c   : > { %2744 = vmatpush3.bf16.msra.mxu1 %v3054_v8  ;;  %v2486_v8 = vld [vmem:[%s3176_s16 + $0x18] sm:$0xf] }
  0x7d   : > { %2840 = vmatpush3.bf16.msra.mxu0 %v3055_v9  ;;  %2745 = vmatprep.subr.bf16.mxu1 %v3057_v10  ;;  %v2488_v9 = vld [vmem:[%s3176_s16 + $0x20] sm:$0xf]  ;;  %v1830_v16 = vshrl.u32 %v2486_v8, 16  ;;  %v1833_v17 = vshll.u32 %v2486_v8, 16 }
  0x7e   : > { %2841 = vmatprep.subr.bf16.mxu0 %v3059_v11  ;;  %v1844_v18 = vshrl.u32 %v2488_v9, 16  ;;  %v1847_v19 = vshll.u32 %v2488_v9, 16  ;;  %v2526_v9 = vld [vmem:[%s3508_s2] ss:$0 sm:$0xff] }
  0x7f   : > { %v1832_v26 = vrot.slane %v1830_v16, 4  ;;  %v1835_v27 = vrot.slane %v1833_v17, 5 }
  0x80   : > { %2746 = vmatpush3.bf16.msra.mxu1 %v3057_v10  ;;  %v2516_v10 = vcombine.low %v1870_v2, %v1884_v4  ;;  %v1846_v28 = vrot.slane %v1844_v18, 4  ;;  %v1849_v29 = vrot.slane %v1847_v19, 5 }
  0x81   : > { %2842 = vmatpush3.bf16.msra.mxu0 %v3059_v11  ;;  %2747 = vmatprep.subr.bf16.mxu1 %v3060_v12  ;;  %v1886_v11 = vshrl.u32 %v2494_v5, 16  ;;  %v1836_v38 = vor.u32 %v1835_v27, %v1832_v26 }
  0x82   : > { %2843 = vmatprep.subr.bf16.mxu0 %v3061_v13  ;;  %v1850_v40 = vor.u32 %v1849_v29, %v1846_v28 }
  0x83   : > { %v1888_v22 = vrot.slane %v1886_v11, 4  ;;  %v1837_v47 = vrot.slane %v1836_v38, 4 }
  0x84   : > { %2748 = vmatpush3.bf16.msra.mxu1 %v3060_v12  ;;  %v1889_v12 = vshll.u32 %v2494_v5, 16 }
  0x85   : > { %2844 = vmatpush3.bf16.msra.mxu0 %v3061_v13  ;;  %2877 = vmatprep.subr.bf16.mxu1 %v3066_v14  ;;  %v1900_v13 = vshrl.u32 %v2496_v6, 16 }
  0x86   : > { %2853 = vmatprep.subr.bf16.mxu0 %v3066_v14  ;;  %v1891_v23 = vrot.slane %v1889_v12, 5 }
  0x87   : > { %2750 = vmatmul.mubr.bf16.vlgmr.msra.gmra.mrb[0].mxu1 %v3064_v30  ;;  %v1902_v24 = vrot.slane %v1900_v13, 4  ;;  %v2497_v30 = vld [vmem:[%s3176_s16 + $0x44] sm:$0x1] }
  0x88   : > { %2846 = vmatmul.mubr.bf16.vlgmr.msra.gmra.mrb[0].mxu0 %v3065_v34  ;;  %2885 = vmatpush3.bf16.msra.mxu1 %v3066_v14  ;;  %v1892_v33 = vor.u32 %v1891_v23, %v1888_v22  ;;  %v1895_v34 = vshll.u32 %v2495_v21, 16  ;;  %v1909_v36 = vshll.u32 %v2497_v30, 16 }
  0x89   : > { %2854 = vmatpush3.bf16.msra.mxu0 %v3066_v14  ;;  %2878 = vmatprep.subr.bf16.mxu1 %v3067_v39  ;;  %v1903_v14 = vshll.u32 %v2496_v6, 16 }
  0x8a   : > { %2855 = vmatprep.subr.bf16.mxu0 %v3067_v39  ;;  %2753 = vmatprep.mubr.bf16.mxu1 %v3068_v44  ;;  %v1893_v42 = vrot.slane %v1892_v33, 4  ;;  %v1897_v43 = vrot.slane %v1895_v34, 5  ;;  %v1911_v45 = vrot.slane %v1909_v36, 5 }
  0x8b   : > { %2849 = vmatprep.mubr.bf16.mxu0 %v3069_v49  ;;  %v1905_v25 = vrot.slane %v1903_v14, 5  ;;  %v1851_v49 = vrot.slane %v1850_v40, 4 }
  0x8c   : > { %2886 = vmatpush3.bf16.msra.mxu1 %v3067_v39  ;;  %v1898_v51 = vsel %vm3247_vm2, %v1893_v42, %v1897_v43 }
  0x8d   : > { %2856 = vmatpush3.bf16.msra.mxu0 %v3067_v39  ;;  %2879 = vmatprep.subr.bf16.mxu1 %v3072_v57  ;;  %v1906_v35 = vor.u32 %v1905_v25, %v1902_v24  ;;  %v1839_v39 = vshll.u32 %v2487_v31, 16  ;;  %v1856_v55 = vsel %vm3247_vm2, %v1851_v49, %v1855_v50 }
  0x8e   : > { %2857 = vmatprep.subr.bf16.mxu0 %v3072_v57 }
  0x8f   : > { %2754 = vmatmul.mubr.bf16.gmra.mrb[4].mxu1 %v3070_v61  ;;  %v1907_v44 = vrot.slane %v1906_v35, 4  ;;  %v1841_v48 = vrot.slane %v1839_v39, 5 }
  0x90   : > { %2850 = vmatmul.mubr.bf16.gmra.mrb[4].mxu0 %v3071_v1  ;;  %2887 = vmatpush3.bf16.msra.mxu1 %v3072_v57 }
  0x91   : > { %2858 = vmatpush3.bf16.msra.mxu0 %v3072_v57  ;;  %2880 = vmatprep.subr.bf16.mxu1 %v3073_v3  ;;  %v1912_v52 = vsel %vm3247_vm2, %v1907_v44, %v1911_v45  ;;  %v1842_v54 = vsel %vm3247_vm2, %v1837_v47, %v1841_v48 }
  0x92   : > { %2859 = vmatprep.subr.bf16.mxu0 %v3073_v3  ;;  %2869 = vmatprep.mubr.bf16.mxu0 %v2514_v7  ;;  %v2517_v56 = vcombine.low %v1898_v51, %v1912_v52  ;;  %v2515_v57 = vcombine.low %v1842_v54, %v1856_v55 }
  0x93   : > { %2873 = vmatprep.mubr.bf16.mxu1 %v2516_v10 }
  0x94   : > { %2888 = vmatpush3.bf16.msra.mxu1 %v3073_v3 }
  0x95   : > { %2860 = vmatpush3.bf16.msra.mxu0 %v3073_v3  ;;  %2881 = vmatprep.subr.bf16.mxu1 %v3074_v15 }
  0x96   : > { %2861 = vmatprep.subr.bf16.mxu0 %v3074_v15 }
  0x98   : > { %2889 = vmatpush3.bf16.msra.mxu1 %v3074_v15 }
  0x99   : > { %2862 = vmatpush3.bf16.msra.mxu0 %v3074_v15  ;;  %2882 = vmatprep.subr.bf16.mxu1 %v3075_v20 }
  0x9a   : > { %2863 = vmatprep.subr.bf16.mxu0 %v3075_v20 }
  0x9c   : > { %2890 = vmatpush3.bf16.msra.mxu1 %v3075_v20 }
  0x9d   : > { %2864 = vmatpush3.bf16.msra.mxu0 %v3075_v20  ;;  %2883 = vmatprep.subr.bf16.mxu1 %v3076_v37 }
  0x9e   : > { %2865 = vmatprep.subr.bf16.mxu0 %v3076_v37 }
  0xa0   : > { %2891 = vmatpush3.bf16.msra.mxu1 %v3076_v37 }
  0xa1   : > { %2866 = vmatpush3.bf16.msra.mxu0 %v3076_v37  ;;  %2884 = vmatprep.subr.bf16.mxu1 %v3077_v46 }
  0xa2   : > { %2867 = vmatprep.subr.bf16.mxu0 %v3077_v46 }
  0xa4   : > { %2892 = vmatpush3.bf16.msra.mxu1 %v3077_v46 }
  0xa5   : > { %2868 = vmatpush3.bf16.msra.mxu0 %v3077_v46 }
  0xa7   : > { %2874 = vmatmul.mubr.bf16.vlgmr.msra.gmra.mrb[8].mxu1 %v2517_v56 }
  0xa8   : > { %2870 = vmatmul.mubr.bf16.vlgmr.msra.gmra.mrb[0].mxu0 %v2515_v57 }
 0x15a   : > { %v2751_v58 = vpop.f32.mrb[0].mxu1 }
 0x15b   : > { %v944_v59 = vpop.f32.mrb[1].mxu1 }
 0x15c   : > { %v2752_v60 = vpop.f32.mrb[2].mxu1 }
 0x15d   : > { %v947_v61 = vpop.f32.mrb[3].mxu1 }
 0x162   : > { %v2755_v62 = vpop.f32.mrb[4].mxu1 }
 0x163   : > { %v2851_v63 = vpop.f32.mrb[4].mxu0  ;;  %v960_v0 = vpop.f32.mrb[5].mxu1 }
 0x164   : > { %v2897_v1 = vadd.f32 %v2851_v63, %v2755_v62  ;;  %v1762_v2 = vpop.f32.mrb[5].mxu0  ;;  %v2756_v3 = vpop.f32.mrb[6].mxu1 }
 0x165   : > { %v2899_v4 = vadd.f32 %v1762_v2, %v960_v0  ;;  %v2852_v53 = vpop.f32.mrb[6].mxu0  ;;  %v963_v5 = vpop.f32.mrb[7].mxu1 }
 0x166   : > { %v2901_v6 = vadd.f32 %v2852_v53, %v2756_v3  ;;  %v1765_v7 = vpop.f32.mrb[7].mxu0 }
 0x167   : > { %v2903_v8 = vadd.f32 %v1765_v7, %v963_v5 }
 0x17a   : > { %v2875_v10 = vpop.f32.mrb[8].mxu1 }
 0x17b   : > { %v2871_v11 = vpop.f32.mrb[0].mxu0  ;;  %v2898_v12 = vadd.f32 %v2897_v1, %v2875_v10  ;;  %v2044_v13 = vpop.f32.mrb[9].mxu1 }
 0x17c   : > { %v2893_v14 = vadd.f32 %v2871_v11, %v2751_v58  ;;  %v2028_v15 = vpop.f32.mrb[1].mxu0  ;;  %v2900_v16 = vadd.f32 %v2899_v4, %v2044_v13  ;;  %v2876_v17 = vpop.f32.mrb[10].mxu1 }
 0x17d   : > { %v2080_v18 = vadd.f32 %v2898_v12, %v2526_v9  ;;  %v2894_v19 = vadd.f32 %v2028_v15, %v944_v59  ;;  %v2872_v20 = vpop.f32.mrb[2].mxu0  ;;  %v2902_v21 = vadd.f32 %v2901_v6, %v2876_v17  ;;  %v2047_v22 = vpop.f32.mrb[11].mxu1 }
 0x17e   : > { %v2076_v23 = vadd.f32 %v2893_v14, %v2526_v9  ;;  %v2078_v24 = vadd.f32 %v2900_v16, %v2526_v9  ;;  %v2895_v25 = vadd.f32 %v2872_v20, %v2752_v60  ;;  %v2031_v26 = vpop.f32.mrb[3].mxu0  ;;  %v2904_v27 = vadd.f32 %v2903_v8, %v2047_v22 }
 0x17f   : > { %v2074_v28 = vadd.f32 %v2894_v19, %v2526_v9  ;;  %v2081_v29 = vadd.f32 %v2902_v21, %v2526_v9  ;;  %v2896_v30 = vadd.f32 %v2031_v26, %v947_v61  ;;  %v2088_v33 = vmax.f32 %v2080_v18, 0.0 }
 0x180   : > { %v2077_v31 = vadd.f32 %v2895_v25, %v2526_v9  ;;  %v2079_v32 = vadd.f32 %v2904_v27, %v2526_v9  ;;  %v2084_v36 = vmax.f32 %v2076_v23, 0.0  ;;  %v2086_v37 = vmax.f32 %v2078_v24, 0.0 }
 0x181   : > { %v2089_v34 = vmax.f32 %v2081_v29, 0.0  ;;  %v2075_v35 = vadd.f32 %v2896_v30, %v2526_v9  ;;  %v2082_v40 = vmax.f32 %v2074_v28, 0.0 }
 0x182   : > { %v2085_v38 = vmax.f32 %v2077_v31, 0.0  ;;  %v2087_v39 = vmax.f32 %v2079_v32, 0.0 }
 0x183   : > { %v2548_v41 = vpack.c.bf16 %v2089_v34, %v2088_v33  ;;  %v2083_v42 = vmax.f32 %v2075_v35, 0.0 }
 0x184   : > { %v2538_v43 = vpack.c.bf16 %v2085_v38, %v2084_v36  ;;  %v2543_v44 = vpack.c.bf16 %v2087_v39, %v2086_v37 }
 0x185   : > { %2552 = vst [vmem:[%s192_s8 + $0x18] sm:$0xff] %v2548_v41   ;;  %v2533_v45 = vpack.c.bf16 %v2083_v42, %v2082_v40 }
 0x186   : > { %2550 = vst [vmem:[%s192_s8 + $0x8] sm:$0xff] %v2538_v43   ;;  %2551 = vst [vmem:[%s192_s8 + $0x10] sm:$0xff] %v2543_v44  }
 0x187   : > { %2534 = vst [vmem:[%s192_s8] sm:$0xff] %v2533_v45  }
 0x188 PF: > { %s13_s14 = sadd.s32 1, %s3100_s14   ;;  %s3512_s12 = smov %s3096_s13 }
 0x189   : > { %p10_p5 = scmp.ge.s32.totalorder %s13_s14, 4   ;;  %s3513_s13 = smov %s3515_s15 }
 0x18b   :  { %12 = sbr.rel (!%p10_p5) target bundleno = 2 (0x2), region = 76 }

// kernel: custom_deeplabv3_forward.7
= control target key start
LH: loop header
LB: loop body
LE: loop exit
PB: predicated region body
PF: predicated region fallthrough
CT: control target
= control target key end

     0   :  { %s1791_s12 = smov 0   ;;  %s2018_s0 = inlined_call_operand.vmem [shape: f32[2,4,8,128], index: 0, kind: input, shape index: {}]   ;;  %s2019_s1 = inlined_call_operand.vmem [shape: f32[16,4], index: 1, kind: input, shape index: {}]   ;;  %s2020_s2 = inlined_call_operand.vmem [shape: f32[16,8], index: 2, kind: input, shape index: {}]   ;;  %s2021_s3 = inlined_call_operand.vmem [shape: f32[2,16,16,128], index: 3, kind: output, shape index: {}]  }
   0x1 LB: > { %s1540_s13 = sadd.s32 4294967295, %s1766_s12   ;;  %p1544_p0 = scmp.ge.s32.totalorder %s1766_s12, 1  ;;  %s1766_s12 = sphi %s1791_s12, %s13_s12  }
   0x2   : > { %p137_p1 = scmp.lt.s32.totalorder %s1766_s12, 3 }
   0x4   : > { %p138_p2 = pnand %p1544_p0, %p137_p1 }
   0x5   : > { %p161_p3 = scmp.lt.s32.totalorder (!%p138_p2), %s1540_s13, 1  ;;  %v175_v0 = vld [vmem:[%s2020_s2] sm:$0xff] (!%p138_p2)  ;;  %vm177_vm0 = vcmask (!%p138_p2), 64512   ;;  %v176_v3 = vld [vmem:[%s2020_s2 + $0x8] sm:$0xff] (!%p138_p2)  ;;  %v1768_v6 = vmov (!%p138_p2), 0.0   ;;  %v491_v9 = vlaneseq (!%p138_p2)  ;;  %vm629_vm1 = vcmask (!%p138_p2), 1043456  }
   0x6   : > { %141 = sbr.rel (%p138_p2) target bundleno = 538 (0x21a), region = 32  ;;  %1731 = vmatprep.mubr.msk.f32.mxu0 (!%p138_p2), %vm177_vm0, %v175_v0  ;;  %1736 = vmatprep.mubr.msk.f32.mxu1 (!%p138_p2), %vm177_vm0, %v175_v0  ;;  %v1769_v7 = vmov (!%p138_p2), 1983009808   ;;  %v1770_v10 = vmov (!%p138_p2), 1934713408   ;;  %v484_v57 = vld [vmem:[%s2019_s1] sm:$0xff] (!%p138_p2) }
   0x7   : > { %v489_v8 = vunpack.c.l.s4 (!%p138_p2), %v1769_v7  ;;  %v521_v11 = vunpack.c.l.s4 (!%p138_p2), %v1770_v10  ;;  %v492_v13 = vshrl.u32 (!%p138_p2), %v491_v9, 7  ;;  %vm622_vm2 = vcmask (!%p138_p2), 31744   ;;  %v485_v62 = vld [vmem:[%s2019_s1 + $0x8] sm:$0xff] (!%p138_p2) }
   0x9   : > { %v490_v12 = vunpack.c.0.s8 (!%p138_p2), %v489_v8  ;;  %v522_v16 = vunpack.c.0.s8 (!%p138_p2), %v521_v11 }
   0xb   : > { %v493_v19 = vsub.s32 (!%p138_p2), %v490_v12, %v492_v13  ;;  %v525_v22 = vsub.s32 (!%p138_p2), %v522_v16, %v492_v13 }
   0xd   : > { %s2023_s13 = smov (!%p161_p3, %s1540_s13), 1 }
   0xe   : > { %s1715_s16 = sshll.u32 %s2023_s13, 5  ;;  %s1716_s26 = sshll.u32 %s2023_s13, 8 }
   0xf   : > { %s165_s19 = scalar_lea.vmem %s2018_s0, %s1715_s16  ;;  %s1885_s29 = scalar_lea.vmem %s2021_s3, %s1716_s26 }
  0x10   : > { %v171_v1 = vld [vmem:[%s165_s19] sm:$0xff]  ;;  %v172_v2 = vld [vmem:[%s165_s19 + $0x8] sm:$0xff]  ;;  %v173_v4 = vld [vmem:[%s165_s19 + $0x10] sm:$0xff] }
  0x11   : > { %1729 = vmatprep.subr.mxu0 %v171_v1  ;;  %1734 = vmatprep.subr.mxu1 %v172_v2  ;;  %v174_v5 = vld [vmem:[%s165_s19 + $0x18] sm:$0xff] }
  0x12   : > { %1730 = vmatpush3.msra.mxu0 %v171_v1  ;;  %1735 = vmatpush3.msra.mxu1 %v172_v2 }
  0x13   : > { %1732 = vmatmul.mubr.msk.f32.vlgmr.msra.gmra.mrb[0].mxu0 %vm177_vm0, %v176_v3  ;;  %1737 = vmatmul.mubr.msk.f32.vlgmr.msra.gmra.mrb[0].mxu1 %vm177_vm0, %v176_v3 }
  0x14   : > { %1739 = vmatprep.subr.mxu0 %v173_v4  ;;  %1744 = vmatprep.subr.mxu1 %v174_v5 }
  0x15   : > { %1740 = vmatpush3.msra.mxu0 %v173_v4  ;;  %1741 = vmatprep.mubr.msk.f32.mxu0 %vm177_vm0, %v175_v0 }
  0x16   : > { %1745 = vmatpush3.msra.mxu1 %v174_v5  ;;  %1746 = vmatprep.mubr.msk.f32.mxu1 %vm177_vm0, %v175_v0 }
  0x17   : > { %1742 = vmatmul.mubr.msk.f32.vlgmr.msra.gmra.mrb[2].mxu0 %vm177_vm0, %v176_v3  ;;  %1747 = vmatmul.mubr.msk.f32.vlgmr.msra.gmra.mrb[2].mxu1 %vm177_vm0, %v176_v3 }
  0x18   : > { %742 = vmatprep.mubr.f32.mxu0 %v1768_v6  ;;  %819 = vmatprep.mubr.f32.mxu1 %v1768_v6 }
  0xe6   : > { %v1733_v14 = vpop.f32.mrb[0].mxu0  ;;  %v1738_v15 = vpop.f32.mrb[0].mxu1 }
  0xe7   : > { %v250_v17 = vpop.f32.mrb[1].mxu0  ;;  %v325_v18 = vpop.f32.mrb[1].mxu1 }
  0xea   : > { %v1743_v20 = vpop.f32.mrb[2].mxu0  ;;  %v1748_v21 = vpop.f32.mrb[2].mxu1 }
  0xeb   : > { %v554_v23 = vcombine.low %v1733_v14, %v1743_v20  ;;  %v555_v24 = vcombine.high %v1733_v14, %v1743_v20  ;;  %v570_v25 = vcombine.low %v1738_v15, %v1748_v21  ;;  %v571_v26 = vcombine.high %v1738_v15, %v1748_v21  ;;  %v400_v27 = vpop.f32.mrb[3].mxu0  ;;  %v475_v28 = vpop.f32.mrb[3].mxu1 }
  0xec   : > { %v486_v29 = vcombine.low %v250_v17, %v400_v27  ;;  %v487_v30 = vcombine.high %v250_v17, %v400_v27  ;;  %v502_v31 = vcombine.low %v325_v18, %v475_v28  ;;  %v503_v32 = vcombine.high %v325_v18, %v475_v28 }
  0xed   : > { %v562_v33 = vrot.slane %v554_v23, %v493_v19  ;;  %v569_v34 = vrot.slane %v555_v24, %v493_v19  ;;  %v578_v35 = vrot.slane %v570_v25, %v493_v19  ;;  %v585_v36 = vrot.slane %v571_v26, %v493_v19 }
  0xee   : > { %v494_v37 = vrot.slane %v486_v29, %v493_v19  ;;  %v501_v38 = vrot.slane %v487_v30, %v493_v19  ;;  %v510_v39 = vrot.slane %v502_v31, %v493_v19  ;;  %v517_v40 = vrot.slane %v503_v32, %v493_v19 }
  0xef   : > { %v586_v41 = vcombine.low %v562_v33, %v578_v35  ;;  %v587_v42 = vcombine.high %v562_v33, %v578_v35  ;;  %v602_v43 = vcombine.low %v569_v34, %v585_v36  ;;  %v603_v44 = vcombine.high %v569_v34, %v585_v36 }
  0xf0   : > { %v518_v45 = vcombine.low %v494_v37, %v510_v39  ;;  %v519_v46 = vcombine.high %v494_v37, %v510_v39  ;;  %v534_v47 = vcombine.low %v501_v38, %v517_v40  ;;  %v535_v48 = vcombine.high %v501_v38, %v517_v40 }
  0xf1   : > { %v594_v55 = vrot.slane %v586_v41, %v525_v22  ;;  %v601_v56 = vrot.slane %v587_v42, %v525_v22  ;;  %v610_v63 = vrot.slane %v602_v43, %v525_v22  ;;  %v617_v0 = vrot.slane %v603_v44, %v525_v22 }
  0xf2   : > { %v526_v49 = vrot.slane %v518_v45, %v525_v22  ;;  %v533_v50 = vrot.slane %v519_v46, %v525_v22  ;;  %v542_v51 = vrot.slane %v534_v47, %v525_v22  ;;  %v549_v52 = vrot.slane %v535_v48, %v525_v22 }
  0xf3   : > { %v618_v60 = vcombine.high %v594_v55, %v1768_v6  ;;  %v619_v61 = vcombine.high %v601_v56, %v1768_v6  ;;  %v620_v1 = vcombine.high %v610_v63, %v1768_v6  ;;  %v621_v2 = vcombine.high %v617_v0, %v1768_v6 }
  0xf4   : > { %v550_v53 = vcombine.high %v526_v49, %v1768_v6  ;;  %v551_v54 = vcombine.high %v533_v50, %v1768_v6  ;;  %v552_v58 = vcombine.high %v542_v51, %v1768_v6  ;;  %v553_v59 = vcombine.high %v549_v52, %v1768_v6 }
  0xf6   : > { %1557 = vmatprep.subr.msk.mxu0 %vm629_vm1, %v550_v53  ;;  %1561 = vmatprep.subr.msk.mxu1 %vm629_vm1, %v551_v54 }
  0xf7   : > { %1558 = vmatpush1.msk.msra.mxu0 %vm629_vm1, %v526_v49  ;;  %1562 = vmatpush1.msk.msra.mxu1 %vm629_vm1, %v533_v50 }
  0xf8   : > { %1559 = vmatmul.mubr.msk.f32.vlgmr.msra.gmra.mrb[4].mxu0 %vm622_vm2, %v484_v57  ;;  %1563 = vmatmul.mubr.msk.f32.vlgmr.msra.gmra.mrb[4].mxu1 %vm622_vm2, %v484_v57 }
  0xf9   : > { %1565 = vmatprep.subr.msk.mxu0 %vm629_vm1, %v552_v58  ;;  %1569 = vmatprep.subr.msk.mxu1 %vm629_vm1, %v553_v59 }
  0xfa   : > { %1566 = vmatpush1.msk.msra.mxu0 %vm629_vm1, %v542_v51  ;;  %1570 = vmatpush1.msk.msra.mxu1 %vm629_vm1, %v549_v52 }
  0xfb   : > { %1573 = vmatprep.subr.msk.mxu0 %vm629_vm1, %v618_v60  ;;  %1577 = vmatprep.subr.msk.mxu1 %vm629_vm1, %v619_v61 }
  0xfc   : > { %748 = vmatprep.mubr.f32.mxu0 %v1768_v6  ;;  %825 = vmatprep.mubr.f32.mxu1 %v1768_v6 }
  0xfd   : > { %1560 = vmatmul.mubr.msk.f32.gmra.mrb[6].mxu0 %vm622_vm2, %v485_v62  ;;  %1564 = vmatmul.mubr.msk.f32.gmra.mrb[6].mxu1 %vm622_vm2, %v485_v62 }
  0xfe   : > { %896 = vmatprep.mubr.f32.mxu0 %v1768_v6  ;;  %973 = vmatprep.mubr.f32.mxu1 %v1768_v6 }
 0x101   : > { %1567 = vmatmul.mubr.msk.f32.vlgmr.msra.gmra.mrb[8].mxu0 %vm622_vm2, %v484_v57  ;;  %1571 = vmatmul.mubr.msk.f32.vlgmr.msra.gmra.mrb[8].mxu1 %vm622_vm2, %v484_v57 }
 0x102   : > { %1574 = vmatpush1.msk.msra.mxu0 %vm629_vm1, %v594_v55  ;;  %1578 = vmatpush1.msk.msra.mxu1 %vm629_vm1, %v601_v56 }
 0x103   : > { %1581 = vmatprep.subr.msk.mxu0 %vm629_vm1, %v620_v1  ;;  %1585 = vmatprep.subr.msk.mxu1 %vm629_vm1, %v621_v2 }
 0x104   : > { %902 = vmatprep.mubr.f32.mxu0 %v1768_v6  ;;  %979 = vmatprep.mubr.f32.mxu1 %v1768_v6 }
 0x105   : > { %1568 = vmatmul.mubr.msk.f32.gmra.mrb[10].mxu0 %vm622_vm2, %v485_v62  ;;  %1572 = vmatmul.mubr.msk.f32.gmra.mrb[10].mxu1 %vm622_vm2, %v485_v62 }
 0x106   : > { %1050 = vmatprep.mubr.f32.mxu0 %v1768_v6  ;;  %1127 = vmatprep.mubr.f32.mxu1 %v1768_v6 }
 0x109   : > { %1575 = vmatmul.mubr.msk.f32.vlgmr.msra.gmra.mrb[12].mxu0 %vm622_vm2, %v484_v57  ;;  %1579 = vmatmul.mubr.msk.f32.vlgmr.msra.gmra.mrb[12].mxu1 %vm622_vm2, %v484_v57 }
 0x10a   : > { %1582 = vmatpush1.msk.msra.mxu0 %vm629_vm1, %v610_v63  ;;  %1586 = vmatpush1.msk.msra.mxu1 %vm629_vm1, %v617_v0 }
 0x10b   : > { %1056 = vmatprep.mubr.f32.mxu0 %v1768_v6  ;;  %1133 = vmatprep.mubr.f32.mxu1 %v1768_v6 }
 0x10d   : > { %1576 = vmatmul.mubr.msk.f32.gmra.mrb[14].mxu0 %vm622_vm2, %v485_v62  ;;  %1580 = vmatmul.mubr.msk.f32.gmra.mrb[14].mxu1 %vm622_vm2, %v485_v62 }
 0x10e   : > { %1204 = vmatprep.mubr.f32.mxu0 %v1768_v6  ;;  %1281 = vmatprep.mubr.f32.mxu1 %v1768_v6 }
 0x111   : > { %1583 = vmatmul.mubr.msk.f32.vlgmr.msra.gmra.mrb[16].mxu0 %vm622_vm2, %v484_v57  ;;  %1587 = vmatmul.mubr.msk.f32.vlgmr.msra.gmra.mrb[16].mxu1 %vm622_vm2, %v484_v57 }
 0x112   : > { %1210 = vmatprep.mubr.f32.mxu0 %v1768_v6  ;;  %1287 = vmatprep.mubr.f32.mxu1 %v1768_v6 }
 0x115   : > { %1584 = vmatmul.mubr.msk.f32.gmra.mrb[18].mxu0 %vm622_vm2, %v485_v62  ;;  %1588 = vmatmul.mubr.msk.f32.gmra.mrb[18].mxu1 %vm622_vm2, %v485_v62 }
 0x1cb   : > { %v744_v3 = vpop.f32.mrb[4].mxu0  ;;  %v821_v4 = vpop.f32.mrb[4].mxu1 }
 0x1cc   : > { %1296 = vst [vmem:[%s1885_s29] ss:$16 sm:$0x3] %v744_v3  ;;  %1297 = vst [vmem:[%s1885_s29] ss:$16 sm:$0xc] %v744_v3  ;;  %v746_v5 = vpop.f32.mrb[5].mxu0  ;;  %v823_v6 = vpop.f32.mrb[5].mxu1 }
 0x1cd   : > { %1298 = vst [vmem:[%s1885_s29] ss:$16 sm:$0x30] %v744_v3  ;;  %1299 = vst [vmem:[%s1885_s29] ss:$16 sm:$0xc0] %v744_v3 }
 0x1ce   : > { %1601 = vst [vmem:[%s1885_s29 + $0x2] ss:$16 sm:$0x3] %v821_v4  ;;  %1602 = vst [vmem:[%s1885_s29 + $0x2] ss:$16 sm:$0xc] %v821_v4 }
 0x1cf   : > { %1603 = vst [vmem:[%s1885_s29 + $0x2] ss:$16 sm:$0x30] %v821_v4  ;;  %1604 = vst [vmem:[%s1885_s29 + $0x2] ss:$16 sm:$0xc0] %v821_v4 }
 0x1d0   : > { %1593 = vst [vmem:[%s1885_s29 + $0x1] ss:$16 sm:$0x3] %v746_v5  ;;  %1594 = vst [vmem:[%s1885_s29 + $0x1] ss:$16 sm:$0xc] %v746_v5 }
 0x1d1   : > { %1595 = vst [vmem:[%s1885_s29 + $0x1] ss:$16 sm:$0x30] %v746_v5  ;;  %1596 = vst [vmem:[%s1885_s29 + $0x1] ss:$16 sm:$0xc0] %v746_v5 }
 0x1d2   : > { %1609 = vst [vmem:[%s1885_s29 + $0x3] ss:$16 sm:$0x3] %v823_v6  ;;  %1610 = vst [vmem:[%s1885_s29 + $0x3] ss:$16 sm:$0xc] %v823_v6 }
 0x1d3   : > { %1611 = vst [vmem:[%s1885_s29 + $0x3] ss:$16 sm:$0x30] %v823_v6  ;;  %1612 = vst [vmem:[%s1885_s29 + $0x3] ss:$16 sm:$0xc0] %v823_v6 }
 0x1d4   : > { %v750_v7 = vpop.f32.mrb[6].mxu0  ;;  %v827_v8 = vpop.f32.mrb[6].mxu1 }
 0x1d5   : > { %1589 = vst [vmem:[%s1885_s29 + $0x80] ss:$16 sm:$0x3] %v750_v7  ;;  %1590 = vst [vmem:[%s1885_s29 + $0x80] ss:$16 sm:$0xc] %v750_v7 }
 0x1d6   : > { %1591 = vst [vmem:[%s1885_s29 + $0x80] ss:$16 sm:$0x30] %v750_v7  ;;  %1592 = vst [vmem:[%s1885_s29 + $0x80] ss:$16 sm:$0xc0] %v750_v7 }
 0x1d7   : > { %1605 = vst [vmem:[%s1885_s29 + $0x82] ss:$16 sm:$0x3] %v827_v8  ;;  %1606 = vst [vmem:[%s1885_s29 + $0x82] ss:$16 sm:$0xc] %v827_v8 }
 0x1d8   : > { %1607 = vst [vmem:[%s1885_s29 + $0x82] ss:$16 sm:$0x30] %v827_v8  ;;  %1608 = vst [vmem:[%s1885_s29 + $0x82] ss:$16 sm:$0xc0] %v827_v8 }
 0x1d9   : > { %v752_v9 = vpop.f32.mrb[7].mxu0  ;;  %v829_v10 = vpop.f32.mrb[7].mxu1 }
 0x1da   : > { %1597 = vst [vmem:[%s1885_s29 + $0x81] ss:$16 sm:$0x3] %v752_v9  ;;  %1598 = vst [vmem:[%s1885_s29 + $0x81] ss:$16 sm:$0xc] %v752_v9 }
 0x1db   : > { %1599 = vst [vmem:[%s1885_s29 + $0x81] ss:$16 sm:$0x30] %v752_v9  ;;  %1600 = vst [vmem:[%s1885_s29 + $0x81] ss:$16 sm:$0xc0] %v752_v9 }
 0x1dc   : > { %1613 = vst [vmem:[%s1885_s29 + $0x83] ss:$16 sm:$0x3] %v829_v10  ;;  %1614 = vst [vmem:[%s1885_s29 + $0x83] ss:$16 sm:$0xc] %v829_v10 }
 0x1dd   : > { %1615 = vst [vmem:[%s1885_s29 + $0x83] ss:$16 sm:$0x30] %v829_v10  ;;  %1616 = vst [vmem:[%s1885_s29 + $0x83] ss:$16 sm:$0xc0] %v829_v10 }
 0x1de   : > { %v898_v11 = vpop.f32.mrb[8].mxu0  ;;  %v975_v12 = vpop.f32.mrb[8].mxu1 }
 0x1df   : > { %1617 = vst [vmem:[%s1885_s29 + $0x4] ss:$16 sm:$0x3] %v898_v11  ;;  %1618 = vst [vmem:[%s1885_s29 + $0x4] ss:$16 sm:$0xc] %v898_v11 }
 0x1e0   : > { %1619 = vst [vmem:[%s1885_s29 + $0x4] ss:$16 sm:$0x30] %v898_v11  ;;  %1620 = vst [vmem:[%s1885_s29 + $0x4] ss:$16 sm:$0xc0] %v898_v11 }
 0x1e1   : > { %1633 = vst [vmem:[%s1885_s29 + $0x6] ss:$16 sm:$0x3] %v975_v12  ;;  %1634 = vst [vmem:[%s1885_s29 + $0x6] ss:$16 sm:$0xc] %v975_v12 }
 0x1e2   : > { %1635 = vst [vmem:[%s1885_s29 + $0x6] ss:$16 sm:$0x30] %v975_v12  ;;  %1636 = vst [vmem:[%s1885_s29 + $0x6] ss:$16 sm:$0xc0] %v975_v12 }
 0x1e3   : > { %v900_v13 = vpop.f32.mrb[9].mxu0  ;;  %v977_v14 = vpop.f32.mrb[9].mxu1 }
 0x1e4   : > { %1625 = vst [vmem:[%s1885_s29 + $0x5] ss:$16 sm:$0x3] %v900_v13  ;;  %1626 = vst [vmem:[%s1885_s29 + $0x5] ss:$16 sm:$0xc] %v900_v13 }
 0x1e5   : > { %1627 = vst [vmem:[%s1885_s29 + $0x5] ss:$16 sm:$0x30] %v900_v13  ;;  %1628 = vst [vmem:[%s1885_s29 + $0x5] ss:$16 sm:$0xc0] %v900_v13 }
 0x1e6   : > { %1641 = vst [vmem:[%s1885_s29 + $0x7] ss:$16 sm:$0x3] %v977_v14  ;;  %1642 = vst [vmem:[%s1885_s29 + $0x7] ss:$16 sm:$0xc] %v977_v14 }
 0x1e7   : > { %1643 = vst [vmem:[%s1885_s29 + $0x7] ss:$16 sm:$0x30] %v977_v14  ;;  %1644 = vst [vmem:[%s1885_s29 + $0x7] ss:$16 sm:$0xc0] %v977_v14 }
 0x1e8   : > { %v904_v15 = vpop.f32.mrb[10].mxu0  ;;  %v981_v16 = vpop.f32.mrb[10].mxu1 }
 0x1e9   : > { %1621 = vst [vmem:[%s1885_s29 + $0x84] ss:$16 sm:$0x3] %v904_v15  ;;  %1622 = vst [vmem:[%s1885_s29 + $0x84] ss:$16 sm:$0xc] %v904_v15 }
 0x1ea   : > { %1623 = vst [vmem:[%s1885_s29 + $0x84] ss:$16 sm:$0x30] %v904_v15  ;;  %1624 = vst [vmem:[%s1885_s29 + $0x84] ss:$16 sm:$0xc0] %v904_v15 }
 0x1eb   : > { %1637 = vst [vmem:[%s1885_s29 + $0x86] ss:$16 sm:$0x3] %v981_v16  ;;  %1638 = vst [vmem:[%s1885_s29 + $0x86] ss:$16 sm:$0xc] %v981_v16 }
 0x1ec   : > { %1639 = vst [vmem:[%s1885_s29 + $0x86] ss:$16 sm:$0x30] %v981_v16  ;;  %1640 = vst [vmem:[%s1885_s29 + $0x86] ss:$16 sm:$0xc0] %v981_v16 }
 0x1ed   : > { %v906_v17 = vpop.f32.mrb[11].mxu0  ;;  %v983_v18 = vpop.f32.mrb[11].mxu1 }
 0x1ee   : > { %1629 = vst [vmem:[%s1885_s29 + $0x85] ss:$16 sm:$0x3] %v906_v17  ;;  %1630 = vst [vmem:[%s1885_s29 + $0x85] ss:$16 sm:$0xc] %v906_v17 }
 0x1ef   : > { %1631 = vst [vmem:[%s1885_s29 + $0x85] ss:$16 sm:$0x30] %v906_v17  ;;  %1632 = vst [vmem:[%s1885_s29 + $0x85] ss:$16 sm:$0xc0] %v906_v17 }
 0x1f0   : > { %1645 = vst [vmem:[%s1885_s29 + $0x87] ss:$16 sm:$0x3] %v983_v18  ;;  %1646 = vst [vmem:[%s1885_s29 + $0x87] ss:$16 sm:$0xc] %v983_v18 }
 0x1f1   : > { %1647 = vst [vmem:[%s1885_s29 + $0x87] ss:$16 sm:$0x30] %v983_v18  ;;  %1648 = vst [vmem:[%s1885_s29 + $0x87] ss:$16 sm:$0xc0] %v983_v18 }
 0x1f2   : > { %v1052_v19 = vpop.f32.mrb[12].mxu0  ;;  %v1129_v20 = vpop.f32.mrb[12].mxu1 }
 0x1f3   : > { %1649 = vst [vmem:[%s1885_s29 + $0x8] ss:$16 sm:$0x3] %v1052_v19  ;;  %1650 = vst [vmem:[%s1885_s29 + $0x8] ss:$16 sm:$0xc] %v1052_v19 }
 0x1f4   : > { %1651 = vst [vmem:[%s1885_s29 + $0x8] ss:$16 sm:$0x30] %v1052_v19  ;;  %1652 = vst [vmem:[%s1885_s29 + $0x8] ss:$16 sm:$0xc0] %v1052_v19 }
 0x1f5   : > { %1665 = vst [vmem:[%s1885_s29 + $0xa] ss:$16 sm:$0x3] %v1129_v20  ;;  %1666 = vst [vmem:[%s1885_s29 + $0xa] ss:$16 sm:$0xc] %v1129_v20 }
 0x1f6   : > { %1667 = vst [vmem:[%s1885_s29 + $0xa] ss:$16 sm:$0x30] %v1129_v20  ;;  %1668 = vst [vmem:[%s1885_s29 + $0xa] ss:$16 sm:$0xc0] %v1129_v20 }
 0x1f7   : > { %v1054_v21 = vpop.f32.mrb[13].mxu0  ;;  %v1131_v22 = vpop.f32.mrb[13].mxu1 }
 0x1f8   : > { %1657 = vst [vmem:[%s1885_s29 + $0x9] ss:$16 sm:$0x3] %v1054_v21  ;;  %1658 = vst [vmem:[%s1885_s29 + $0x9] ss:$16 sm:$0xc] %v1054_v21 }
 0x1f9   : > { %1659 = vst [vmem:[%s1885_s29 + $0x9] ss:$16 sm:$0x30] %v1054_v21  ;;  %1660 = vst [vmem:[%s1885_s29 + $0x9] ss:$16 sm:$0xc0] %v1054_v21 }
 0x1fa   : > { %1673 = vst [vmem:[%s1885_s29 + $0xb] ss:$16 sm:$0x3] %v1131_v22  ;;  %1674 = vst [vmem:[%s1885_s29 + $0xb] ss:$16 sm:$0xc] %v1131_v22 }
 0x1fb   : > { %1675 = vst [vmem:[%s1885_s29 + $0xb] ss:$16 sm:$0x30] %v1131_v22  ;;  %1676 = vst [vmem:[%s1885_s29 + $0xb] ss:$16 sm:$0xc0] %v1131_v22 }
 0x1fc   : > { %v1058_v23 = vpop.f32.mrb[14].mxu0  ;;  %v1135_v24 = vpop.f32.mrb[14].mxu1 }
 0x1fd   : > { %1653 = vst [vmem:[%s1885_s29 + $0x88] ss:$16 sm:$0x3] %v1058_v23  ;;  %1654 = vst [vmem:[%s1885_s29 + $0x88] ss:$16 sm:$0xc] %v1058_v23 }
 0x1fe   : > { %1655 = vst [vmem:[%s1885_s29 + $0x88] ss:$16 sm:$0x30] %v1058_v23  ;;  %1656 = vst [vmem:[%s1885_s29 + $0x88] ss:$16 sm:$0xc0] %v1058_v23 }
 0x1ff   : > { %1669 = vst [vmem:[%s1885_s29 + $0x8a] ss:$16 sm:$0x3] %v1135_v24  ;;  %1670 = vst [vmem:[%s1885_s29 + $0x8a] ss:$16 sm:$0xc] %v1135_v24 }
 0x200   : > { %1671 = vst [vmem:[%s1885_s29 + $0x8a] ss:$16 sm:$0x30] %v1135_v24  ;;  %1672 = vst [vmem:[%s1885_s29 + $0x8a] ss:$16 sm:$0xc0] %v1135_v24 }
 0x201   : > { %v1060_v25 = vpop.f32.mrb[15].mxu0  ;;  %v1137_v26 = vpop.f32.mrb[15].mxu1 }
 0x202   : > { %1661 = vst [vmem:[%s1885_s29 + $0x89] ss:$16 sm:$0x3] %v1060_v25  ;;  %1662 = vst [vmem:[%s1885_s29 + $0x89] ss:$16 sm:$0xc] %v1060_v25 }
 0x203   : > { %1663 = vst [vmem:[%s1885_s29 + $0x89] ss:$16 sm:$0x30] %v1060_v25  ;;  %1664 = vst [vmem:[%s1885_s29 + $0x89] ss:$16 sm:$0xc0] %v1060_v25 }
 0x204   : > { %1677 = vst [vmem:[%s1885_s29 + $0x8b] ss:$16 sm:$0x3] %v1137_v26  ;;  %1678 = vst [vmem:[%s1885_s29 + $0x8b] ss:$16 sm:$0xc] %v1137_v26 }
 0x205   : > { %1679 = vst [vmem:[%s1885_s29 + $0x8b] ss:$16 sm:$0x30] %v1137_v26  ;;  %1680 = vst [vmem:[%s1885_s29 + $0x8b] ss:$16 sm:$0xc0] %v1137_v26 }
 0x206   : > { %v1206_v27 = vpop.f32.mrb[16].mxu0  ;;  %v1283_v28 = vpop.f32.mrb[16].mxu1 }
 0x207   : > { %1681 = vst [vmem:[%s1885_s29 + $0xc] ss:$16 sm:$0x3] %v1206_v27  ;;  %1682 = vst [vmem:[%s1885_s29 + $0xc] ss:$16 sm:$0xc] %v1206_v27 }
 0x208   : > { %1683 = vst [vmem:[%s1885_s29 + $0xc] ss:$16 sm:$0x30] %v1206_v27  ;;  %1684 = vst [vmem:[%s1885_s29 + $0xc] ss:$16 sm:$0xc0] %v1206_v27 }
 0x209   : > { %1697 = vst [vmem:[%s1885_s29 + $0xe] ss:$16 sm:$0x3] %v1283_v28  ;;  %1698 = vst [vmem:[%s1885_s29 + $0xe] ss:$16 sm:$0xc] %v1283_v28 }
 0x20a   : > { %1699 = vst [vmem:[%s1885_s29 + $0xe] ss:$16 sm:$0x30] %v1283_v28  ;;  %1700 = vst [vmem:[%s1885_s29 + $0xe] ss:$16 sm:$0xc0] %v1283_v28 }
 0x20b   : > { %v1208_v29 = vpop.f32.mrb[17].mxu0  ;;  %v1285_v30 = vpop.f32.mrb[17].mxu1 }
 0x20c   : > { %1689 = vst [vmem:[%s1885_s29 + $0xd] ss:$16 sm:$0x3] %v1208_v29  ;;  %1690 = vst [vmem:[%s1885_s29 + $0xd] ss:$16 sm:$0xc] %v1208_v29 }
 0x20d   : > { %1691 = vst [vmem:[%s1885_s29 + $0xd] ss:$16 sm:$0x30] %v1208_v29  ;;  %1692 = vst [vmem:[%s1885_s29 + $0xd] ss:$16 sm:$0xc0] %v1208_v29 }
 0x20e   : > { %1705 = vst [vmem:[%s1885_s29 + $0xf] ss:$16 sm:$0x3] %v1285_v30  ;;  %1706 = vst [vmem:[%s1885_s29 + $0xf] ss:$16 sm:$0xc] %v1285_v30 }
 0x20f   : > { %1707 = vst [vmem:[%s1885_s29 + $0xf] ss:$16 sm:$0x30] %v1285_v30  ;;  %1708 = vst [vmem:[%s1885_s29 + $0xf] ss:$16 sm:$0xc0] %v1285_v30 }
 0x210   : > { %v1212_v31 = vpop.f32.mrb[18].mxu0  ;;  %v1289_v32 = vpop.f32.mrb[18].mxu1 }
 0x211   : > { %1685 = vst [vmem:[%s1885_s29 + $0x8c] ss:$16 sm:$0x3] %v1212_v31  ;;  %1686 = vst [vmem:[%s1885_s29 + $0x8c] ss:$16 sm:$0xc] %v1212_v31 }
 0x212   : > { %1687 = vst [vmem:[%s1885_s29 + $0x8c] ss:$16 sm:$0x30] %v1212_v31  ;;  %1688 = vst [vmem:[%s1885_s29 + $0x8c] ss:$16 sm:$0xc0] %v1212_v31 }
 0x213   : > { %1701 = vst [vmem:[%s1885_s29 + $0x8e] ss:$16 sm:$0x3] %v1289_v32  ;;  %1702 = vst [vmem:[%s1885_s29 + $0x8e] ss:$16 sm:$0xc] %v1289_v32 }
 0x214   : > { %1703 = vst [vmem:[%s1885_s29 + $0x8e] ss:$16 sm:$0x30] %v1289_v32  ;;  %1704 = vst [vmem:[%s1885_s29 + $0x8e] ss:$16 sm:$0xc0] %v1289_v32 }
 0x215   : > { %v1214_v33 = vpop.f32.mrb[19].mxu0  ;;  %v1291_v34 = vpop.f32.mrb[19].mxu1 }
 0x216   : > { %1693 = vst [vmem:[%s1885_s29 + $0x8d] ss:$16 sm:$0x3] %v1214_v33  ;;  %1694 = vst [vmem:[%s1885_s29 + $0x8d] ss:$16 sm:$0xc] %v1214_v33 }
 0x217   : > { %1695 = vst [vmem:[%s1885_s29 + $0x8d] ss:$16 sm:$0x30] %v1214_v33  ;;  %1696 = vst [vmem:[%s1885_s29 + $0x8d] ss:$16 sm:$0xc0] %v1214_v33 }
 0x218   : > { %1709 = vst [vmem:[%s1885_s29 + $0x8f] ss:$16 sm:$0x3] %v1291_v34  ;;  %1710 = vst [vmem:[%s1885_s29 + $0x8f] ss:$16 sm:$0xc] %v1291_v34 }
 0x219   : > { %1711 = vst [vmem:[%s1885_s29 + $0x8f] ss:$16 sm:$0x30] %v1291_v34  ;;  %1712 = vst [vmem:[%s1885_s29 + $0x8f] ss:$16 sm:$0xc0] %v1291_v34 }
 0x21a PF: > { %s13_s12 = sadd.s32 1, %s1766_s12  }
 0x21b   : > { %p10_p4 = scmp.ge.s32.totalorder %s13_s12, 4  }
 0x21d   :  { %12 = sbr.rel (!%p10_p4) target bundleno = 1 (0x1), region = 93 }

// kernel: custom_deeplabv3_forward.6
= control target key start
LH: loop header
LB: loop body
LE: loop exit
PB: predicated region body
PF: predicated region fallthrough
CT: control target
= control target key end

     0   :  { %s2700_s18 = smov 0   ;;  %s2702_s19 = smov 0   ;;  %s3164_s0 = inlined_call_operand.vmem [shape: bf16[2,1,6,10,128], index: 0, kind: input, shape index: {}]   ;;  %s3165_s1 = inlined_call_operand.vmem [shape: bf16[9,128,128], index: 1, kind: input, shape index: {}]   ;;  %s3166_s2 = inlined_call_operand.vmem [shape: f32[1,128], index: 2, kind: input, shape index: {}]   ;;  %s3167_s3 = inlined_call_operand.vmem [shape: bf16[128,128], index: 3, kind: input, shape index: {}]   ;;  %s3168_s4 = inlined_call_operand.vmem [shape: f32[1,128], index: 4, kind: input, shape index: {}]   ;;  %s3169_s5 = inlined_call_operand.vmem [shape: f32[2,4,8,128], index: 5, kind: output, shape index: {}]  }
   0x1   :  { %s2704_s20 = smov 0  }
   0x2 LB: > { %s27_s21 = sadd.s32 1, %s2664_s19  ;;  %p1924_p0 = scmp.ge.s32.totalorder %s2668_s20, 1  ;;  %s2668_s20 = sphi %s2704_s20, %s15_s20   ;;  %s2664_s19 = sphi %s2702_s19, %s3175_s19   ;;  %s2660_s18 = sphi %s2700_s18, %s3174_s18  }
   0x3   : > { %p29_p1 = scmp.ge.s32.totalorder %s27_s21, 2  ;;  %p201_p2 = scmp.lt.s32.totalorder %s2668_s20, 3 }
   0x5   : > { %s3177_s21 = smov (%p29_p1, %s27_s21), 0  ;;  %p202_p3 = pnand %p1924_p0, %p201_p2 }
   0x6   : > { %v2560_v0 = vld [vmem:[%s3165_s1 + $0x40] sm:$0xff] (!%p202_p3)   ;;  %p233_p4 = scmp.lt.s32.totalorder (!%p202_p3), %s2660_s18, 1  ;;  %v2562_v2 = vld [vmem:[%s3165_s1 + $0x48] sm:$0xff] (!%p202_p3)   ;;  %v2564_v4 = vld [vmem:[%s3165_s1 + $0x50] sm:$0xff] (!%p202_p3)   ;;  %vm277_vm0 = vsmask.f32 (!%p202_p3), 3328 }
   0x7   : > { %205 = sbr.rel (%p202_p3) target bundleno = 615 (0x267), region = 40  ;;  %v2561_v1 = vld [vmem:[%s3165_s1 + $0x100] sm:$0xff] (!%p202_p3)   ;;  %2303 = vmatprep.subr.bf16.mxu1 (!%p202_p3), %v2560_v0  ;;  %v2563_v3 = vld [vmem:[%s3165_s1 + $0x108] sm:$0xff] (!%p202_p3)   ;;  %v2565_v5 = vld [vmem:[%s3165_s1 + $0x110] sm:$0xff] (!%p202_p3)   ;;  %vm278_vm1 = vsmask.f32 (!%p202_p3), 7440 }
   0x8   : > { %2383 = vmatprep.subr.bf16.mxu0 (!%p202_p3), %v2561_v1  ;;  %2304 = vmatpush3.bf16.msra.mxu1 (!%p202_p3), %v2560_v0  ;;  %v2566_v6 = vld [vmem:[%s3165_s1 + $0x58] sm:$0xff] (!%p202_p3)   ;;  %v2568_v8 = vld [vmem:[%s3165_s1 + $0x60] sm:$0xff] (!%p202_p3)   ;;  %v2570_v10 = vld [vmem:[%s3165_s1 + $0x68] sm:$0xff] (!%p202_p3)   ;;  %vm579_vm3 = vcmask (!%p202_p3), 1042432   ;;  %vm580_vm4 = vcmask (!%p202_p3), 1046532  }
   0x9   : > { %2384 = vmatpush3.bf16.msra.mxu0 (!%p202_p3), %v2561_v1  ;;  %2305 = vmatprep.subr.bf16.mxu1 (!%p202_p3), %v2562_v2  ;;  %v2567_v7 = vld [vmem:[%s3165_s1 + $0x118] sm:$0xff] (!%p202_p3)   ;;  %v2569_v9 = vld [vmem:[%s3165_s1 + $0x120] sm:$0xff] (!%p202_p3)   ;;  %v2571_v14 = vld [vmem:[%s3165_s1 + $0x128] sm:$0xff] (!%p202_p3)  }
   0xa   : > { %2385 = vmatprep.subr.bf16.mxu0 (!%p202_p3), %v2563_v3  ;;  %v2572_v22 = vld [vmem:[%s3165_s1 + $0x70] sm:$0xff] (!%p202_p3)   ;;  %v2574_v37 = vld [vmem:[%s3165_s1 + $0x78] sm:$0xff] (!%p202_p3)   ;;  %vm2799_vm2 = vmor (!%p202_p3), %vm277_vm0, %vm278_vm1 }
   0xb   : > { %v2573_v23 = vld [vmem:[%s3165_s1 + $0x130] sm:$0xff] (!%p202_p3)   ;;  %v2575_v47 = vld [vmem:[%s3165_s1 + $0x138] sm:$0xff] (!%p202_p3)   ;;  %v2576_v63 = vld [vmem:[%s3165_s1] sm:$0xff] (!%p202_p3)  }
   0xc   : > { %2306 = vmatpush3.bf16.msra.mxu1 (!%p202_p3), %v2562_v2  ;;  %v2831_v1 = vld [vmem:[%s3165_s1 + $0x140] sm:$0xff] (!%p202_p3)   ;;  %vm2872_vm5 = vmor (!%p202_p3), %vm579_vm3, %vm580_vm4  ;;  %v2631_v38 = vld [vmem:[%s3165_s1 + $0x208] sm:$0xff] (!%p202_p3)  }
   0xd   : > { %2386 = vmatpush3.bf16.msra.mxu0 (!%p202_p3), %v2563_v3  ;;  %2307 = vmatprep.subr.bf16.mxu1 (!%p202_p3), %v2564_v4 }
   0xe   : > { %s3179_s18 = smov (!%p233_p4, %s2660_s18), 1  ;;  %2387 = vmatprep.subr.bf16.mxu0 %v2565_v5 }
   0xf   : > { %s2535_s13 = smul.u32 48, %s3179_s18  ;;  %s2202_s26 = sshll.u32 %s3179_s18, 5 }
  0x10   : > { %2308 = vmatpush3.bf16.msra.mxu1 %v2564_v4  ;;  %s246_s30 = scalar_lea.vmem %s3169_s5, %s2202_s26 }
  0x11   : > { %2388 = vmatpush3.bf16.msra.mxu0 %v2565_v5  ;;  %2309 = vmatprep.subr.bf16.mxu1 %v2566_v6  ;;  %s2754_s24 = scalar_lea.vmem %s3164_s0, %s2535_s13 }
  0x12   : > { %2389 = vmatprep.subr.bf16.mxu0 %v2567_v7  ;;  %v2760_v11 = vld [vmem:[%s2754_s24] sm:$0xf]  ;;  %v2763_v12 = vld [vmem:[%s2754_s24 + $0x8] sm:$0xf]  ;;  %v2766_v13 = vld [vmem:[%s2754_s24 + $0x4] sm:$0x1] }
  0x13   : > { %v2772_v15 = vld [vmem:[%s2754_s24 + $0xc] sm:$0x1]  ;;  %v281_v16 = vshrl.u32 %v2760_v11, 16  ;;  %v284_v17 = vshll.u32 %v2760_v11, 16  ;;  %v290_v18 = vshll.u32 %v2766_v13, 16  ;;  %v295_v19 = vshrl.u32 %v2763_v12, 16 }
  0x14   : > { %2310 = vmatpush3.bf16.msra.mxu1 %v2566_v6  ;;  %v298_v20 = vshll.u32 %v2763_v12, 16  ;;  %v304_v21 = vshll.u32 %v2772_v15, 16  ;;  %v2024_v30 = vld [vmem:[%s2754_s24 + $0x8] sm:$0xf]  ;;  %v2788_v31 = vld [vmem:[%s2754_s24 + $0xc] sm:$0x1] }
  0x15   : > { %2390 = vmatpush3.bf16.msra.mxu0 %v2567_v7  ;;  %2311 = vmatprep.subr.bf16.mxu1 %v2568_v8  ;;  %v283_v24 = vrot.slane %v281_v16, 4  ;;  %v286_v25 = vrot.slane %v284_v17, 5  ;;  %v292_v26 = vrot.slane %v290_v18, 5  ;;  %v297_v27 = vrot.slane %v295_v19, 4  ;;  %v2026_v33 = vld [vmem:[%s2754_s24 + $0x10] sm:$0xf] }
  0x16   : > { %2391 = vmatprep.subr.bf16.mxu0 %v2569_v9  ;;  %v300_v28 = vrot.slane %v298_v20, 5  ;;  %v306_v29 = vrot.slane %v304_v21, 5  ;;  %v2792_v34 = vld [vmem:[%s2754_s24 + $0x14] sm:$0x1]  ;;  %v871_v35 = vshrl.u32 %v2024_v30, 16  ;;  %v874_v36 = vshll.u32 %v2024_v30, 16 }
  0x17   : > { %v287_v32 = vor.u32 %v286_v25, %v283_v24  ;;  %v880_v40 = vshll.u32 %v2788_v31, 16  ;;  %v885_v41 = vshrl.u32 %v2026_v33, 16  ;;  %v888_v42 = vshll.u32 %v2026_v33, 16  ;;  %v2809_v51 = vld [vmem:[%s2754_s24 + $0x10] sm:$0xf] }
  0x18   : > { %2312 = vmatpush3.bf16.msra.mxu1 %v2568_v8  ;;  %v301_v39 = vor.u32 %v300_v28, %v297_v27  ;;  %v873_v44 = vrot.slane %v871_v35, 4  ;;  %v876_v45 = vrot.slane %v874_v36, 5  ;;  %v894_v46 = vshll.u32 %v2792_v34, 16  ;;  %v2814_v55 = vld [vmem:[%s2754_s24 + $0x18] sm:$0xf] }
  0x19   : > { %2392 = vmatpush3.bf16.msra.mxu0 %v2569_v9  ;;  %2313 = vmatprep.subr.bf16.mxu1 %v2570_v10  ;;  %v288_v43 = vrot.slane %v287_v32, 4  ;;  %v887_v49 = vrot.slane %v885_v41, 4  ;;  %v890_v50 = vrot.slane %v888_v42, 5  ;;  %v882_v54 = vrot.slane %v880_v40, 5  ;;  %v2817_v56 = vld [vmem:[%s2754_s24 + $0x14] sm:$0x1] }
  0x1a   : > { %2393 = vmatprep.subr.bf16.mxu0 %v2571_v14  ;;  %v302_v48 = vrot.slane %v301_v39, 4  ;;  %v877_v53 = vor.u32 %v876_v45, %v873_v44  ;;  %v896_v59 = vrot.slane %v894_v46, 5  ;;  %v2822_v60 = vld [vmem:[%s2754_s24 + $0x1c] sm:$0x1]  ;;  %v309_v61 = vshrl.u32 %v2809_v51, 16 }
  0x1b   : > { %v293_v52 = vsel %vm2799_vm2, %v288_v43, %v292_v26  ;;  %v891_v58 = vor.u32 %v890_v50, %v887_v49  ;;  %v312_v2 = vshll.u32 %v2809_v51, 16  ;;  %v318_v3 = vshll.u32 %v2817_v56, 16  ;;  %v2028_v8 = vld [vmem:[%s2754_s24 + $0x18] sm:$0xf]  ;;  %v2842_v16 = vld [vmem:[%s2754_s24 + $0x1c] sm:$0x1] }
  0x1c   : > { %2314 = vmatpush3.bf16.msra.mxu1 %v2570_v10  ;;  %v307_v57 = vsel %vm2799_vm2, %v302_v48, %v306_v29  ;;  %v878_v0 = vrot.slane %v877_v53, 4  ;;  %v311_v5 = vrot.slane %v309_v61, 4  ;;  %v323_v6 = vshrl.u32 %v2814_v55, 16  ;;  %v2030_v17 = vld [vmem:[%s2754_s24 + $0x20] sm:$0xf]  ;;  %v2578_v43 = vld [vmem:[%s3165_s1 + $0x8] sm:$0xff]  }
  0x1d   : > { %2394 = vmatpush3.bf16.msra.mxu0 %v2571_v14  ;;  %2315 = vmatprep.subr.bf16.mxu1 %v2572_v22  ;;  %v1944_v62 = vcombine.low %v293_v52, %v307_v57  ;;  %v892_v4 = vrot.slane %v891_v58, 4  ;;  %v326_v7 = vshll.u32 %v2814_v55, 16  ;;  %v314_v10 = vrot.slane %v312_v2, 5  ;;  %v2848_v21 = vld [vmem:[%s2754_s24 + $0x24] sm:$0x1]  ;;  %v2579_v58 = vld [vmem:[%s3165_s1 + $0x148] sm:$0xff]  }
  0x1e   : > { %2395 = vmatprep.subr.bf16.mxu0 %v2573_v23  ;;  %v883_v9 = vsel %vm2799_vm2, %v878_v0, %v882_v54  ;;  %v332_v14 = vshll.u32 %v2822_v60, 16  ;;  %v325_v19 = vrot.slane %v323_v6, 4  ;;  %v320_v24 = vrot.slane %v318_v3, 5  ;;  %v2581_v0 = vld [vmem:[%s3165_s1 + $0x150] sm:$0xff]   ;;  %v2058_v2 = vld [vmem:[%s2754_s24 + $0x8] sm:$0xe] }
  0x1f   : > { %2319 = vmatprep.mubr.bf16.mxu1 %v1944_v62  ;;  %v897_v18 = vsel %vm2799_vm2, %v892_v4, %v896_v59  ;;  %v328_v20 = vrot.slane %v326_v7, 5  ;;  %v899_v27 = vshrl.u32 %v2028_v8, 16  ;;  %v902_v28 = vshll.u32 %v2028_v8, 16  ;;  %v2582_v62 = vld [vmem:[%s3165_s1 + $0x18] sm:$0xff]   ;;  %v2059_v3 = vld [vmem:[%s2754_s24 + $0x10] sm:$0xe] }
  0x20   : > { %2316 = vmatpush3.bf16.msra.mxu1 %v2572_v22  ;;  %v2048_v22 = vcombine.low %v883_v9, %v897_v18  ;;  %v334_v25 = vrot.slane %v332_v14, 5  ;;  %v908_v29 = vshll.u32 %v2842_v16, 16  ;;  %v913_v32 = vshrl.u32 %v2030_v17, 16  ;;  %v2586_v8 = vld [vmem:[%s3165_s1 + $0x28] sm:$0xff]   ;;  %v2585_v9 = vld [vmem:[%s3165_s1 + $0x160] sm:$0xff]   ;;  %v2640_v59 = vld [vmem:[%s3167_s3 + $0x10] sm:$0xff]  }
  0x21   : > { %2396 = vmatpush3.bf16.msra.mxu0 %v2573_v23  ;;  %2317 = vmatprep.subr.bf16.mxu1 %v2574_v37  ;;  %v315_v23 = vor.u32 %v314_v10, %v311_v5  ;;  %v329_v26 = vor.u32 %v328_v20, %v325_v19  ;;  %v916_v33 = vshll.u32 %v2030_v17, 16  ;;  %v922_v35 = vshll.u32 %v2848_v21, 16  ;;  %v2588_v10 = vld [vmem:[%s3165_s1 + $0x30] sm:$0xff]   ;;  %v2587_v17 = vld [vmem:[%s3165_s1 + $0x168] sm:$0xff]  }
  0x22   : > { %2397 = vmatprep.subr.bf16.mxu0 %v2575_v47  ;;  %2399 = vmatprep.mubr.bf16.mxu0 %v2048_v22  ;;  %v904_v39 = vrot.slane %v902_v28, 5  ;;  %v915_v41 = vrot.slane %v913_v32, 4  ;;  %v1954_v44 = vcombine.low %v2760_v11, %v2763_v12  ;;  %v2580_v12 = vld [vmem:[%s3165_s1 + $0x10] sm:$0xff]   ;;  %v1066_v61 = vrot.slane %v2788_v31, 5  ;;  %v2584_v31 = vld [vmem:[%s3165_s1 + $0x20] sm:$0xff]  }
  0x23   : > { %v316_v30 = vrot.slane %v315_v23, 4  ;;  %v330_v36 = vrot.slane %v329_v26, 4  ;;  %v918_v42 = vrot.slane %v916_v33, 5  ;;  %v924_v48 = vrot.slane %v922_v35, 5  ;;  %v2589_v22 = vld [vmem:[%s3165_s1 + $0x170] sm:$0xff]  }
  0x24   : > { %2318 = vmatpush3.bf16.msra.mxu1 %v2574_v37  ;;  %v901_v37 = vrot.slane %v899_v27, 4  ;;  %v2062_v4 = vrot.slane %v2058_v2, 9  ;;  %v2063_v5 = vrot.slane %v2059_v3, 9  ;;  %v584_v14 = vrot.slane %v2766_v13, 5  ;;  %v2590_v13 = vld [vmem:[%s3165_s1 + $0x38] sm:$0xff]   ;;  %v2606_v2 = vld [vmem:[%s3165_s1 + $0xb0] sm:$0xff]  }
  0x25   : > { %2398 = vmatpush3.bf16.msra.mxu0 %v2575_v47  ;;  %2323 = vmatprep.subr.bf16.mxu1 %v2576_v63  ;;  %v321_v40 = vsel %vm2799_vm2, %v316_v30, %v320_v24  ;;  %v335_v45 = vsel %vm2799_vm2, %v330_v36, %v334_v25  ;;  %v910_v47 = vrot.slane %v908_v29, 5  ;;  %v919_v50 = vor.u32 %v918_v42, %v915_v41  ;;  %v2060_v23 = vld [vmem:[%s2754_s24 + $0x18] sm:$0xe]  ;;  %v2061_v24 = vld [vmem:[%s2754_s24 + $0x20] sm:$0xe]  ;;  %v2605_v3 = vld [vmem:[%s3165_s1 + $0x1a8] sm:$0xff]  }
  0x26   : > { %2403 = vmatprep.subr.bf16.mxu0 %v2831_v1  ;;  %v905_v46 = vor.u32 %v904_v39, %v901_v37  ;;  %v1945_v49 = vcombine.low %v321_v40, %v335_v45  ;;  %v588_v18 = vrot.slane %v2772_v15, 5  ;;  %v592_v19 = vrot.slane %v2817_v56, 5  ;;  %v2593_v56 = vld [vmem:[%s3165_s1 + $0x80] sm:$0xff]   ;;  %v568_v26 = vld [vmem:[%s2754_s24 + $0x8] sm:$0xe] }
  0x27   : > { %v920_v53 = vrot.slane %v919_v50, 4  ;;  %v1074_v20 = vrot.slane %v2842_v16, 5  ;;  %v1078_v15 = vrot.slane %v2848_v21, 5  ;;  %v567_v16 = vld [vmem:[%s2754_s24] sm:$0xe]  ;;  %v2064_v25 = vrot.slane %v2060_v23, 9 }
  0x28   : > { %v906_v52 = vrot.slane %v905_v46, 4  ;;  %2320 = vmatmul.mubr.bf16.vlgmr.msra.gmra.mrb[0].mxu1 %v1945_v49  ;;  %v1964_v27 = vrot.slane %v567_v16, 9  ;;  %v2065_v28 = vrot.slane %v2061_v24, 9  ;;  %v1965_v29 = vrot.slane %v568_v26, 9  ;;  %v2591_v21 = vld [vmem:[%s3165_s1 + $0x178] sm:$0xff]  }
  0x29   : > { %2324 = vmatpush3.bf16.msra.mxu1 %v2576_v63  ;;  %2339 = vmatprep.mubr.bf16.mxu1 %v1954_v44  ;;  %v925_v11 = vsel %vm2799_vm2, %v920_v53, %v924_v48  ;;  %v1070_v63 = vrot.slane %v2792_v34, 5  ;;  %v2583_v34 = vld [vmem:[%s3165_s1 + $0x158] sm:$0xff]   ;;  %v596_v30 = vrot.slane %v2822_v60, 5  ;;  %v1955_v33 = vcombine.low %v2809_v51, %v2814_v55  ;;  %v569_v36 = vld [vmem:[%s2754_s24 + $0x10] sm:$0xe]  ;;  %v2596_v51 = vld [vmem:[%s3165_s1 + $0x88] sm:$0xff]  }
  0x2a   : > { %v911_v54 = vsel %vm2799_vm2, %v906_v52, %v910_v47  ;;  %2325 = vmatprep.subr.bf16.mxu1 %v2578_v43  ;;  %v585_v32 = vsel %vm2872_vm5, %v1964_v27, %v584_v14  ;;  %v589_v35 = vsel %vm2872_vm5, %v1965_v29, %v588_v18  ;;  %v570_v37 = vld [vmem:[%s2754_s24 + $0x18] sm:$0xe]  ;;  %v1966_v40 = vrot.slane %v569_v36, 9  ;;  %v2594_v55 = vld [vmem:[%s3165_s1 + $0x180] sm:$0xff]   ;;  %v2597_v47 = vld [vmem:[%s3165_s1 + $0x188] sm:$0xff]  }
  0x2b   : > { %v2049_v57 = vcombine.low %v911_v54, %v925_v11  ;;  %v1071_v6 = vsel %vm2872_vm5, %v2063_v5, %v1070_v63  ;;  %v1984_v39 = vcombine.low %v585_v32, %v589_v35  ;;  %v1967_v60 = vrot.slane %v570_v37, 9  ;;  %v2598_v48 = vld [vmem:[%s3165_s1 + $0x90] sm:$0xff]   ;;  %v2600_v50 = vld [vmem:[%s3165_s1 + $0x98] sm:$0xff]   ;;  %v2602_v53 = vld [vmem:[%s3165_s1 + $0xa0] sm:$0xff]  }
  0x2c   : > { %v1075_v41 = vsel %vm2872_vm5, %v2064_v25, %v1074_v20  ;;  %v1079_v42 = vsel %vm2872_vm5, %v2065_v28, %v1078_v15  ;;  %v2611_v49 = vld [vmem:[%s2754_s24 + $0x10] ss:$8 sps:$4 sm:$0xff]   ;;  %v2604_v11 = vld [vmem:[%s3165_s1 + $0xa8] sm:$0xff]   ;;  %v2996_v5 = vld [vmem:[%s2754_s24 + $0x1c] sm:$0x1] }
  0x2d   : > { %2400 = vmatmul.mubr.bf16.vlgmr.msra.gmra.mrb[0].mxu0 %v2049_v57  ;;  %2326 = vmatpush3.bf16.msra.mxu1 %v2578_v43  ;;  %v2951_v43 = vsel %vm2872_vm5, %v1966_v40, %v592_v19  ;;  %v2955_v44 = vsel %vm2872_vm5, %v1967_v60, %v596_v30  ;;  %v2083_v46 = vcombine.low %v1075_v41, %v1079_v42  ;;  %v2599_v52 = vld [vmem:[%s3165_s1 + $0x190] sm:$0xff]   ;;  %v2601_v54 = vld [vmem:[%s3165_s1 + $0x198] sm:$0xff]   ;;  %v2603_v57 = vld [vmem:[%s3165_s1 + $0x1a0] sm:$0xff]  }
  0x2e   : > { %2404 = vmatpush3.bf16.msra.mxu0 %v2831_v1  ;;  %2327 = vmatprep.subr.bf16.mxu1 %v2580_v12  ;;  %v1067_v1 = vsel %vm2872_vm5, %v2062_v4, %v1066_v61  ;;  %v1985_v45 = vcombine.low %v2951_v43, %v2955_v44  ;;  %v2993_v4 = vld [vmem:[%s2754_s24 + $0x14] sm:$0x1]  ;;  %v2610_v18 = vld [vmem:[%s3165_s1 + $0xc0] sm:$0xff]   ;;  %v2609_v19 = vld [vmem:[%s3165_s1 + $0x1b8] sm:$0xff]  }
  0x2f   : > { %2405 = vmatprep.subr.bf16.mxu0 %v2579_v58  ;;  %v2082_v7 = vcombine.low %v1067_v1, %v1071_v6  ;;  %v2628_v24 = vld [vmem:[%s2754_s24 + $0x8] ss:$8 sps:$4 sm:$0xff]   ;;  %v2612_v15 = vld [vmem:[%s3165_s1 + $0x1c0] sm:$0xff]   ;;  %v2618_v30 = vld [vmem:[%s3165_s1 + $0xd8] sm:$0xff]  }
  0x30   : > { %v2613_v16 = vld [vmem:[%s2754_s24 + $0x20] ss:$8 sps:$4 sm:$0xff]   ;;  %v2616_v25 = vld [vmem:[%s3165_s1 + $0xd0] sm:$0xff]  }
  0x31   : > { %2328 = vmatpush3.bf16.msra.mxu1 %v2580_v12  ;;  %2419 = vmatprep.mubr.bf16.mxu0 %v2082_v7  ;;  %v2122_v12 = vld [vmem:[%s2754_s24 + $0x10] sm:$0xf]  ;;  %v2608_v7 = vld [vmem:[%s3165_s1 + $0xb8] sm:$0xff]   ;;  %v2615_v28 = vld [vmem:[%s3165_s1 + $0x1c8] sm:$0xff]  }
  0x32   : > { %2406 = vmatpush3.bf16.msra.mxu0 %v2579_v58  ;;  %2329 = vmatprep.subr.bf16.mxu1 %v2582_v62  ;;  %v2124_v58 = vld [vmem:[%s2754_s24 + $0x18] sm:$0xf]  ;;  %v1353_v61 = vshrl.u32 %v2122_v12, 16  ;;  %v2620_v32 = vld [vmem:[%s3165_s1 + $0xe0] sm:$0xff]   ;;  %v2128_v36 = vld [vmem:[%s2754_s24 + $0x28] sm:$0xf] }
  0x33   : > { %2407 = vmatprep.subr.bf16.mxu0 %v2581_v0  ;;  %v1367_v63 = vshrl.u32 %v2124_v58, 16  ;;  %v2126_v35 = vld [vmem:[%s2754_s24 + $0x20] sm:$0xf]  ;;  %v2622_v37 = vld [vmem:[%s3165_s1 + $0xe8] sm:$0xff]   ;;  %v1395_v60 = vshrl.u32 %v2128_v36, 16  ;;  %v1398_v41 = vshll.u32 %v2128_v36, 16 }
  0x34   : > { %v1384_v40 = vshll.u32 %v2126_v35, 16  ;;  %v2621_v42 = vld [vmem:[%s3165_s1 + $0x1e0] sm:$0xff]  }
  0x35   : > { %2330 = vmatpush3.bf16.msra.mxu1 %v2582_v62  ;;  %v1356_v62 = vshll.u32 %v2122_v12, 16  ;;  %v1369_v1 = vrot.slane %v1367_v63, 4  ;;  %v1397_v44 = vrot.slane %v1395_v60, 4  ;;  %v2156_v12 = vld [vmem:[%s2754_s24 + $0x10] sm:$0xe] }
  0x36   : > { %2408 = vmatpush3.bf16.msra.mxu0 %v2581_v0  ;;  %2331 = vmatprep.subr.bf16.mxu1 %v2584_v31  ;;  %v1370_v0 = vshll.u32 %v2124_v58, 16  ;;  %v1386_v43 = vrot.slane %v1384_v40, 5 }
  0x37   : > { %2409 = vmatprep.subr.bf16.mxu0 %v2583_v34 }
  0x38   : > { %v1372_v6 = vrot.slane %v1370_v0, 5  ;;  %v2627_v0 = vld [vmem:[%s3165_s1 + $0x1f8] sm:$0xff]  }
  0x39   : > { %2332 = vmatpush3.bf16.msra.mxu1 %v2584_v31  ;;  %v1355_v31 = vrot.slane %v1353_v61, 4 }
  0x3a   : > { %2410 = vmatpush3.bf16.msra.mxu0 %v2583_v34  ;;  %2333 = vmatprep.subr.bf16.mxu1 %v2586_v8  ;;  %v1358_v34 = vrot.slane %v1356_v62, 5 }
  0x3b   : > { %2411 = vmatprep.subr.bf16.mxu0 %v2585_v9 }
  0x3c   : > { %v1359_v14 = vor.u32 %v1358_v34, %v1355_v31  ;;  %v1552_v34 = vrot.slane %v2996_v5, 5 }
  0x3d   : > { %2334 = vmatpush3.bf16.msra.mxu1 %v2586_v8  ;;  %v2607_v8 = vld [vmem:[%s3165_s1 + $0x1b0] sm:$0xff]  }
  0x3e   : > { %2412 = vmatpush3.bf16.msra.mxu0 %v2585_v9  ;;  %2335 = vmatprep.subr.bf16.mxu1 %v2588_v10  ;;  %v1362_v9 = vshll.u32 %v2993_v4, 16  ;;  %v1360_v20 = vrot.slane %v1359_v14, 4  ;;  %v2632_v14 = vld [vmem:[%s3165_s1 + $0x210] sm:$0xff]  }
  0x3f   : > { %2413 = vmatprep.subr.bf16.mxu0 %v2587_v17 }
  0x41   : > { %2336 = vmatpush3.bf16.msra.mxu1 %v2588_v10  ;;  %v1376_v10 = vshll.u32 %v2996_v5, 16 }
  0x42   : > { %2414 = vmatpush3.bf16.msra.mxu0 %v2587_v17  ;;  %2337 = vmatprep.subr.bf16.mxu1 %v2590_v13  ;;  %v1373_v17 = vor.u32 %v1372_v6, %v1369_v1  ;;  %v2629_v1 = vld [vmem:[%s2754_s24 + $0x18] ss:$8 sps:$4 sm:$0xff]  }
  0x43   : > { %2415 = vmatprep.subr.bf16.mxu0 %v2589_v22  ;;  %v1378_v23 = vrot.slane %v1376_v10, 5 }
  0x45   : > { %2338 = vmatpush3.bf16.msra.mxu1 %v2590_v13  ;;  %v1374_v13 = vrot.slane %v1373_v17, 4  ;;  %v2633_v17 = vld [vmem:[%s3165_s1 + $0x218] sm:$0xff]  }
  0x46   : > { %2416 = vmatpush3.bf16.msra.mxu0 %v2589_v22  ;;  %2343 = vmatprep.subr.bf16.mxu1 %v2593_v56  ;;  %v1364_v22 = vrot.slane %v1362_v9, 5 }
  0x47   : > { %2417 = vmatprep.subr.bf16.mxu0 %v2591_v21  ;;  %v1379_v27 = vsel %vm2799_vm2, %v1374_v13, %v1378_v23  ;;  %v2159_v13 = vld [vmem:[%s2754_s24 + $0x28] sm:$0xe] }
  0x48   : > { %2340 = vmatmul.mubr.bf16.vlgmr.msra.gmra.mrb[0].mxu1 %v1955_v33  ;;  %v1365_v26 = vsel %vm2799_vm2, %v1360_v20, %v1364_v22  ;;  %v2619_v33 = vld [vmem:[%s3165_s1 + $0x1d8] sm:$0xff]   ;;  %v2636_v20 = vld [vmem:[%s3165_s1 + $0x230] sm:$0xff]   ;;  %v2158_v22 = vld [vmem:[%s2754_s24 + $0x20] sm:$0xe] }
  0x49   : > { %2344 = vmatpush3.bf16.msra.mxu1 %v2593_v56  ;;  %2359 = vmatprep.mubr.bf16.mxu1 %v1984_v39  ;;  %v2614_v56 = vld [vmem:[%s3165_s1 + $0xc8] sm:$0xff]   ;;  %v2146_v29 = vcombine.low %v1365_v26, %v1379_v27  ;;  %v1381_v39 = vshrl.u32 %v2126_v35, 16  ;;  %v2162_v23 = vrot.slane %v2158_v22, 9  ;;  %v2645_v35 = vld [vmem:[%s3167_s3 + $0x38] sm:$0xff]  }
  0x4a   : > { %2418 = vmatpush3.bf16.msra.mxu0 %v2591_v21  ;;  %2345 = vmatprep.subr.bf16.mxu1 %v2596_v51  ;;  %v2617_v21 = vld [vmem:[%s3165_s1 + $0x1d0] sm:$0xff]  }
  0x4b   : > { %2423 = vmatprep.subr.bf16.mxu0 %v2594_v55 }
  0x4d   : > { %2420 = vmatmul.mubr.bf16.vlgmr.msra.gmra.mrb[0].mxu0 %v2083_v46  ;;  %2346 = vmatpush3.bf16.msra.mxu1 %v2596_v51  ;;  %v2624_v51 = vld [vmem:[%s3165_s1 + $0xf0] sm:$0xff]   ;;  %v2623_v46 = vld [vmem:[%s3165_s1 + $0x1e8] sm:$0xff]  }
  0x4e   : > { %2424 = vmatpush3.bf16.msra.mxu0 %v2594_v55  ;;  %2347 = vmatprep.subr.bf16.mxu1 %v2598_v48  ;;  %v1383_v55 = vrot.slane %v1381_v39, 4 }
  0x4f   : > { %2425 = vmatprep.subr.bf16.mxu0 %v2597_v47  ;;  %2439 = vmatprep.mubr.bf16.mxu0 %v2611_v49  ;;  %v2626_v49 = vld [vmem:[%s3165_s1 + $0xf8] sm:$0xff]  }
  0x51   : > { %2348 = vmatpush3.bf16.msra.mxu1 %v2598_v48  ;;  %v3063_v48 = vld [vmem:[%s2754_s24 + $0x2c] sm:$0x1] }
  0x52   : > { %2426 = vmatpush3.bf16.msra.mxu0 %v2597_v47  ;;  %2349 = vmatprep.subr.bf16.mxu1 %v2600_v50  ;;  %v3060_v47 = vld [vmem:[%s2754_s24 + $0x24] sm:$0x1] }
  0x53   : > { %2427 = vmatprep.subr.bf16.mxu0 %v2599_v52 }
  0x55   : > { %2350 = vmatpush3.bf16.msra.mxu1 %v2600_v50  ;;  %v1387_v50 = vor.u32 %v1386_v43, %v1383_v55 }
  0x56   : > { %2428 = vmatpush3.bf16.msra.mxu0 %v2599_v52  ;;  %2351 = vmatprep.subr.bf16.mxu1 %v2602_v53  ;;  %v1390_v52 = vshll.u32 %v3060_v47, 16 }
  0x57   : > { %2429 = vmatprep.subr.bf16.mxu0 %v2601_v54  ;;  %v1388_v58 = vrot.slane %v1387_v50, 4 }
  0x58   : > { %v1392_v61 = vrot.slane %v1390_v52, 5 }
  0x59   : > { %2352 = vmatpush3.bf16.msra.mxu1 %v2602_v53 }
  0x5a   : > { %2430 = vmatpush3.bf16.msra.mxu0 %v2601_v54  ;;  %2353 = vmatprep.subr.bf16.mxu1 %v2604_v11  ;;  %v1404_v54 = vshll.u32 %v3063_v48, 16  ;;  %v1393_v6 = vsel %vm2799_vm2, %v1388_v58, %v1392_v61  ;;  %v2191_v58 = vld [vmem:[%s3168_s4] ss:$0 sm:$0xff] }
  0x5b   : > { %2431 = vmatprep.subr.bf16.mxu0 %v2603_v57 }
  0x5c   : > { %v1406_v63 = vrot.slane %v1404_v54, 5 }
  0x5d   : > { %2354 = vmatpush3.bf16.msra.mxu1 %v2604_v11  ;;  %v2625_v11 = vld [vmem:[%s3165_s1 + $0x1f0] sm:$0xff]  }
  0x5e   : > { %2432 = vmatpush3.bf16.msra.mxu0 %v2603_v57  ;;  %2355 = vmatprep.subr.bf16.mxu1 %v2606_v2  ;;  %v2157_v57 = vld [vmem:[%s2754_s24 + $0x18] sm:$0xe] }
  0x5f   : > { %2433 = vmatprep.subr.bf16.mxu0 %v2605_v3  ;;  %v2161_v31 = vrot.slane %v2157_v57, 9 }
  0x61   : > { %2356 = vmatpush3.bf16.msra.mxu1 %v2606_v2  ;;  %v2160_v2 = vrot.slane %v2156_v12, 9  ;;  %v1553_v5 = vsel %vm2872_vm5, %v2161_v31, %v1552_v34 }
  0x62   : > { %2434 = vmatpush3.bf16.msra.mxu0 %v2605_v3  ;;  %2357 = vmatprep.subr.bf16.mxu1 %v2608_v7  ;;  %v1548_v3 = vrot.slane %v2993_v4, 5 }
  0x63   : > { %2435 = vmatprep.subr.bf16.mxu0 %v2607_v8 }
  0x64   : > { %v1549_v4 = vsel %vm2872_vm5, %v2160_v2, %v1548_v3 }
  0x65   : > { %2358 = vmatpush3.bf16.msra.mxu1 %v2608_v7  ;;  %v2180_v10 = vcombine.low %v1549_v4, %v1553_v5 }
  0x66   : > { %2436 = vmatpush3.bf16.msra.mxu0 %v2607_v8  ;;  %2363 = vmatprep.subr.bf16.mxu1 %v2610_v18  ;;  %v2630_v8 = vld [vmem:[%s3165_s1 + $0x200] sm:$0xff]  }
  0x67   : > { %2437 = vmatprep.subr.bf16.mxu0 %v2609_v19 }
  0x68   : > { %2360 = vmatmul.mubr.bf16.vlgmr.msra.gmra.mrb[0].mxu1 %v1985_v45  ;;  %v1400_v45 = vrot.slane %v1398_v41, 5  ;;  %v2190_v41 = vld [vmem:[%s3166_s2] ss:$0 sm:$0xff] }
  0x69   : > { %2364 = vmatpush3.bf16.msra.mxu1 %v2610_v18  ;;  %2379 = vmatprep.mubr.bf16.mxu1 %v2628_v24  ;;  %v2634_v18 = vld [vmem:[%s3165_s1 + $0x220] sm:$0xff]   ;;  %v1556_v24 = vrot.slane %v3060_v47, 5 }
  0x6a   : > { %2438 = vmatpush3.bf16.msra.mxu0 %v2609_v19  ;;  %2365 = vmatprep.subr.bf16.mxu1 %v2614_v56  ;;  %v1401_v53 = vor.u32 %v1400_v45, %v1397_v44  ;;  %v2635_v19 = vld [vmem:[%s3165_s1 + $0x228] sm:$0xff]  }
  0x6b   : > { %2443 = vmatprep.subr.bf16.mxu0 %v2612_v15 }
  0x6c   : > { %v1402_v62 = vrot.slane %v1401_v53, 4 }
  0x6d   : > { %2440 = vmatmul.mubr.bf16.vlgmr.msra.gmra.mrb[0].mxu0 %v2613_v16  ;;  %2366 = vmatpush3.bf16.msra.mxu1 %v2614_v56  ;;  %v1560_v56 = vrot.slane %v3063_v48, 5  ;;  %v2637_v16 = vld [vmem:[%s3165_s1 + $0x238] sm:$0xff]  }
  0x6e   : > { %2444 = vmatpush3.bf16.msra.mxu0 %v2612_v15  ;;  %2367 = vmatprep.subr.bf16.mxu1 %v2616_v25  ;;  %v1407_v7 = vsel %vm2799_vm2, %v1402_v62, %v1406_v63  ;;  %v2163_v15 = vrot.slane %v2159_v13, 9 }
  0x6f   : > { %2445 = vmatprep.subr.bf16.mxu0 %v2615_v28  ;;  %2459 = vmatprep.mubr.bf16.mxu0 %v2146_v29  ;;  %v2147_v9 = vcombine.low %v1393_v6, %v1407_v7  ;;  %v2639_v29 = vld [vmem:[%s3167_s3 + $0x8] sm:$0xff]  }
  0x70   : > { %v1561_v26 = vsel %vm2872_vm5, %v2163_v15, %v1560_v56 }
  0x71   : > { %2368 = vmatpush3.bf16.msra.mxu1 %v2616_v25  ;;  %v1557_v25 = vsel %vm2872_vm5, %v2162_v23, %v1556_v24 }
  0x72   : > { %2446 = vmatpush3.bf16.msra.mxu0 %v2615_v28  ;;  %2369 = vmatprep.subr.bf16.mxu1 %v2618_v30  ;;  %v2181_v27 = vcombine.low %v1557_v25, %v1561_v26  ;;  %v2638_v28 = vld [vmem:[%s3167_s3] sm:$0xff]  }
  0x73   : > { %2447 = vmatprep.subr.bf16.mxu0 %v2617_v21 }
  0x75   : > { %2370 = vmatpush3.bf16.msra.mxu1 %v2618_v30  ;;  %v2641_v30 = vld [vmem:[%s3167_s3 + $0x18] sm:$0xff]  }
  0x76   : > { %2448 = vmatpush3.bf16.msra.mxu0 %v2617_v21  ;;  %2371 = vmatprep.subr.bf16.mxu1 %v2620_v32  ;;  %v2642_v21 = vld [vmem:[%s3167_s3 + $0x20] sm:$0xff]  }
  0x77   : > { %2449 = vmatprep.subr.bf16.mxu0 %v2619_v33 }
  0x79   : > { %2372 = vmatpush3.bf16.msra.mxu1 %v2620_v32  ;;  %v2643_v32 = vld [vmem:[%s3167_s3 + $0x28] sm:$0xff]  }
  0x7a   : > { %2450 = vmatpush3.bf16.msra.mxu0 %v2619_v33  ;;  %2373 = vmatprep.subr.bf16.mxu1 %v2622_v37  ;;  %v2644_v33 = vld [vmem:[%s3167_s3 + $0x30] sm:$0xff]  }
  0x7b   : > { %2451 = vmatprep.subr.bf16.mxu0 %v2621_v42 }
  0x7d   : > { %2374 = vmatpush3.bf16.msra.mxu1 %v2622_v37 }
  0x7e   : > { %2452 = vmatpush3.bf16.msra.mxu0 %v2621_v42  ;;  %2375 = vmatprep.subr.bf16.mxu1 %v2624_v51 }
  0x7f   : > { %2453 = vmatprep.subr.bf16.mxu0 %v2623_v46 }
  0x81   : > { %2376 = vmatpush3.bf16.msra.mxu1 %v2624_v51 }
  0x82   : > { %2454 = vmatpush3.bf16.msra.mxu0 %v2623_v46  ;;  %2377 = vmatprep.subr.bf16.mxu1 %v2626_v49 }
  0x83   : > { %2455 = vmatprep.subr.bf16.mxu0 %v2625_v11 }
  0x85   : > { %2378 = vmatpush3.bf16.msra.mxu1 %v2626_v49 }
  0x86   : > { %2456 = vmatpush3.bf16.msra.mxu0 %v2625_v11  ;;  %2483 = vmatprep.subr.bf16.mxu1 %v2638_v28 }
  0x87   : > { %2457 = vmatprep.subr.bf16.mxu0 %v2627_v0 }
  0x88   : > { %2380 = vmatmul.mubr.bf16.vlgmr.msra.gmra.mrb[0].mxu1 %v2629_v1 }
  0x89   : > { %2484 = vmatpush3.bf16.msra.mxu1 %v2638_v28 }
  0x8a   : > { %2458 = vmatpush3.bf16.msra.mxu0 %v2627_v0  ;;  %2485 = vmatprep.subr.bf16.mxu1 %v2639_v29 }
  0x8b   : > { %2463 = vmatprep.subr.bf16.mxu0 %v2630_v8 }
  0x8d   : > { %2460 = vmatmul.mubr.bf16.vlgmr.msra.gmra.mrb[0].mxu0 %v2147_v9  ;;  %2486 = vmatpush3.bf16.msra.mxu1 %v2639_v29 }
  0x8e   : > { %2464 = vmatpush3.bf16.msra.mxu0 %v2630_v8  ;;  %2479 = vmatprep.mubr.bf16.mxu0 %v2180_v10 }
  0x8f   : > { %2465 = vmatprep.subr.bf16.mxu0 %v2631_v38  ;;  %2487 = vmatprep.subr.bf16.mxu1 %v2640_v59 }
  0x91   : > { %2488 = vmatpush3.bf16.msra.mxu1 %v2640_v59 }
  0x92   : > { %2466 = vmatpush3.bf16.msra.mxu0 %v2631_v38  ;;  %2489 = vmatprep.subr.bf16.mxu1 %v2641_v30 }
  0x93   : > { %2467 = vmatprep.subr.bf16.mxu0 %v2632_v14 }
  0x95   : > { %2490 = vmatpush3.bf16.msra.mxu1 %v2641_v30 }
  0x96   : > { %2468 = vmatpush3.bf16.msra.mxu0 %v2632_v14  ;;  %2491 = vmatprep.subr.bf16.mxu1 %v2642_v21 }
  0x97   : > { %2469 = vmatprep.subr.bf16.mxu0 %v2633_v17 }
  0x99   : > { %2492 = vmatpush3.bf16.msra.mxu1 %v2642_v21 }
  0x9a   : > { %2470 = vmatpush3.bf16.msra.mxu0 %v2633_v17  ;;  %2493 = vmatprep.subr.bf16.mxu1 %v2643_v32 }
  0x9b   : > { %2471 = vmatprep.subr.bf16.mxu0 %v2634_v18 }
  0x9d   : > { %2494 = vmatpush3.bf16.msra.mxu1 %v2643_v32 }
  0x9e   : > { %2472 = vmatpush3.bf16.msra.mxu0 %v2634_v18  ;;  %2495 = vmatprep.subr.bf16.mxu1 %v2644_v33 }
  0x9f   : > { %2473 = vmatprep.subr.bf16.mxu0 %v2635_v19 }
  0xa1   : > { %2496 = vmatpush3.bf16.msra.mxu1 %v2644_v33 }
  0xa2   : > { %2474 = vmatpush3.bf16.msra.mxu0 %v2635_v19  ;;  %2497 = vmatprep.subr.bf16.mxu1 %v2645_v35 }
  0xa3   : > { %2475 = vmatprep.subr.bf16.mxu0 %v2636_v20 }
  0xa5   : > { %2498 = vmatpush3.bf16.msra.mxu1 %v2645_v35 }
  0xa6   : > { %2476 = vmatpush3.bf16.msra.mxu0 %v2636_v20 }
  0xa7   : > { %2477 = vmatprep.subr.bf16.mxu0 %v2637_v16 }
  0xaa   : > { %2478 = vmatpush3.bf16.msra.mxu0 %v2637_v16 }
  0xad   : > { %2480 = vmatmul.mubr.bf16.vlgmr.msra.gmra.mrb[0].mxu0 %v2181_v27 }
 0x15b   : > { %v2381_v36 = vpop.f32.mrb[0].mxu1 }
 0x15c   : > { %v843_v37 = vpop.f32.mrb[1].mxu1 }
 0x15d   : > { %v2382_v39 = vpop.f32.mrb[2].mxu1 }
 0x15e   : > { %v846_v40 = vpop.f32.mrb[3].mxu1 }
 0x180   : > { %v2481_v60 = vpop.f32.mrb[0].mxu0 }
 0x181   : > { %v2503_v42 = vadd.f32 %v2481_v60, %v2381_v36  ;;  %v1669_v51 = vpop.f32.mrb[1].mxu0 }
 0x182   : > { %v2504_v55 = vadd.f32 %v1669_v51, %v843_v37  ;;  %v2482_v43 = vpop.f32.mrb[2].mxu0 }
 0x183   : > { %v1697_v44 = vadd.f32 %v2503_v42, %v2190_v41  ;;  %v2505_v45 = vadd.f32 %v2482_v43, %v2382_v39  ;;  %v1672_v46 = vpop.f32.mrb[3].mxu0 }
 0x184   : > { %v1695_v47 = vadd.f32 %v2504_v55, %v2190_v41  ;;  %v2506_v48 = vadd.f32 %v1672_v46, %v846_v40 }
 0x185   : > { %v1698_v49 = vadd.f32 %v2505_v45, %v2190_v41  ;;  %v1701_v52 = vmax.f32 %v1697_v44, 0.0 }
 0x186   : > { %v1696_v50 = vadd.f32 %v2506_v48, %v2190_v41  ;;  %v1699_v54 = vmax.f32 %v1695_v47, 0.0 }
 0x187   : > { %v1702_v53 = vmax.f32 %v1698_v49, 0.0 }
 0x188   : > { %v1700_v11 = vmax.f32 %v1696_v50, 0.0 }
 0x189   : > { %v1704_v12 = vpack.c.bf16 %v1702_v53, %v1701_v52 }
 0x18a   : > { %v1703_v57 = vpack.c.bf16 %v1700_v11, %v1699_v54 }
 0x18c   : > { %2499 = vmatprep.mubr.bf16.mxu1 %v1703_v57 }
 0x18d   : > { %2500 = vmatmul.mubr.bf16.vlgmr.msra.gmra.mrb[4].mxu1 %v1704_v12 }
 0x260   : > { %v2501_v61 = vpop.f32.mrb[4].mxu1 }
 0x261   : > { %v1819_v62 = vadd.f32 %v2501_v61, %v2191_v58  ;;  %v1810_v63 = vpop.f32.mrb[5].mxu1 }
 0x262   : > { %v1811_v0 = vadd.f32 %v2191_v58, %v1810_v63  ;;  %v2502_v2 = vpop.f32.mrb[6].mxu1 }
 0x263   : > { %1827 = vst [vmem:[%s246_s30 + $0x10] sm:$0xff] %v1819_v62  ;;  %v1822_v3 = vadd.f32 %v2502_v2, %v2191_v58  ;;  %v1813_v31 = vpop.f32.mrb[7].mxu1 }
 0x264   : > { %1825 = vst [vmem:[%s246_s30] sm:$0xff] %v1811_v0  ;;  %v1814_v34 = vadd.f32 %v2191_v58, %v1813_v31 }
 0x265   : > { %1828 = vst [vmem:[%s246_s30 + $0x18] sm:$0xff] %v1822_v3 }
 0x266   : > { %1826 = vst [vmem:[%s246_s30 + $0x8] sm:$0xff] %v1814_v34 }
 0x267 PF: > { %s15_s20 = sadd.s32 1, %s2668_s20   ;;  %s3174_s18 = smov %s2664_s19 }
 0x268   : > { %p12_p5 = scmp.ge.s32.totalorder %s15_s20, 4   ;;  %s3175_s19 = smov %s3177_s21 }
 0x26a   :  { %14 = sbr.rel (!%p12_p5) target bundleno = 2 (0x2), region = 81 }

</bundles_post_ra>
